<compile_context>
chip_gen: v5e
topology: v5e:2x2
jax: 0.10.0
libtpu: 0.0.40
codegen_flags: <defaults>
</compile_context>

<pallas_src>
import jax
import jax.numpy as jnp
import numpy as np
from jax.experimental import pallas as pl
from jax.experimental.pallas import tpu as pltpu

# ---- module-level constants (mirror the PyTorch globals) --------------------
N_EMBED = 128
NUM_EXPERTS = 8
TOP_K = 2            # kernel hard-codes top-2 selection
BLOCK_SIZE = 32
N_HEAD = 4
HEAD_SIZE = N_EMBED // N_HEAD
EXPERT_HIDDEN = 4 * N_EMBED
SKIP_PROB_THRESHOLD = 0.5
LN_EPS = 1e-5


# -----------------------------------------------------------------------------
# Pallas kernel: one batch block (B_blk, T, D) per grid step.
# -----------------------------------------------------------------------------
def _block_kernel(x_ref, noise_ref,
                  ln1_g, ln1_b,
                  wqkv, wp, bp,
                  ln2_g, ln2_b,
                  wrt, brt,
                  w1f, b1f, w2f, b2m, expand,
                  out_ref):
    Bb, T, D = x_ref.shape        # block shape (static)
    E = noise_ref.shape[-1]
    M = Bb * T                    # flattened token count for all linears

    x = x_ref[...].reshape(M, D)                 # (M, D) f32
    noise = noise_ref[...].reshape(M, E)         # (M, E) f32 (replaces torch.randn_like)

    def layernorm(v, g, b):
        mu = jnp.mean(v, axis=-1, keepdims=True)
        var = jnp.mean((v - mu) ** 2, axis=-1, keepdims=True)
        return (v - mu) * jax.lax.rsqrt(var + LN_EPS) * g[...] + b[...]

    # ---------------- x = x + MultiHeadAttention(LN1(x)) ----------------------
    xn = layernorm(x, ln1_g, ln1_b)

    qkv = jnp.dot(xn.astype(jnp.bfloat16), wqkv[...],
                  preferred_element_type=jnp.float32)          # (M, 3D)
    q = qkv[:, :D].reshape(Bb, T, D)
    k = qkv[:, D:2 * D].reshape(Bb, T, D)
    v = qkv[:, 2 * D:].reshape(Bb, T, D)

    scale = jnp.float32(D) ** -0.5   # PyTorch reference scales by C**-0.5, C = n_embed
    row = jax.lax.broadcasted_iota(jnp.int32, (T, T), 0)
    col = jax.lax.broadcasted_iota(jnp.int32, (T, T), 1)
    causal = (row >= col)[None, :, :]            # (1, T, T), broadcast over batch

    heads = []
    for h in range(N_HEAD):
        sl = slice(h * HEAD_SIZE, (h + 1) * HEAD_SIZE)
        qh = q[:, :, sl].astype(jnp.bfloat16)
        kh = k[:, :, sl].astype(jnp.bfloat16)
        vh = v[:, :, sl].astype(jnp.bfloat16)
        s = jnp.einsum('bqd,bkd->bqk', qh, kh,
                       preferred_element_type=jnp.float32) * scale   # (Bb, T, T)
        s = jnp.where(causal, s, -jnp.inf)
        s = s - jnp.max(s, axis=-1, keepdims=True)
        p = jnp.exp(s)
        p = p / jnp.sum(p, axis=-1, keepdims=True)
        # TODO(synk): attention dropout omitted (eval-mode identity)
        heads.append(jnp.einsum('bqk,bkd->bqd', p.astype(jnp.bfloat16), vh,
                                preferred_element_type=jnp.float32))  # (Bb, T, hs)
    attn = jnp.concatenate(heads, axis=-1).reshape(M, D)
    attn = jnp.dot(attn.astype(jnp.bfloat16), wp[...],
                   preferred_element_type=jnp.float32) + bp[...]
    x = x + attn

    # ---------------- CrossLayerRouter on LN2(x) ------------------------------
    xn2 = layernorm(x, ln2_g, ln2_b)
    xn2_b = xn2.astype(jnp.bfloat16)

    rt = jnp.dot(xn2_b, wrt[...], preferred_element_type=jnp.float32) + brt[...]  # (M, 2E+1)
    logits = rt[:, :E]
    nlog = rt[:, E:2 * E]
    skip_logit = rt[:, 2 * E:2 * E + 1]

    softplus = jnp.maximum(nlog, 0.0) + jnp.log1p(jnp.exp(-jnp.abs(nlog)))
    noisy = logits + noise * softplus

    # top-2 sparse softmax (equivalent to topk + scatter(-inf) + softmax)
    eidx = jax.lax.broadcasted_iota(jnp.int32, (M, E), 1)
    m1 = jnp.max(noisy, axis=-1, keepdims=True)
    idx1 = jnp.min(jnp.where(noisy == m1, eidx, E), axis=-1, keepdims=True)
    masked = jnp.where(eidx == idx1, -jnp.inf, noisy)
    m2 = jnp.max(masked, axis=-1, keepdims=True)
    idx2 = jnp.min(jnp.where(masked == m2, eidx, E), axis=-1, keepdims=True)
    keep = (eidx == idx1) | (eidx == idx2)
    ew = jnp.where(keep, jnp.exp(noisy - m1), 0.0)
    router_w = ew / jnp.sum(ew, axis=-1, keepdims=True)        # (M, E), zero off-topk

    skip_prob = jax.nn.sigmoid(skip_logit)                     # (M, 1)

    # ---------------- fused MoE over all experts -------------------------------
    # Since router_w is exactly zero for non-selected experts, the dense sum is
    # identical to the per-token top-k loop in the PyTorch reference.
    h1 = jnp.dot(xn2_b, w1f[...], preferred_element_type=jnp.float32) + b1f[...]   # (M, E*4D)
    h1 = jnp.maximum(h1, 0.0)
    # replicate router weights across each expert's hidden block via a 0/1
    # selector matmul (avoids lane-crossing reshapes): scale[m, e*H + j] = router_w[m, e]
    scale_eh = jnp.dot(router_w, expand[...], preferred_element_type=jnp.float32)   # (M, E*4D)
    h1 = h1 * scale_eh
    moe = jnp.dot(h1.astype(jnp.bfloat16), w2f[...],
                  preferred_element_type=jnp.float32)                               # (M, D)
    moe = moe + jnp.dot(router_w, b2m[...], preferred_element_type=jnp.float32)     # + sum_e r_e*b2_e
    # TODO(synk): expert dropout omitted (eval-mode identity)

    # skip decision: skipped tokens pass x through unchanged
    out = jnp.where(skip_prob > SKIP_PROB_THRESHOLD, x, x + moe)
    out_ref[...] = out.reshape(Bb, T, D).astype(out_ref.dtype)


# -----------------------------------------------------------------------------
# Wrapper
# -----------------------------------------------------------------------------
def speculative_cross_layer_block(x, noise, params, *,
                                  target_tokens=256, max_tokens=1024):
    B, T, D = x.shape
    E = noise.shape[-1]
    assert D == N_EMBED and E == NUM_EXPERTS and T <= BLOCK_SIZE
    assert T % 8 == 0, "sequence length must be a multiple of 8 for flattening"

    # --- choose a batch block so that M = B_blk*T fills the MXU (>=256 ideal) ---
    bb = 1
    for cand in range(1, B + 1):
        if B % cand == 0 and cand * T <= max_tokens:
            bb = cand
            if cand * T >= target_tokens:
                break
    nb = B // bb

    f32, bf16 = jnp.float32, jnp.bfloat16
    H = EXPERT_HIDDEN

    # --- fold / fuse weights once at trace level (outside the kernel) ----------
    wqkv = jnp.concatenate([params['wq'], params['wk'], params['wv']], axis=1).astype(bf16)  # (D, 3D)
    wp = params['wp'].astype(bf16)                                                            # (D, D)
    bp = params['bp'].astype(f32)
    wrt = jnp.concatenate([params['wer'], params['wnl'], params['wsk']], axis=1).astype(bf16)  # (D, 2E+1)
    brt = jnp.concatenate([params['ber'], params['bnl'], params['bsk']], axis=1).astype(f32)   # (1, 2E+1)
    w1f = jnp.transpose(params['w1'], (1, 0, 2)).reshape(D, E * H).astype(bf16)   # (D, E*4D)
    b1f = params['b1'].reshape(1, E * H).astype(f32)                              # (1, E*4D)
    w2f = params['w2'].reshape(E * H, D).astype(bf16)                             # (E*4D, D)
    b2m = params['b2'].reshape(E, D).astype(f32)                                  # (E, D)
    expand = jnp.repeat(jnp.eye(E, dtype=f32), H, axis=1)                         # (E, E*4D) 0/1 selector

    ln1_g = params['ln1_g'].astype(f32); ln1_b = params['ln1_b'].astype(f32)
    ln2_g = params['ln2_g'].astype(f32); ln2_b = params['ln2_b'].astype(f32)

    weights = [ln1_g, ln1_b, wqkv, wp, bp, ln2_g, ln2_b, wrt, brt,
               w1f, b1f, w2f, b2m, expand]

    # Weights: full untiled blocks with a constant index_map -> the pipeline
    # re-uses the same VMEM block on every grid step (no re-fetch).
    def wspec(w):
        nd = w.ndim
        return pl.BlockSpec(w.shape, lambda b, nd=nd: (0,) * nd)

    in_specs = ([pl.BlockSpec((bb, T, D), lambda b: (b, 0, 0)),
                 pl.BlockSpec((bb, T, E), lambda b: (b, 0, 0))]
                + [wspec(w) for w in weights])

    return pl.pallas_call(
        _block_kernel,
        out_shape=jax.ShapeDtypeStruct((B, T, D), x.dtype),
        grid=(nb,),
        in_specs=in_specs,
        out_specs=pl.BlockSpec((bb, T, D), lambda b: (b, 0, 0)),
        compiler_params=pltpu.CompilerParams(
            dimension_semantics=("parallel",),
            # ~2.3 MiB of bf16 weights (double-buffered) + activations/intermediates
            # for M<=1024 fit comfortably; stays well under the 64 MiB v7x VMEM.
            vmem_limit_bytes=32 * 1024 * 1024),
    )(x, noise, *weights)


# -----------------------------------------------------------------------------
# Deterministic parameter init (shapes from the PyTorch module __init__)
# -----------------------------------------------------------------------------
def init_params(key):
    D, E, H = N_EMBED, NUM_EXPERTS, EXPERT_HIDDEN
    ks = jax.random.split(key, 16)

    def lin(k, fan_in, shape):
        bound = 1.0 / np.sqrt(fan_in)
        return jax.random.uniform(k, shape, jnp.float32, -bound, bound)

    params = {
        'ln1_g': jnp.ones((1, D), jnp.float32),
        'ln1_b': jnp.zeros((1, D), jnp.float32),
        # concatenated per-head q/k/v weights (no bias), stored (in, out)
        'wq': lin(ks[0], D, (D, D)),
        'wk': lin(ks[1], D, (D, D)),
        'wv': lin(ks[2], D, (D, D)),
        'wp': lin(ks[3], D, (D, D)),
        'bp': lin(ks[4], D, (1, D)),
        'ln2_g': jnp.ones((1, D), jnp.float32),
        'ln2_b': jnp.zeros((1, D), jnp.float32),
        # CrossLayerRouter
        'wer': lin(ks[5], D, (D, E)),
        'ber': lin(ks[6], D, (1, E)),
        'wnl': lin(ks[7], D, (D, E)),
        'bnl': lin(ks[8], D, (1, E)),
        'wsk': lin(ks[9], D, (D, 1)),
        'bsk': lin(ks[10], D, (1, 1)),
        # 8 Experts: Linear(D, 4D) -> ReLU -> Linear(4D, D)
        'w1': lin(ks[11], D, (E, D, H)),
        'b1': lin(ks[12], D, (E, 1, H)),
        'w2': lin(ks[13], H, (E, H, D)),
        'b2': lin(ks[14], H, (E, 1, D)),
    }
    return params


if __name__ == "__main__":
    key = jax.random.PRNGKey(0)
    k_par, k_x, k_noise = jax.random.split(key, 3)

    B, T = 2, 8
    params = init_params(k_par)
    x = jax.random.normal(k_x, (B, T, N_EMBED), jnp.float32)
    # deterministic replacement for torch.randn_like inside the noisy router
    noise = jax.random.normal(k_noise, (B, T, NUM_EXPERTS), jnp.float32)

    out = speculative_cross_layer_block(x, noise, params)
    out = jax.block_until_ready(out)
    assert out.shape == (B, T, N_EMBED) and jnp.all(jnp.isfinite(out))
    print("KERNEL_OK")
</pallas_src>

<mosaic_0001>
module attributes {stable_mosaic.version = 11 : i64} {
  func.func @_block_kernel(%arg0: i32, %arg1: memref<2x8x128xf32, #tpu.memory_space<vmem>>, %arg2: memref<2x8x8xf32, #tpu.memory_space<vmem>>, %arg3: memref<1x128xf32, #tpu.memory_space<vmem>>, %arg4: memref<1x128xf32, #tpu.memory_space<vmem>>, %arg5: memref<128x384xbf16, #tpu.memory_space<vmem>>, %arg6: memref<128x128xbf16, #tpu.memory_space<vmem>>, %arg7: memref<1x128xf32, #tpu.memory_space<vmem>>, %arg8: memref<1x128xf32, #tpu.memory_space<vmem>>, %arg9: memref<1x128xf32, #tpu.memory_space<vmem>>, %arg10: memref<128x17xbf16, #tpu.memory_space<vmem>>, %arg11: memref<1x17xf32, #tpu.memory_space<vmem>>, %arg12: memref<128x4096xbf16, #tpu.memory_space<vmem>>, %arg13: memref<1x4096xf32, #tpu.memory_space<vmem>>, %arg14: memref<4096x128xbf16, #tpu.memory_space<vmem>>, %arg15: memref<8x128xf32, #tpu.memory_space<vmem>>, %arg16: memref<8x4096xf32, #tpu.memory_space<vmem>>, %arg17: memref<2x8x128xf32, #tpu.memory_space<vmem>>) attributes {dimension_semantics = [#tpu.dimension_semantics<parallel>], iteration_bounds = array<i64: 1>, scalar_prefetch = 0 : i64, scratch_operands = 0 : i64, tpu.core_type = #tpu.core_type<tc>, window_params = [{transform_indices = @transform_0, window_bounds = array<i64: 2, 8, 128>}, {transform_indices = @transform_1, window_bounds = array<i64: 2, 8, 8>}, {pipeline_mode = #tpu.pipeline_mode<synchronous>, transform_indices = @transform_2, window_bounds = array<i64: 1, 128>}, {pipeline_mode = #tpu.pipeline_mode<synchronous>, transform_indices = @transform_3, window_bounds = array<i64: 1, 128>}, {pipeline_mode = #tpu.pipeline_mode<synchronous>, transform_indices = @transform_4, window_bounds = array<i64: 128, 384>}, {pipeline_mode = #tpu.pipeline_mode<synchronous>, transform_indices = @transform_5, window_bounds = array<i64: 128, 128>}, {pipeline_mode = #tpu.pipeline_mode<synchronous>, transform_indices = @transform_6, window_bounds = array<i64: 1, 128>}, {pipeline_mode = #tpu.pipeline_mode<synchronous>, transform_indices = @transform_7, window_bounds = array<i64: 1, 128>}, {pipeline_mode = #tpu.pipeline_mode<synchronous>, transform_indices = @transform_8, window_bounds = array<i64: 1, 128>}, {pipeline_mode = #tpu.pipeline_mode<synchronous>, transform_indices = @transform_9, window_bounds = array<i64: 128, 17>}, {pipeline_mode = #tpu.pipeline_mode<synchronous>, transform_indices = @transform_10, window_bounds = array<i64: 1, 17>}, {pipeline_mode = #tpu.pipeline_mode<synchronous>, transform_indices = @transform_11, window_bounds = array<i64: 128, 4096>}, {pipeline_mode = #tpu.pipeline_mode<synchronous>, transform_indices = @transform_12, window_bounds = array<i64: 1, 4096>}, {pipeline_mode = #tpu.pipeline_mode<synchronous>, transform_indices = @transform_13, window_bounds = array<i64: 4096, 128>}, {pipeline_mode = #tpu.pipeline_mode<synchronous>, transform_indices = @transform_14, window_bounds = array<i64: 8, 128>}, {pipeline_mode = #tpu.pipeline_mode<synchronous>, transform_indices = @transform_15, window_bounds = array<i64: 8, 4096>}, {transform_indices = @transform_16, window_bounds = array<i64: 2, 8, 128>}]} {
    %c0 = arith.constant 0 : index
    %c0_0 = arith.constant 0 : index
    %c0_1 = arith.constant 0 : index
    %0 = vector.load %arg1[%c0, %c0_0, %c0_1] : memref<2x8x128xf32, #tpu.memory_space<vmem>>, vector<2x8x128xf32>
    %1 = vector.shape_cast %0 : vector<2x8x128xf32> to vector<16x128xf32>
    %c0_2 = arith.constant 0 : index
    %c0_3 = arith.constant 0 : index
    %c0_4 = arith.constant 0 : index
    %2 = vector.load %arg2[%c0_2, %c0_3, %c0_4] : memref<2x8x8xf32, #tpu.memory_space<vmem>>, vector<2x8x8xf32>
    %3 = vector.shape_cast %2 : vector<2x8x8xf32> to vector<16x8xf32>
    %cst = arith.constant dense<0.000000e+00> : vector<16xf32>
    %4 = vector.multi_reduction <add>, %1, %cst [1] : vector<16x128xf32> to vector<16xf32>
    %5 = vector.shape_cast %4 : vector<16xf32> to vector<16x1xf32>
    %cst_5 = arith.constant 1.280000e+02 : f32
    %6 = vector.broadcast %cst_5 : f32 to vector<16x1xf32>
    %7 = arith.divf %5, %6 : vector<16x1xf32>
    %8 = vector.broadcast %7 : vector<16x1xf32> to vector<16x128xf32>
    %9 = arith.subf %1, %8 : vector<16x128xf32>
    %10 = arith.mulf %9, %9 : vector<16x128xf32>
    %cst_6 = arith.constant dense<0.000000e+00> : vector<16xf32>
    %11 = vector.multi_reduction <add>, %10, %cst_6 [1] : vector<16x128xf32> to vector<16xf32>
    %12 = vector.shape_cast %11 : vector<16xf32> to vector<16x1xf32>
    %cst_7 = arith.constant 1.280000e+02 : f32
    %13 = vector.broadcast %cst_7 : f32 to vector<16x1xf32>
    %14 = arith.divf %12, %13 : vector<16x1xf32>
    %15 = vector.broadcast %7 : vector<16x1xf32> to vector<16x128xf32>
    %16 = arith.subf %1, %15 : vector<16x128xf32>
    %cst_8 = arith.constant 9.99999974E-6 : f32
    %17 = vector.broadcast %cst_8 : f32 to vector<16x1xf32>
    %18 = arith.addf %14, %17 : vector<16x1xf32>
    %19 = math.rsqrt %18 : vector<16x1xf32>
    %20 = vector.broadcast %19 : vector<16x1xf32> to vector<16x128xf32>
    %21 = arith.mulf %16, %20 : vector<16x128xf32>
    %c0_9 = arith.constant 0 : index
    %c0_10 = arith.constant 0 : index
    %22 = vector.load %arg3[%c0_9, %c0_10] : memref<1x128xf32, #tpu.memory_space<vmem>>, vector<1x128xf32>
    %23 = vector.broadcast %22 : vector<1x128xf32> to vector<16x128xf32>
    %24 = arith.mulf %21, %23 : vector<16x128xf32>
    %c0_11 = arith.constant 0 : index
    %c0_12 = arith.constant 0 : index
    %25 = vector.load %arg4[%c0_11, %c0_12] : memref<1x128xf32, #tpu.memory_space<vmem>>, vector<1x128xf32>
    %26 = vector.broadcast %25 : vector<1x128xf32> to vector<16x128xf32>
    %27 = arith.addf %24, %26 : vector<16x128xf32>
    %28 = arith.truncf %27 : vector<16x128xf32> to vector<16x128xbf16>
    %c0_13 = arith.constant 0 : index
    %c0_14 = arith.constant 0 : index
    %29 = vector.load %arg5[%c0_13, %c0_14] : memref<128x384xbf16, #tpu.memory_space<vmem>>, vector<128x384xbf16>
    %cst_15 = arith.constant dense<0.000000e+00> : vector<16x384xf32>
    %30 = tpu.matmul %28, %29, %cst_15 {dimension_numbers = #tpu.dot_dimension_numbers<[1], [0], [0], [1], [0, 0, 1, 1], [], []>} : vector<16x128xbf16>, vector<128x384xbf16>, vector<16x384xf32> -> vector<16x384xf32>
    %31 = vector.extract_strided_slice %30 {offsets = [0, 0], sizes = [16, 128], strides = [1, 1]} : vector<16x384xf32> to vector<16x128xf32>
    %32 = vector.shape_cast %31 : vector<16x128xf32> to vector<2x8x128xf32>
    %33 = vector.extract_strided_slice %30 {offsets = [0, 128], sizes = [16, 128], strides = [1, 1]} : vector<16x384xf32> to vector<16x128xf32>
    %34 = vector.shape_cast %33 : vector<16x128xf32> to vector<2x8x128xf32>
    %35 = vector.extract_strided_slice %30 {offsets = [0, 256], sizes = [16, 128], strides = [1, 1]} : vector<16x384xf32> to vector<16x128xf32>
    %36 = vector.shape_cast %35 : vector<16x128xf32> to vector<2x8x128xf32>
    %cst_16 = arith.constant 1.280000e+02 : f32
    %cst_17 = arith.constant -5.000000e-01 : f32
    %37 = math.powf %cst_16, %cst_17 : f32
    %38 = tpu.iota {dimensions = array<i32: 0>} : vector<8x8xi32>
    %39 = tpu.iota {dimensions = array<i32: 1>} : vector<8x8xi32>
    %40 = arith.cmpi sge, %38, %39 : vector<8x8xi32>
    %41 = vector.shape_cast %40 : vector<8x8xi1> to vector<1x8x8xi1>
    %42 = vector.extract_strided_slice %32 {offsets = [0, 0, 0], sizes = [2, 8, 32], strides = [1, 1, 1]} : vector<2x8x128xf32> to vector<2x8x32xf32>
    %43 = arith.truncf %42 : vector<2x8x32xf32> to vector<2x8x32xbf16>
    %44 = vector.extract_strided_slice %34 {offsets = [0, 0, 0], sizes = [2, 8, 32], strides = [1, 1, 1]} : vector<2x8x128xf32> to vector<2x8x32xf32>
    %45 = arith.truncf %44 : vector<2x8x32xf32> to vector<2x8x32xbf16>
    %46 = vector.extract_strided_slice %36 {offsets = [0, 0, 0], sizes = [2, 8, 32], strides = [1, 1, 1]} : vector<2x8x128xf32> to vector<2x8x32xf32>
    %47 = arith.truncf %46 : vector<2x8x32xf32> to vector<2x8x32xbf16>
    "tpu.trace_start"() <{level = 10 : i32, message = "bqd,bkd->bqk"}> : () -> ()
    %cst_18 = arith.constant dense<0.000000e+00> : vector<2x8x8xf32>
    %48 = tpu.matmul %43, %45, %cst_18 {dimension_numbers = #tpu.dot_dimension_numbers<[2], [2], [1], [1], [0, 0, 0, 1, 1, 1], [0], [0]>} : vector<2x8x32xbf16>, vector<2x8x32xbf16>, vector<2x8x8xf32> -> vector<2x8x8xf32>
    "tpu.trace_stop"() : () -> ()
    %49 = vector.broadcast %37 : f32 to vector<2x8x8xf32>
    %50 = arith.mulf %48, %49 : vector<2x8x8xf32>
    %cst_19 = arith.constant 0xFF800000 : f32
    %51 = vector.shape_cast %41 : vector<1x8x8xi1> to vector<1x8x8xi1>
    %52 = vector.broadcast %51 : vector<1x8x8xi1> to vector<2x8x8xi1>
    %53 = vector.broadcast %cst_19 : f32 to vector<2x8x8xf32>
    %54 = arith.select %52, %50, %53 : vector<2x8x8xi1>, vector<2x8x8xf32>
    %cst_20 = arith.constant dense<0xFF800000> : vector<2x8xf32>
    %55 = vector.multi_reduction <maximumf>, %54, %cst_20 [2] : vector<2x8x8xf32> to vector<2x8xf32>
    %56 = vector.shape_cast %55 : vector<2x8xf32> to vector<2x8x1xf32>
    %57 = vector.broadcast %56 : vector<2x8x1xf32> to vector<2x8x8xf32>
    %58 = arith.subf %54, %57 : vector<2x8x8xf32>
    %59 = math.exp %58 : vector<2x8x8xf32>
    %cst_21 = arith.constant dense<0.000000e+00> : vector<2x8xf32>
    %60 = vector.multi_reduction <add>, %59, %cst_21 [2] : vector<2x8x8xf32> to vector<2x8xf32>
    %61 = vector.shape_cast %60 : vector<2x8xf32> to vector<2x8x1xf32>
    %62 = vector.broadcast %61 : vector<2x8x1xf32> to vector<2x8x8xf32>
    %63 = arith.divf %59, %62 : vector<2x8x8xf32>
    %64 = arith.truncf %63 : vector<2x8x8xf32> to vector<2x8x8xbf16>
    "tpu.trace_start"() <{level = 10 : i32, message = "bqk,bkd->bqd"}> : () -> ()
    %cst_22 = arith.constant dense<0.000000e+00> : vector<2x8x32xf32>
    %65 = tpu.matmul %64, %47, %cst_22 {dimension_numbers = #tpu.dot_dimension_numbers<[2], [1], [1], [2], [0, 0, 0, 1, 1, 2], [0], [0]>} : vector<2x8x8xbf16>, vector<2x8x32xbf16>, vector<2x8x32xf32> -> vector<2x8x32xf32>
    "tpu.trace_stop"() : () -> ()
    %66 = vector.extract_strided_slice %32 {offsets = [0, 0, 32], sizes = [2, 8, 32], strides = [1, 1, 1]} : vector<2x8x128xf32> to vector<2x8x32xf32>
    %67 = arith.truncf %66 : vector<2x8x32xf32> to vector<2x8x32xbf16>
    %68 = vector.extract_strided_slice %34 {offsets = [0, 0, 32], sizes = [2, 8, 32], strides = [1, 1, 1]} : vector<2x8x128xf32> to vector<2x8x32xf32>
    %69 = arith.truncf %68 : vector<2x8x32xf32> to vector<2x8x32xbf16>
    %70 = vector.extract_strided_slice %36 {offsets = [0, 0, 32], sizes = [2, 8, 32], strides = [1, 1, 1]} : vector<2x8x128xf32> to vector<2x8x32xf32>
    %71 = arith.truncf %70 : vector<2x8x32xf32> to vector<2x8x32xbf16>
    "tpu.trace_start"() <{level = 10 : i32, message = "bqd,bkd->bqk"}> : () -> ()
    %cst_23 = arith.constant dense<0.000000e+00> : vector<2x8x8xf32>
    %72 = tpu.matmul %67, %69, %cst_23 {dimension_numbers = #tpu.dot_dimension_numbers<[2], [2], [1], [1], [0, 0, 0, 1, 1, 1], [0], [0]>} : vector<2x8x32xbf16>, vector<2x8x32xbf16>, vector<2x8x8xf32> -> vector<2x8x8xf32>
    "tpu.trace_stop"() : () -> ()
    %73 = vector.broadcast %37 : f32 to vector<2x8x8xf32>
    %74 = arith.mulf %72, %73 : vector<2x8x8xf32>
    %cst_24 = arith.constant 0xFF800000 : f32
    %75 = vector.shape_cast %41 : vector<1x8x8xi1> to vector<1x8x8xi1>
    %76 = vector.broadcast %75 : vector<1x8x8xi1> to vector<2x8x8xi1>
    %77 = vector.broadcast %cst_24 : f32 to vector<2x8x8xf32>
    %78 = arith.select %76, %74, %77 : vector<2x8x8xi1>, vector<2x8x8xf32>
    %cst_25 = arith.constant dense<0xFF800000> : vector<2x8xf32>
    %79 = vector.multi_reduction <maximumf>, %78, %cst_25 [2] : vector<2x8x8xf32> to vector<2x8xf32>
    %80 = vector.shape_cast %79 : vector<2x8xf32> to vector<2x8x1xf32>
    %81 = vector.broadcast %80 : vector<2x8x1xf32> to vector<2x8x8xf32>
    %82 = arith.subf %78, %81 : vector<2x8x8xf32>
    %83 = math.exp %82 : vector<2x8x8xf32>
    %cst_26 = arith.constant dense<0.000000e+00> : vector<2x8xf32>
    %84 = vector.multi_reduction <add>, %83, %cst_26 [2] : vector<2x8x8xf32> to vector<2x8xf32>
    %85 = vector.shape_cast %84 : vector<2x8xf32> to vector<2x8x1xf32>
    %86 = vector.broadcast %85 : vector<2x8x1xf32> to vector<2x8x8xf32>
    %87 = arith.divf %83, %86 : vector<2x8x8xf32>
    %88 = arith.truncf %87 : vector<2x8x8xf32> to vector<2x8x8xbf16>
    "tpu.trace_start"() <{level = 10 : i32, message = "bqk,bkd->bqd"}> : () -> ()
    %cst_27 = arith.constant dense<0.000000e+00> : vector<2x8x32xf32>
    %89 = tpu.matmul %88, %71, %cst_27 {dimension_numbers = #tpu.dot_dimension_numbers<[2], [1], [1], [2], [0, 0, 0, 1, 1, 2], [0], [0]>} : vector<2x8x8xbf16>, vector<2x8x32xbf16>, vector<2x8x32xf32> -> vector<2x8x32xf32>
    "tpu.trace_stop"() : () -> ()
    %90 = vector.extract_strided_slice %32 {offsets = [0, 0, 64], sizes = [2, 8, 32], strides = [1, 1, 1]} : vector<2x8x128xf32> to vector<2x8x32xf32>
    %91 = arith.truncf %90 : vector<2x8x32xf32> to vector<2x8x32xbf16>
    %92 = vector.extract_strided_slice %34 {offsets = [0, 0, 64], sizes = [2, 8, 32], strides = [1, 1, 1]} : vector<2x8x128xf32> to vector<2x8x32xf32>
    %93 = arith.truncf %92 : vector<2x8x32xf32> to vector<2x8x32xbf16>
    %94 = vector.extract_strided_slice %36 {offsets = [0, 0, 64], sizes = [2, 8, 32], strides = [1, 1, 1]} : vector<2x8x128xf32> to vector<2x8x32xf32>
    %95 = arith.truncf %94 : vector<2x8x32xf32> to vector<2x8x32xbf16>
    "tpu.trace_start"() <{level = 10 : i32, message = "bqd,bkd->bqk"}> : () -> ()
    %cst_28 = arith.constant dense<0.000000e+00> : vector<2x8x8xf32>
    %96 = tpu.matmul %91, %93, %cst_28 {dimension_numbers = #tpu.dot_dimension_numbers<[2], [2], [1], [1], [0, 0, 0, 1, 1, 1], [0], [0]>} : vector<2x8x32xbf16>, vector<2x8x32xbf16>, vector<2x8x8xf32> -> vector<2x8x8xf32>
    "tpu.trace_stop"() : () -> ()
    %97 = vector.broadcast %37 : f32 to vector<2x8x8xf32>
    %98 = arith.mulf %96, %97 : vector<2x8x8xf32>
    %cst_29 = arith.constant 0xFF800000 : f32
    %99 = vector.shape_cast %41 : vector<1x8x8xi1> to vector<1x8x8xi1>
    %100 = vector.broadcast %99 : vector<1x8x8xi1> to vector<2x8x8xi1>
    %101 = vector.broadcast %cst_29 : f32 to vector<2x8x8xf32>
    %102 = arith.select %100, %98, %101 : vector<2x8x8xi1>, vector<2x8x8xf32>
    %cst_30 = arith.constant dense<0xFF800000> : vector<2x8xf32>
    %103 = vector.multi_reduction <maximumf>, %102, %cst_30 [2] : vector<2x8x8xf32> to vector<2x8xf32>
    %104 = vector.shape_cast %103 : vector<2x8xf32> to vector<2x8x1xf32>
    %105 = vector.broadcast %104 : vector<2x8x1xf32> to vector<2x8x8xf32>
    %106 = arith.subf %102, %105 : vector<2x8x8xf32>
    %107 = math.exp %106 : vector<2x8x8xf32>
    %cst_31 = arith.constant dense<0.000000e+00> : vector<2x8xf32>
    %108 = vector.multi_reduction <add>, %107, %cst_31 [2] : vector<2x8x8xf32> to vector<2x8xf32>
    %109 = vector.shape_cast %108 : vector<2x8xf32> to vector<2x8x1xf32>
    %110 = vector.broadcast %109 : vector<2x8x1xf32> to vector<2x8x8xf32>
    %111 = arith.divf %107, %110 : vector<2x8x8xf32>
    %112 = arith.truncf %111 : vector<2x8x8xf32> to vector<2x8x8xbf16>
    "tpu.trace_start"() <{level = 10 : i32, message = "bqk,bkd->bqd"}> : () -> ()
    %cst_32 = arith.constant dense<0.000000e+00> : vector<2x8x32xf32>
    %113 = tpu.matmul %112, %95, %cst_32 {dimension_numbers = #tpu.dot_dimension_numbers<[2], [1], [1], [2], [0, 0, 0, 1, 1, 2], [0], [0]>} : vector<2x8x8xbf16>, vector<2x8x32xbf16>, vector<2x8x32xf32> -> vector<2x8x32xf32>
    "tpu.trace_stop"() : () -> ()
    %114 = vector.extract_strided_slice %32 {offsets = [0, 0, 96], sizes = [2, 8, 32], strides = [1, 1, 1]} : vector<2x8x128xf32> to vector<2x8x32xf32>
    %115 = arith.truncf %114 : vector<2x8x32xf32> to vector<2x8x32xbf16>
    %116 = vector.extract_strided_slice %34 {offsets = [0, 0, 96], sizes = [2, 8, 32], strides = [1, 1, 1]} : vector<2x8x128xf32> to vector<2x8x32xf32>
    %117 = arith.truncf %116 : vector<2x8x32xf32> to vector<2x8x32xbf16>
    %118 = vector.extract_strided_slice %36 {offsets = [0, 0, 96], sizes = [2, 8, 32], strides = [1, 1, 1]} : vector<2x8x128xf32> to vector<2x8x32xf32>
    %119 = arith.truncf %118 : vector<2x8x32xf32> to vector<2x8x32xbf16>
    "tpu.trace_start"() <{level = 10 : i32, message = "bqd,bkd->bqk"}> : () -> ()
    %cst_33 = arith.constant dense<0.000000e+00> : vector<2x8x8xf32>
    %120 = tpu.matmul %115, %117, %cst_33 {dimension_numbers = #tpu.dot_dimension_numbers<[2], [2], [1], [1], [0, 0, 0, 1, 1, 1], [0], [0]>} : vector<2x8x32xbf16>, vector<2x8x32xbf16>, vector<2x8x8xf32> -> vector<2x8x8xf32>
    "tpu.trace_stop"() : () -> ()
    %121 = vector.broadcast %37 : f32 to vector<2x8x8xf32>
    %122 = arith.mulf %120, %121 : vector<2x8x8xf32>
    %cst_34 = arith.constant 0xFF800000 : f32
    %123 = vector.shape_cast %41 : vector<1x8x8xi1> to vector<1x8x8xi1>
    %124 = vector.broadcast %123 : vector<1x8x8xi1> to vector<2x8x8xi1>
    %125 = vector.broadcast %cst_34 : f32 to vector<2x8x8xf32>
    %126 = arith.select %124, %122, %125 : vector<2x8x8xi1>, vector<2x8x8xf32>
    %cst_35 = arith.constant dense<0xFF800000> : vector<2x8xf32>
    %127 = vector.multi_reduction <maximumf>, %126, %cst_35 [2] : vector<2x8x8xf32> to vector<2x8xf32>
    %128 = vector.shape_cast %127 : vector<2x8xf32> to vector<2x8x1xf32>
    %129 = vector.broadcast %128 : vector<2x8x1xf32> to vector<2x8x8xf32>
    %130 = arith.subf %126, %129 : vector<2x8x8xf32>
    %131 = math.exp %130 : vector<2x8x8xf32>
    %cst_36 = arith.constant dense<0.000000e+00> : vector<2x8xf32>
    %132 = vector.multi_reduction <add>, %131, %cst_36 [2] : vector<2x8x8xf32> to vector<2x8xf32>
    %133 = vector.shape_cast %132 : vector<2x8xf32> to vector<2x8x1xf32>
    %134 = vector.broadcast %133 : vector<2x8x1xf32> to vector<2x8x8xf32>
    %135 = arith.divf %131, %134 : vector<2x8x8xf32>
    %136 = arith.truncf %135 : vector<2x8x8xf32> to vector<2x8x8xbf16>
    "tpu.trace_start"() <{level = 10 : i32, message = "bqk,bkd->bqd"}> : () -> ()
    %cst_37 = arith.constant dense<0.000000e+00> : vector<2x8x32xf32>
    %137 = tpu.matmul %136, %119, %cst_37 {dimension_numbers = #tpu.dot_dimension_numbers<[2], [1], [1], [2], [0, 0, 0, 1, 1, 2], [0], [0]>} : vector<2x8x8xbf16>, vector<2x8x32xbf16>, vector<2x8x32xf32> -> vector<2x8x32xf32>
    "tpu.trace_stop"() : () -> ()
    %138 = tpu.concatenate %65, %89, %113, %137 in 2 : vector<2x8x32xf32>, vector<2x8x32xf32>, vector<2x8x32xf32>, vector<2x8x32xf32> -> vector<2x8x128xf32>
    %139 = vector.shape_cast %138 : vector<2x8x128xf32> to vector<16x128xf32>
    %140 = arith.truncf %139 : vector<16x128xf32> to vector<16x128xbf16>
    %c0_38 = arith.constant 0 : index
    %c0_39 = arith.constant 0 : index
    %141 = vector.load %arg6[%c0_38, %c0_39] : memref<128x128xbf16, #tpu.memory_space<vmem>>, vector<128x128xbf16>
    %cst_40 = arith.constant dense<0.000000e+00> : vector<16x128xf32>
    %142 = tpu.matmul %140, %141, %cst_40 {dimension_numbers = #tpu.dot_dimension_numbers<[1], [0], [0], [1], [0, 0, 1, 1], [], []>} : vector<16x128xbf16>, vector<128x128xbf16>, vector<16x128xf32> -> vector<16x128xf32>
    %c0_41 = arith.constant 0 : index
    %c0_42 = arith.constant 0 : index
    %143 = vector.load %arg7[%c0_41, %c0_42] : memref<1x128xf32, #tpu.memory_space<vmem>>, vector<1x128xf32>
    %144 = vector.broadcast %143 : vector<1x128xf32> to vector<16x128xf32>
    %145 = arith.addf %142, %144 : vector<16x128xf32>
    %146 = arith.addf %1, %145 : vector<16x128xf32>
    %cst_43 = arith.constant dense<0.000000e+00> : vector<16xf32>
    %147 = vector.multi_reduction <add>, %146, %cst_43 [1] : vector<16x128xf32> to vector<16xf32>
    %148 = vector.shape_cast %147 : vector<16xf32> to vector<16x1xf32>
    %cst_44 = arith.constant 1.280000e+02 : f32
    %149 = vector.broadcast %cst_44 : f32 to vector<16x1xf32>
    %150 = arith.divf %148, %149 : vector<16x1xf32>
    %151 = vector.broadcast %150 : vector<16x1xf32> to vector<16x128xf32>
    %152 = arith.subf %146, %151 : vector<16x128xf32>
    %153 = arith.mulf %152, %152 : vector<16x128xf32>
    %cst_45 = arith.constant dense<0.000000e+00> : vector<16xf32>
    %154 = vector.multi_reduction <add>, %153, %cst_45 [1] : vector<16x128xf32> to vector<16xf32>
    %155 = vector.shape_cast %154 : vector<16xf32> to vector<16x1xf32>
    %cst_46 = arith.constant 1.280000e+02 : f32
    %156 = vector.broadcast %cst_46 : f32 to vector<16x1xf32>
    %157 = arith.divf %155, %156 : vector<16x1xf32>
    %158 = vector.broadcast %150 : vector<16x1xf32> to vector<16x128xf32>
    %159 = arith.subf %146, %158 : vector<16x128xf32>
    %cst_47 = arith.constant 9.99999974E-6 : f32
    %160 = vector.broadcast %cst_47 : f32 to vector<16x1xf32>
    %161 = arith.addf %157, %160 : vector<16x1xf32>
    %162 = math.rsqrt %161 : vector<16x1xf32>
    %163 = vector.broadcast %162 : vector<16x1xf32> to vector<16x128xf32>
    %164 = arith.mulf %159, %163 : vector<16x128xf32>
    %c0_48 = arith.constant 0 : index
    %c0_49 = arith.constant 0 : index
    %165 = vector.load %arg8[%c0_48, %c0_49] : memref<1x128xf32, #tpu.memory_space<vmem>>, vector<1x128xf32>
    %166 = vector.broadcast %165 : vector<1x128xf32> to vector<16x128xf32>
    %167 = arith.mulf %164, %166 : vector<16x128xf32>
    %c0_50 = arith.constant 0 : index
    %c0_51 = arith.constant 0 : index
    %168 = vector.load %arg9[%c0_50, %c0_51] : memref<1x128xf32, #tpu.memory_space<vmem>>, vector<1x128xf32>
    %169 = vector.broadcast %168 : vector<1x128xf32> to vector<16x128xf32>
    %170 = arith.addf %167, %169 : vector<16x128xf32>
    %171 = arith.truncf %170 : vector<16x128xf32> to vector<16x128xbf16>
    %c0_52 = arith.constant 0 : index
    %c0_53 = arith.constant 0 : index
    %172 = vector.load %arg10[%c0_52, %c0_53] : memref<128x17xbf16, #tpu.memory_space<vmem>>, vector<128x17xbf16>
    %cst_54 = arith.constant dense<0.000000e+00> : vector<16x17xf32>
    %173 = tpu.matmul %171, %172, %cst_54 {dimension_numbers = #tpu.dot_dimension_numbers<[1], [0], [0], [1], [0, 0, 1, 1], [], []>} : vector<16x128xbf16>, vector<128x17xbf16>, vector<16x17xf32> -> vector<16x17xf32>
    %c0_55 = arith.constant 0 : index
    %c0_56 = arith.constant 0 : index
    %174 = vector.load %arg11[%c0_55, %c0_56] : memref<1x17xf32, #tpu.memory_space<vmem>>, vector<1x17xf32>
    %175 = vector.broadcast %174 : vector<1x17xf32> to vector<16x17xf32>
    %176 = arith.addf %173, %175 : vector<16x17xf32>
    %177 = vector.extract_strided_slice %176 {offsets = [0, 0], sizes = [16, 8], strides = [1, 1]} : vector<16x17xf32> to vector<16x8xf32>
    %178 = vector.extract_strided_slice %176 {offsets = [0, 8], sizes = [16, 8], strides = [1, 1]} : vector<16x17xf32> to vector<16x8xf32>
    %179 = vector.extract_strided_slice %176 {offsets = [0, 16], sizes = [16, 1], strides = [1, 1]} : vector<16x17xf32> to vector<16x1xf32>
    %cst_57 = arith.constant 0.000000e+00 : f32
    %180 = vector.broadcast %cst_57 : f32 to vector<16x8xf32>
    %181 = arith.maximumf %178, %180 : vector<16x8xf32>
    %182 = math.absf %178 : vector<16x8xf32>
    %cst_58 = arith.constant 0.000000e+00 : f32
    %183 = vector.broadcast %cst_58 : f32 to vector<16x8xf32>
    %184 = arith.subf %183, %182 : vector<16x8xf32>
    %185 = math.exp %184 : vector<16x8xf32>
    %186 = math.log1p %185 : vector<16x8xf32>
    %187 = arith.addf %181, %186 : vector<16x8xf32>
    %188 = arith.mulf %3, %187 : vector<16x8xf32>
    %189 = arith.addf %177, %188 : vector<16x8xf32>
    %190 = tpu.iota {dimensions = array<i32: 1>} : vector<16x8xi32>
    %cst_59 = arith.constant dense<0xFF800000> : vector<16xf32>
    %191 = vector.multi_reduction <maximumf>, %189, %cst_59 [1] : vector<16x8xf32> to vector<16xf32>
    %192 = vector.shape_cast %191 : vector<16xf32> to vector<16x1xf32>
    %193 = vector.broadcast %192 : vector<16x1xf32> to vector<16x8xf32>
    %194 = arith.cmpf oeq, %189, %193 : vector<16x8xf32>
    %c8_i32 = arith.constant 8 : i32
    %195 = vector.broadcast %c8_i32 : i32 to vector<16x8xi32>
    %196 = arith.select %194, %190, %195 : vector<16x8xi1>, vector<16x8xi32>
    %cst_60 = arith.constant dense<2147483647> : vector<16xi32>
    %197 = vector.multi_reduction <minsi>, %196, %cst_60 [1] : vector<16x8xi32> to vector<16xi32>
    %198 = vector.shape_cast %197 : vector<16xi32> to vector<16x1xi32>
    %199 = vector.broadcast %198 : vector<16x1xi32> to vector<16x8xi32>
    %200 = arith.cmpi eq, %190, %199 : vector<16x8xi32>
    %cst_61 = arith.constant 0xFF800000 : f32
    %201 = vector.broadcast %cst_61 : f32 to vector<16x8xf32>
    %202 = arith.select %200, %201, %189 : vector<16x8xi1>, vector<16x8xf32>
    %cst_62 = arith.constant dense<0xFF800000> : vector<16xf32>
    %203 = vector.multi_reduction <maximumf>, %202, %cst_62 [1] : vector<16x8xf32> to vector<16xf32>
    %204 = vector.shape_cast %203 : vector<16xf32> to vector<16x1xf32>
    %205 = vector.broadcast %204 : vector<16x1xf32> to vector<16x8xf32>
    %206 = arith.cmpf oeq, %202, %205 : vector<16x8xf32>
    %c8_i32_63 = arith.constant 8 : i32
    %207 = vector.broadcast %c8_i32_63 : i32 to vector<16x8xi32>
    %208 = arith.select %206, %190, %207 : vector<16x8xi1>, vector<16x8xi32>
    %cst_64 = arith.constant dense<2147483647> : vector<16xi32>
    %209 = vector.multi_reduction <minsi>, %208, %cst_64 [1] : vector<16x8xi32> to vector<16xi32>
    %210 = vector.shape_cast %209 : vector<16xi32> to vector<16x1xi32>
    %211 = vector.broadcast %198 : vector<16x1xi32> to vector<16x8xi32>
    %212 = arith.cmpi eq, %190, %211 : vector<16x8xi32>
    %213 = vector.broadcast %210 : vector<16x1xi32> to vector<16x8xi32>
    %214 = arith.cmpi eq, %190, %213 : vector<16x8xi32>
    %215 = arith.ori %212, %214 : vector<16x8xi1>
    %216 = vector.broadcast %192 : vector<16x1xf32> to vector<16x8xf32>
    %217 = arith.subf %189, %216 : vector<16x8xf32>
    %218 = math.exp %217 : vector<16x8xf32>
    %cst_65 = arith.constant 0.000000e+00 : f32
    %219 = vector.broadcast %cst_65 : f32 to vector<16x8xf32>
    %220 = arith.select %215, %218, %219 : vector<16x8xi1>, vector<16x8xf32>
    %cst_66 = arith.constant dense<0.000000e+00> : vector<16xf32>
    %221 = vector.multi_reduction <add>, %220, %cst_66 [1] : vector<16x8xf32> to vector<16xf32>
    %222 = vector.shape_cast %221 : vector<16xf32> to vector<16x1xf32>
    %223 = vector.broadcast %222 : vector<16x1xf32> to vector<16x8xf32>
    %224 = arith.divf %220, %223 : vector<16x8xf32>
    %225 = arith.negf %179 : vector<16x1xf32>
    %226 = math.exp %225 : vector<16x1xf32>
    %cst_67 = arith.constant 1.000000e+00 : f32
    %227 = vector.broadcast %cst_67 : f32 to vector<16x1xf32>
    %228 = arith.addf %227, %226 : vector<16x1xf32>
    %229 = arith.divf %227, %228 : vector<16x1xf32>
    %c0_68 = arith.constant 0 : index
    %c0_69 = arith.constant 0 : index
    %230 = vector.load %arg12[%c0_68, %c0_69] : memref<128x4096xbf16, #tpu.memory_space<vmem>>, vector<128x4096xbf16>
    %cst_70 = arith.constant dense<0.000000e+00> : vector<16x4096xf32>
    %231 = tpu.matmul %171, %230, %cst_70 {dimension_numbers = #tpu.dot_dimension_numbers<[1], [0], [0], [1], [0, 0, 1, 1], [], []>} : vector<16x128xbf16>, vector<128x4096xbf16>, vector<16x4096xf32> -> vector<16x4096xf32>
    %c0_71 = arith.constant 0 : index
    %c0_72 = arith.constant 0 : index
    %232 = vector.load %arg13[%c0_71, %c0_72] : memref<1x4096xf32, #tpu.memory_space<vmem>>, vector<1x4096xf32>
    %233 = vector.broadcast %232 : vector<1x4096xf32> to vector<16x4096xf32>
    %234 = arith.addf %231, %233 : vector<16x4096xf32>
    %cst_73 = arith.constant 0.000000e+00 : f32
    %235 = vector.broadcast %cst_73 : f32 to vector<16x4096xf32>
    %236 = arith.maximumf %234, %235 : vector<16x4096xf32>
    %c0_74 = arith.constant 0 : index
    %c0_75 = arith.constant 0 : index
    %237 = vector.load %arg16[%c0_74, %c0_75] : memref<8x4096xf32, #tpu.memory_space<vmem>>, vector<8x4096xf32>
    %cst_76 = arith.constant dense<0.000000e+00> : vector<16x4096xf32>
    %238 = tpu.matmul %224, %237, %cst_76 {dimension_numbers = #tpu.dot_dimension_numbers<[1], [0], [0], [1], [0, 0, 1, 1], [], []>} : vector<16x8xf32>, vector<8x4096xf32>, vector<16x4096xf32> -> vector<16x4096xf32>
    %239 = arith.mulf %236, %238 : vector<16x4096xf32>
    %240 = arith.truncf %239 : vector<16x4096xf32> to vector<16x4096xbf16>
    %c0_77 = arith.constant 0 : index
    %c0_78 = arith.constant 0 : index
    %241 = vector.load %arg14[%c0_77, %c0_78] : memref<4096x128xbf16, #tpu.memory_space<vmem>>, vector<4096x128xbf16>
    %cst_79 = arith.constant dense<0.000000e+00> : vector<16x128xf32>
    %242 = tpu.matmul %240, %241, %cst_79 {dimension_numbers = #tpu.dot_dimension_numbers<[1], [0], [0], [1], [0, 0, 1, 1], [], []>} : vector<16x4096xbf16>, vector<4096x128xbf16>, vector<16x128xf32> -> vector<16x128xf32>
    %c0_80 = arith.constant 0 : index
    %c0_81 = arith.constant 0 : index
    %243 = vector.load %arg15[%c0_80, %c0_81] : memref<8x128xf32, #tpu.memory_space<vmem>>, vector<8x128xf32>
    %cst_82 = arith.constant dense<0.000000e+00> : vector<16x128xf32>
    %244 = tpu.matmul %224, %243, %cst_82 {dimension_numbers = #tpu.dot_dimension_numbers<[1], [0], [0], [1], [0, 0, 1, 1], [], []>} : vector<16x8xf32>, vector<8x128xf32>, vector<16x128xf32> -> vector<16x128xf32>
    %245 = arith.addf %242, %244 : vector<16x128xf32>
    %cst_83 = arith.constant 5.000000e-01 : f32
    %246 = vector.broadcast %cst_83 : f32 to vector<16x1xf32>
    %247 = arith.cmpf ogt, %229, %246 : vector<16x1xf32>
    %248 = arith.addf %146, %245 : vector<16x128xf32>
    %249 = vector.shape_cast %247 : vector<16x1xi1> to vector<16x1xi1>
    %250 = vector.broadcast %249 : vector<16x1xi1> to vector<16x128xi1>
    %251 = arith.select %250, %146, %248 : vector<16x128xi1>, vector<16x128xf32>
    %252 = vector.shape_cast %251 : vector<16x128xf32> to vector<2x8x128xf32>
    %c0_84 = arith.constant 0 : index
    %c0_85 = arith.constant 0 : index
    %c0_86 = arith.constant 0 : index
    %253 = vector.load %arg17[%c0_84, %c0_85, %c0_86] : memref<2x8x128xf32, #tpu.memory_space<vmem>>, vector<2x8x128xf32>
    tpu.vector_store %arg17[%c0_84, %c0_85, %c0_86], %252 {strides = array<i32>} : memref<2x8x128xf32, #tpu.memory_space<vmem>>, vector<2x8x128xf32>,
    return
  }
  func.func @transform_0(%arg0: i32) -> (i32, i32, i32) {
    %c0_i32 = arith.constant 0 : i32
    %c0_i32_0 = arith.constant 0 : i32
    %c0_i32_1 = arith.constant 0 : i32
    return %arg0, %c0_i32, %c0_i32_0 : i32, i32, i32
  }
  func.func @transform_1(%arg0: i32) -> (i32, i32, i32) {
    %c0_i32 = arith.constant 0 : i32
    %c0_i32_0 = arith.constant 0 : i32
    %c0_i32_1 = arith.constant 0 : i32
    return %arg0, %c0_i32, %c0_i32_0 : i32, i32, i32
  }
  func.func @transform_2(%arg0: i32) -> (i32, i32) {
    %c0_i32 = arith.constant 0 : i32
    %c0_i32_0 = arith.constant 0 : i32
    %c0_i32_1 = arith.constant 0 : i32
    return %c0_i32, %c0_i32_0 : i32, i32
  }
  func.func @transform_3(%arg0: i32) -> (i32, i32) {
    %c0_i32 = arith.constant 0 : i32
    %c0_i32_0 = arith.constant 0 : i32
    %c0_i32_1 = arith.constant 0 : i32
    return %c0_i32, %c0_i32_0 : i32, i32
  }
  func.func @transform_4(%arg0: i32) -> (i32, i32) {
    %c0_i32 = arith.constant 0 : i32
    %c0_i32_0 = arith.constant 0 : i32
    %c0_i32_1 = arith.constant 0 : i32
    return %c0_i32, %c0_i32_0 : i32, i32
  }
  func.func @transform_5(%arg0: i32) -> (i32, i32) {
    %c0_i32 = arith.constant 0 : i32
    %c0_i32_0 = arith.constant 0 : i32
    %c0_i32_1 = arith.constant 0 : i32
    return %c0_i32, %c0_i32_0 : i32, i32
  }
  func.func @transform_6(%arg0: i32) -> (i32, i32) {
    %c0_i32 = arith.constant 0 : i32
    %c0_i32_0 = arith.constant 0 : i32
    %c0_i32_1 = arith.constant 0 : i32
    return %c0_i32, %c0_i32_0 : i32, i32
  }
  func.func @transform_7(%arg0: i32) -> (i32, i32) {
    %c0_i32 = arith.constant 0 : i32
    %c0_i32_0 = arith.constant 0 : i32
    %c0_i32_1 = arith.constant 0 : i32
    return %c0_i32, %c0_i32_0 : i32, i32
  }
  func.func @transform_8(%arg0: i32) -> (i32, i32) {
    %c0_i32 = arith.constant 0 : i32
    %c0_i32_0 = arith.constant 0 : i32
    %c0_i32_1 = arith.constant 0 : i32
    return %c0_i32, %c0_i32_0 : i32, i32
  }
  func.func @transform_9(%arg0: i32) -> (i32, i32) {
    %c0_i32 = arith.constant 0 : i32
    %c0_i32_0 = arith.constant 0 : i32
    %c0_i32_1 = arith.constant 0 : i32
    return %c0_i32, %c0_i32_0 : i32, i32
  }
  func.func @transform_10(%arg0: i32) -> (i32, i32) {
    %c0_i32 = arith.constant 0 : i32
    %c0_i32_0 = arith.constant 0 : i32
    %c0_i32_1 = arith.constant 0 : i32
    return %c0_i32, %c0_i32_0 : i32, i32
  }
  func.func @transform_11(%arg0: i32) -> (i32, i32) {
    %c0_i32 = arith.constant 0 : i32
    %c0_i32_0 = arith.constant 0 : i32
    %c0_i32_1 = arith.constant 0 : i32
    return %c0_i32, %c0_i32_0 : i32, i32
  }
  func.func @transform_12(%arg0: i32) -> (i32, i32) {
    %c0_i32 = arith.constant 0 : i32
    %c0_i32_0 = arith.constant 0 : i32
    %c0_i32_1 = arith.constant 0 : i32
    return %c0_i32, %c0_i32_0 : i32, i32
  }
  func.func @transform_13(%arg0: i32) -> (i32, i32) {
    %c0_i32 = arith.constant 0 : i32
    %c0_i32_0 = arith.constant 0 : i32
    %c0_i32_1 = arith.constant 0 : i32
    return %c0_i32, %c0_i32_0 : i32, i32
  }
  func.func @transform_14(%arg0: i32) -> (i32, i32) {
    %c0_i32 = arith.constant 0 : i32
    %c0_i32_0 = arith.constant 0 : i32
    %c0_i32_1 = arith.constant 0 : i32
    return %c0_i32, %c0_i32_0 : i32, i32
  }
  func.func @transform_15(%arg0: i32) -> (i32, i32) {
    %c0_i32 = arith.constant 0 : i32
    %c0_i32_0 = arith.constant 0 : i32
    %c0_i32_1 = arith.constant 0 : i32
    return %c0_i32, %c0_i32_0 : i32, i32
  }
  func.func @transform_16(%arg0: i32) -> (i32, i32, i32) {
    %c0_i32 = arith.constant 0 : i32
    %c0_i32_0 = arith.constant 0 : i32
    %c0_i32_1 = arith.constant 0 : i32
    return %arg0, %c0_i32, %c0_i32_0 : i32, i32, i32
  }
}

</mosaic_0001>

<bundles_post_ra>
// kernel: tpu_custom_call.1
= control target key start
LH: loop header
LB: loop body
LE: loop exit
PB: predicated region body
PF: predicated region fallthrough
CT: control target
= control target key end

     0   :  { %s11314_s0 = inlined_call_operand.vmem [shape: f32[2,8,128], index: 0, kind: input, shape index: {}]   ;;  %s11315_s1 = inlined_call_operand.hbm [shape: f32[2,8,8], index: 1, kind: input, shape index: {}]   ;;  %s11316_s2 = inlined_call_operand.hbm [shape: f32[1,128], index: 2, kind: input, shape index: {}]   ;;  %s11317_s3 = inlined_call_operand.hbm [shape: f32[1,128], index: 3, kind: input, shape index: {}]   ;;  %s11318_s4 = inlined_call_operand.hbm [shape: bf16[128,384], index: 4, kind: input, shape index: {}]   ;;  %s11319_s5 = inlined_call_operand.vmem [shape: bf16[128,128], index: 5, kind: input, shape index: {}]   ;;  %s11320_s6 = inlined_call_operand.hbm [shape: f32[1,128], index: 6, kind: input, shape index: {}]   ;;  %s11321_s7 = inlined_call_operand.hbm [shape: f32[1,128], index: 7, kind: input, shape index: {}]   ;;  %s11322_s8 = inlined_call_operand.hbm [shape: f32[1,128], index: 8, kind: input, shape index: {}]   ;;  %s11323_s9 = inlined_call_operand.vmem [shape: bf16[128,17], index: 9, kind: input, shape index: {}]   ;;  %s11324_s10 = inlined_call_operand.hbm [shape: f32[1,17], index: 10, kind: input, shape index: {}]   ;;  %s11325_s11 = inlined_call_operand.hbm [shape: bf16[128,4096], index: 11, kind: input, shape index: {}]   ;;  %s11326_s12 = inlined_call_operand.hbm [shape: f32[1,4096], index: 12, kind: input, shape index: {}]   ;;  %s11327_s13 = inlined_call_operand.hbm [shape: bf16[4096,128], index: 13, kind: input, shape index: {}]   ;;  %s11328_s14 = inlined_call_operand.vmem [shape: f32[8,128], index: 14, kind: input, shape index: {}]   ;;  %s11329_s15 = inlined_call_operand.hbm [shape: f32[8,4096], index: 15, kind: input, shape index: {}]   ;;  %s11330_s16 = inlined_call_operand.hbm [shape: f32[2,8,128], index: 16, kind: output, shape index: {}]  }
   0x1   :  { %11336 = sst [smem:[#allocation57_spill]] %s11314_s0 }
   0x2   :  { %21 = vsyncpa [#allocation3], 0 }
   0x3   :  { %22 = vsyncpa [#allocation6], 0 }
   0x4   :  { %23 = vsyncpa [#allocation9], 0 }
   0x5   :  { %24 = vsyncpa [#allocation12], 0 }
   0x6   :  { %25 = vsyncpa [#allocation15], 0 }
   0x7   :  { %26 = vsyncpa [#allocation18], 0 }
   0x8   :  { %27 = vsyncpa [#allocation21], 0  ;;  %s49_s23 = sshll.u32 %s11316_s2, 4  ;;  %s50_s23 = int_to_ptr.hbm [resolvable:$true] %s49_s23 }
   0x9   :  { %28 = vsyncpa [#allocation4], 0  ;;  %s10390_s24 = smov [#allocation5]   ;;  %s70_s28 = sshll.u32 %s11318_s4, 4  ;;  %s71_s28 = int_to_ptr.hbm [resolvable:$true] %s70_s28 }
   0xa   :  { %s51_s25 = sshll.u32 %s10390_s24, 4  ;;  %s10391_s29 = smov [#allocation8]   ;;  %s52_s25 = int_to_ptr.vmem [resolvable:$true] %s51_s25 }
   0xb   :  { %54 = dma.hbm_to_vmem [thread:$0]  %s50_s23, 16, %s52_s25, [#allocation6]  }
   0xc   :  { %s72_s30 = sshll.u32 %s10391_s29, 4  ;;  %s10392_s0 = smov 192   ;;  %s73_s30 = int_to_ptr.vmem [resolvable:$true] %s72_s30 }
   0xd   :  { %s10393_s17 = smov 12   ;;  %s97_s2 = sshll.u32 %s11321_s7, 4  ;;  %s98_s2 = int_to_ptr.hbm [resolvable:$true] %s97_s2 }
   0xe   :  { %78 = dma.hbm_to_vmem [thread:$0]  %s71_s28, 3072, %s73_s30, [#allocation9], %s10392_s0, %s10392_s0, %s10393_s17  }
   0xf   :  { %s10394_s20 = smov [#allocation11]   ;;  %s121_s4 = sshll.u32 %s11324_s10, 4  ;;  %s122_s4 = int_to_ptr.hbm [resolvable:$true] %s121_s4 }
  0x10   :  { %s99_s21 = sshll.u32 %s10394_s20, 4  ;;  %s10395_s23 = smov [#allocation14]   ;;  %s100_s21 = int_to_ptr.vmem [resolvable:$true] %s99_s21 }
  0x11   :  { %102 = dma.hbm_to_vmem [thread:$0]  %s98_s2, 16, %s100_s21, [#allocation12]  }
  0x12   :  { %s123_s25 = sshll.u32 %s10395_s23, 4  ;;  %s145_s28 = sshll.u32 %s11326_s12, 4  ;;  %s124_s25 = int_to_ptr.vmem [resolvable:$true] %s123_s25  ;;  %s146_s28 = int_to_ptr.hbm [resolvable:$true] %s145_s28 }
  0x13   :  { %126 = dma.hbm_to_vmem [thread:$0]  %s122_s4, 16, %s124_s25, [#allocation15]  }
  0x14   :  { %s35_s30 = sshll.u32 %s11315_s1, 4  ;;  %s10396_s0 = smov [#allocation17]   ;;  %s36_s30 = int_to_ptr.hbm [resolvable:$true] %s35_s30 }
  0x15   :  { %s147_s17 = sshll.u32 %s10396_s0, 4  ;;  %s10397_s10 = smov [#allocation2]   ;;  %s148_s17 = int_to_ptr.vmem [resolvable:$true] %s147_s17 }
  0x16   :  { %150 = dma.hbm_to_vmem [thread:$0]  %s146_s28, 512, %s148_s17, [#allocation18]  }
  0x17   :  { %s37_s18 = sshll.u32 %s10397_s10, 4  ;;  %s10398_s19 = smov 128   ;;  %s38_s18 = int_to_ptr.vmem [resolvable:$true] %s37_s18 }
  0x18   :  { %s10399_s2 = smov 8   ;;  %s60_s21 = sshll.u32 %s11317_s3, 4  ;;  %s61_s21 = int_to_ptr.hbm [resolvable:$true] %s60_s21 }
  0x19   :  { %43 = dma.hbm_to_vmem [thread:$0]  %s36_s30, 256, %s38_s18, [#allocation3], %s10398_s19, %s10398_s19, %s10399_s2  }
  0x1a   :  { %s10400_s1 = smov [#allocation7]   ;;  %s86_s23 = sshll.u32 %s11320_s6, 4  ;;  %s87_s23 = int_to_ptr.hbm [resolvable:$true] %s86_s23 }
  0x1b   :  { %s62_s22 = sshll.u32 %s10400_s1, 4  ;;  %s10401_s25 = smov [#allocation10]   ;;  %s63_s22 = int_to_ptr.vmem [resolvable:$true] %s62_s22 }
  0x1c   :  { %65 = dma.hbm_to_vmem [thread:$0]  %s61_s21, 16, %s63_s22, [#allocation6]  }
  0x1d   :  { %s88_s26 = sshll.u32 %s10401_s25, 4  ;;  %s108_s7 = sshll.u32 %s11322_s8, 4  ;;  %s89_s26 = int_to_ptr.vmem [resolvable:$true] %s88_s26  ;;  %s109_s7 = int_to_ptr.hbm [resolvable:$true] %s108_s7 }
  0x1e   :  { %91 = dma.hbm_to_vmem [thread:$0]  %s87_s23, 16, %s89_s26, [#allocation9]  }
  0x1f   :  { %s131_s30 = sshll.u32 %s11325_s11, 4  ;;  %s10402_s0 = smov [#allocation13]   ;;  %s132_s30 = int_to_ptr.hbm [resolvable:$true] %s131_s30 }
  0x20   :  { %s110_s17 = sshll.u32 %s10402_s0, 4  ;;  %s10403_s6 = smov [#allocation16]   ;;  %s111_s17 = int_to_ptr.vmem [resolvable:$true] %s110_s17 }
  0x21   :  { %113 = dma.hbm_to_vmem [thread:$0]  %s109_s7, 16, %s111_s17, [#allocation12]  }
  0x22   :  { %s133_s10 = sshll.u32 %s10403_s6, 4  ;;  %s155_s20 = sshll.u32 %s11327_s13, 4  ;;  %s134_s10 = int_to_ptr.vmem [resolvable:$true] %s133_s10  ;;  %s156_s20 = int_to_ptr.hbm [resolvable:$true] %s155_s20 }
  0x23   :  { %s10404_s8 = smov 2048   ;;  %s10405_s21 = smov [#allocation19]  }
  0x24   :  { %139 = dma.hbm_to_vmem [thread:$0]  %s132_s30, 32768, %s134_s10, [#allocation15], %s10404_s8, %s10404_s8, %s10398_s19  }
  0x25   :  { %s157_s1 = sshll.u32 %s10405_s21, 4  ;;  %s10406_s11 = smov 64   ;;  %s158_s1 = int_to_ptr.vmem [resolvable:$true] %s157_s1 }
  0x26   :  { %s10407_s22 = smov 4   ;;  %s171_s23 = sshll.u32 %s11329_s15, 4  ;;  %s172_s23 = int_to_ptr.hbm [resolvable:$true] %s171_s23 }
  0x27   :  { %163 = dma.hbm_to_vmem [thread:$0]  %s156_s20, 32768, %s158_s1, [#allocation18], %s10406_s11, %s10406_s11, %s10407_s22  }
  0x28   :  { %s10408_s25 = smov [#allocation20]  }
  0x29   :  { %s173_s26 = sshll.u32 %s10408_s25, 4  ;;  %s174_s26 = int_to_ptr.vmem [resolvable:$true] %s173_s26 }
  0x2a   :  { %176 = dma.hbm_to_vmem [thread:$0]  %s172_s23, 4096, %s174_s26, [#allocation21]  }
  0x2b   :  { %10374 = dma.done.wait [#allocation3], 256  }
  0x2c   :  { %10375 = vsyncadd [#allocation3], 4294967040 }
  0x2d   :  { %10376 = dma.done.wait [#allocation6], 32  }
  0x2e   :  { %10377 = vsyncadd [#allocation6], 4294967264 }
  0x2f   :  { %10378 = dma.done.wait [#allocation9], 3088  }
  0x30   :  { %10379 = vsyncadd [#allocation9], 4294964208 }
  0x31   :  { %10380 = dma.done.wait [#allocation12], 32  }
  0x32   :  { %10381 = vsyncadd [#allocation12], 4294967264 }
  0x33   :  { %10382 = dma.done.wait [#allocation15], 32784  }
  0x34   :  { %10383 = vsyncadd [#allocation15], 4294934512 }
  0x35   :  { %10384 = dma.done.wait [#allocation18], 33280  }
  0x36   :  { %10385 = vsyncadd [#allocation18], 4294934016 }
  0x37   :  { %10386 = dma.done.wait [#allocation21], 4096  }
  0x38   :  { %10387 = vsyncadd [#allocation21], 4294963200  ;;  %s11337_s27 = sld [smem:[#allocation57_spill]]  ;;  %v10409_v2 = vmov 128.0   ;;  %v7185_v17 = vld [vmem:[#allocation8 + $0xa8] sm:$0xf] }
  0x39   :  { %9994 = vrcp.f32 %v10409_v2  ;;  %v9413_v18 = vld [vmem:[#allocation8 + $0xb0] sm:$0xf0]  ;;  %v9412_v19 = vld [vmem:[#allocation8 + $0xac] sm:$0xf]  ;;  %v7187_v21 = vld [vmem:[#allocation8 + $0xb4] sm:$0xf0] }
  0x3a   :  { %v7186_v20 = vor.u32 %v9413_v18, %v7185_v17  ;;  %v7193_v22 = vld [vmem:[#allocation8 + $0xb0] sm:$0xf]  ;;  %v9414_v23 = vld [vmem:[#allocation8 + $0xb8] sm:$0xf0]  ;;  %v7190_v24 = vor.u32 %v9412_v19, %v7187_v21  ;;  %v9409_v28 = vld [vmem:[#allocation8 + $0x94] sm:$0xf] }
  0x3b   :  { %v7194_v25 = vor.u32 %v9414_v23, %v7193_v22  ;;  %v7173_v26 = vld [vmem:[#allocation8 + $0x90] sm:$0xf]  ;;  %v9410_v27 = vld [vmem:[#allocation8 + $0x98] sm:$0xf0]  ;;  %v7175_v30 = vld [vmem:[#allocation8 + $0x9c] sm:$0xf0] }
  0x3c   :  { %450 = vmatpush.bf16.msra.mxu0 %v7186_v20  ;;  %464 = vmatpush.bf16.msra.mxu1 %v7190_v24  ;;  %v7174_v29 = vor.u32 %v9410_v27, %v7173_v26  ;;  %v7181_v31 = vld [vmem:[#allocation8 + $0x98] sm:$0xf]  ;;  %v9411_v32 = vld [vmem:[#allocation8 + $0xa0] sm:$0xf0]  ;;  %v7178_v33 = vor.u32 %v9409_v28, %v7175_v30  ;;  %v9406_v37 = vld [vmem:[#allocation8 + $0x7c] sm:$0xf] }
  0x3d   :  { %478 = vmatpush.bf16.msra.mxu2 %v7194_v25  ;;  %v7182_v34 = vor.u32 %v9411_v32, %v7181_v31  ;;  %v7161_v35 = vld [vmem:[#allocation8 + $0x78] sm:$0xf]  ;;  %v9407_v36 = vld [vmem:[#allocation8 + $0x80] sm:$0xf0]  ;;  %v7163_v39 = vld [vmem:[#allocation8 + $0x84] sm:$0xf0] }
  0x3e   :  { %v226_v0 = vld [vmem:[%s11337_s27] sm:$0xff]  ;;  %v227_v1 = vld [vmem:[%s11337_s27 + $0x8] sm:$0xff]  ;;  %v7162_v38 = vor.u32 %v9407_v36, %v7161_v35  ;;  %v7169_v40 = vld [vmem:[#allocation8 + $0x80] sm:$0xf]  ;;  %v7166_v42 = vor.u32 %v9406_v37, %v7163_v39  ;;  %vm503_vm7 = vcmask 261120   ;;  %s10410_s3 = smov 96  }
  0x3f   :  { %230 = vadd.xlane.f32.xlu0 %v226_v0  ;;  %v9995_v3 = vpop.eup %9994  ;;  %v9408_v41 = vld [vmem:[#allocation8 + $0x88] sm:$0xf0]  ;;  %v7149_v44 = vld [vmem:[#allocation8 + $0x60] sm:$0xf]  ;;  %v9403_v46 = vld [vmem:[#allocation8 + $0x64] sm:$0xf] }
  0x40   :  { %v235_v4 = vmul.f32 128.0, %v9995_v3  ;;  %vm239_vm0 = vweird.f32 %v9995_v3  ;;  %451 = vmatpush.bf16.msra.mxu0 %v7174_v29  ;;  %465 = vmatpush.bf16.msra.mxu1 %v7178_v33  ;;  %v7170_v43 = vor.u32 %v9408_v41, %v7169_v40  ;;  %v9404_v45 = vld [vmem:[#allocation8 + $0x68] sm:$0xf0]  ;;  %v7151_v48 = vld [vmem:[#allocation8 + $0x6c] sm:$0xf0]  ;;  %vm602_vm8 = vcmask 1043456  }
  0x41   :  { %479 = vmatpush.bf16.msra.mxu2 %v7182_v34  ;;  %v7150_v47 = vor.u32 %v9404_v45, %v7149_v44  ;;  %v7157_v49 = vld [vmem:[#allocation8 + $0x68] sm:$0xf]  ;;  %v9405_v50 = vld [vmem:[#allocation8 + $0x70] sm:$0xf0]  ;;  %v7154_v51 = vor.u32 %v9403_v46, %v7151_v48  ;;  %v9400_v55 = vld [vmem:[#allocation8 + $0x4c] sm:$0xf] }
  0x42   :  { %v236_v5 = vsub.f32 1.0, %v235_v4  ;;  %v7158_v52 = vor.u32 %v9405_v50, %v7157_v49  ;;  %v7137_v53 = vld [vmem:[#allocation8 + $0x48] sm:$0xf]  ;;  %v9401_v54 = vld [vmem:[#allocation8 + $0x50] sm:$0xf0]  ;;  %s10411_s29 = smov 32  }
  0x43   :  { %v7138_v56 = vor.u32 %v9401_v54, %v7137_v53  ;;  %v7139_v57 = vld [vmem:[#allocation8 + $0x54] sm:$0xf0]  ;;  %v7145_v58 = vld [vmem:[#allocation8 + $0x50] sm:$0xf]  ;;  %v9402_v59 = vld [vmem:[#allocation8 + $0x58] sm:$0xf0] }
  0x44   :  { %v237_v6 = vmul.f32 %v9995_v3, %v236_v5  ;;  %452 = vmatpush.bf16.msra.mxu0 %v7162_v38  ;;  %466 = vmatpush.bf16.msra.mxu1 %v7166_v42  ;;  %v7142_v60 = vor.u32 %v9400_v55, %v7139_v57  ;;  %v7146_v61 = vor.u32 %v9402_v59, %v7145_v58  ;;  %v7125_v62 = vld [vmem:[#allocation8 + $0x30] sm:$0xf]  ;;  %v9398_v63 = vld [vmem:[#allocation8 + $0x38] sm:$0xf0]  ;;  %v7127_v2 = vld [vmem:[#allocation8 + $0x3c] sm:$0xf0] }
  0x45   :  { %480 = vmatpush.bf16.msra.mxu2 %v7170_v43  ;;  %v9399_v4 = vld [vmem:[#allocation8 + $0x40] sm:$0xf0]  ;;  %v7101_v19 = vld [vmem:[#allocation8] sm:$0xf]  ;;  %v9392_v20 = vld [vmem:[#allocation8 + $0x8] sm:$0xf0] }
  0x46   :  { %v238_v7 = vadd.f32 %v9995_v3, %v237_v6  ;;  %v9391_v21 = vld [vmem:[#allocation8 + $0x4] sm:$0xf]  ;;  %v7102_v23 = vor.u32 %v9392_v20, %v7101_v19  ;;  %v7103_v24 = vld [vmem:[#allocation8 + $0xc] sm:$0xf0]  ;;  %v7109_v25 = vld [vmem:[#allocation8 + $0x8] sm:$0xf] }
  0x47   :  { %232 = vadd.xlane.f32.xlu0 %v227_v1  ;;  %v9393_v26 = vld [vmem:[#allocation8 + $0x10] sm:$0xf0]  ;;  %v7106_v28 = vor.u32 %v9391_v21, %v7103_v24  ;;  %vm548_vm10 = vcmask 64512   ;;  %s7080_s23 = sshll.u32 %s11330_s16, 4  ;;  %s7081_s23 = int_to_ptr.hbm [resolvable:$true] %s7080_s23 }
  0x48   :  { %v10549_v8 = vsel %vm239_vm0, %v9995_v3, %v238_v7  ;;  %453 = vmatpush.bf16.msra.mxu0 %v7150_v47  ;;  %467 = vmatpush.bf16.msra.mxu1 %v7154_v51  ;;  %v7133_v3 = vld [vmem:[#allocation8 + $0x38] sm:$0xf]  ;;  %v7110_v29 = vor.u32 %v9393_v26, %v7109_v25  ;;  %v9988_v47 = vld [vmem:[#allocation5] ss:$0 sm:$0xff] }
  0x49   :  { %481 = vmatpush.bf16.msra.mxu2 %v7158_v52  ;;  %v7134_v6 = vor.u32 %v9399_v4, %v7133_v3  ;;  %v7113_v7 = vld [vmem:[#allocation8 + $0x18] sm:$0xf]  ;;  %v9989_v52 = vld [vmem:[#allocation7] ss:$0 sm:$0xff] }
  0x4c   :  { %454 = vmatpush.bf16.msra.mxu0 %v7138_v56  ;;  %468 = vmatpush.bf16.msra.mxu1 %v7142_v60 }
  0x4d   :  { %482 = vmatpush.bf16.msra.mxu2 %v7146_v61 }
  0x51   :  { %483 = vmatpush.bf16.msra.mxu2 %v7134_v6 }
  0xb2   :  { %v231_v9 = vpop.xlane.xlu0 %230 }
  0xb3   :  { %v241_v10 = vmul.f32 %v10549_v8, %v231_v9  ;;  %v9395_v9 = vld [vmem:[#allocation8 + $0x20] sm:$0xf0] }
  0xb5   :  { %v10552_v11 = vsub.f32 %v226_v0, %v241_v10  ;;  %v9397_v0 = vld [vmem:[#allocation8 + $0x34] sm:$0xf]  ;;  %v9394_v10 = vld [vmem:[#allocation8 + $0x1c] sm:$0xf] }
  0xb6   :  { %v7130_v5 = vor.u32 %v9397_v0, %v7127_v2 }
  0xb7   :  { %v245_v12 = vmul.f32 %v10552_v11, %v10552_v11 }
  0xb8   :  { %469 = vmatpush.bf16.msra.mxu1 %v7130_v5 }
  0xb9   :  { %247 = vadd.xlane.f32.xlu1 %v245_v12  ;;  %v7114_v12 = vor.u32 %v9395_v9, %v7113_v7 }
  0xba   :  { %v233_v13 = vpop.xlane.xlu0 %232 }
  0xbb   :  { %v242_v14 = vmul.f32 %v10549_v8, %v233_v13  ;;  %v7115_v13 = vld [vmem:[#allocation8 + $0x24] sm:$0xf0] }
  0xbc   :  { %v7118_v17 = vor.u32 %v9394_v10, %v7115_v13 }
  0xbd   :  { %v10557_v15 = vsub.f32 %v227_v1, %v242_v14  ;;  %v7126_v1 = vor.u32 %v9398_v63, %v7125_v62  ;;  %v7121_v14 = vld [vmem:[#allocation8 + $0x20] sm:$0xf] }
  0xbe   :  { %470 = vmatpush.bf16.msra.mxu1 %v7118_v17 }
  0xbf   :  { %v246_v16 = vmul.f32 %v10557_v15, %v10557_v15  ;;  %455 = vmatpush.bf16.msra.mxu0 %v7126_v1 }
  0xc1   :  { %249 = vadd.xlane.f32.xlu1 %v246_v16  ;;  %v9396_v16 = vld [vmem:[#allocation8 + $0x28] sm:$0xf0] }
  0xc2   :  { %v7122_v18 = vor.u32 %v9396_v16, %v7121_v14  ;;  %471 = vmatpush.bf16.msra.mxu1 %v7106_v28 }
  0xc3   :  { %456 = vmatpush.bf16.msra.mxu0 %v7114_v12 }
  0xc4   :  { %484 = vmatpush.bf16.msra.mxu2 %v7122_v18 }
  0xc7   :  { %457 = vmatpush.bf16.msra.mxu0 %v7102_v23 }
  0xc8   :  { %485 = vmatpush.bf16.msra.mxu2 %v7110_v29  ;;  %v492_v29 = vlaneseq }
 0x12c   :  { %v248_v22 = vpop.xlane.xlu1 %247 }
 0x12d   :  { %v251_v27 = vmul.f32 %v248_v22, %v10549_v8 }
 0x12f   :  { %v253_v30 = vadd.f32 1e-05, %v251_v27 }
 0x131   :  { %9996 = vrsqrt.f32 %v253_v30  ;;  %vm261_vm2 = vweird.f32 %v253_v30 }
 0x134   :  { %v250_v31 = vpop.xlane.xlu1 %249 }
 0x135   :  { %v252_v32 = vmul.f32 %v250_v31, %v10549_v8 }
 0x137   :  { %v9997_v33 = vpop.eup %9996  ;;  %v254_v34 = vadd.f32 1e-05, %v252_v32 }
 0x138   :  { %v256_v35 = vmul.f32 %v9997_v33, %v253_v30  ;;  %vm262_vm1 = vweird.f32 %v9997_v33 }
 0x139   :  { %9998 = vrsqrt.f32 %v254_v34  ;;  %vm263_vm3 = vmor %vm261_vm2, %vm262_vm1  ;;  %vm271_vm5 = vweird.f32 %v254_v34 }
 0x13a   :  { %v257_v36 = vmul.f32 %v9997_v33, %v256_v35 }
 0x13c   :  { %v258_v37 = vmul.f32 0.5, %v257_v36 }
 0x13e   :  { %v259_v38 = vsub.f32 1.5, %v258_v37 }
 0x13f   :  { %v9999_v39 = vpop.eup %9998 }
 0x140   :  { %v260_v40 = vmul.f32 %v9997_v33, %v259_v38  ;;  %v266_v41 = vmul.f32 %v9999_v39, %v254_v34  ;;  %vm272_vm4 = vweird.f32 %v9999_v39  ;;  %v10597_v34 = vand.u32 127, %v492_v29 }
 0x141   :  { %vm273_vm6 = vmor %vm271_vm5, %vm272_vm4 }
 0x142   :  { %v267_v42 = vmul.f32 %v9999_v39, %v266_v41  ;;  %v264_v43 = vsel %vm263_vm3, %v9997_v33, %v260_v40  ;;  %v493_v33 = vshrl.u32 %v492_v29, 7 }
 0x143   :  { %v275_v46 = vmul.f32 %v264_v43, %v10552_v11 }
 0x144   :  { %v268_v44 = vmul.f32 0.5, %v267_v42  ;;  %vm10601_vm9 = vcmp.ge.s32.totalorder %v493_v33, %v10597_v34 }
 0x145   :  { %v281_v51 = vmul.f32 %v9988_v47, %v275_v46 }
 0x146   :  { %v269_v45 = vsub.f32 1.5, %v268_v44 }
 0x147   :  { %v287_v54 = vadd.f32 %v9989_v52, %v281_v51 }
 0x148   :  { %v270_v48 = vmul.f32 %v9999_v39, %v269_v45 }
 0x14a   :  { %v274_v49 = vsel %vm273_vm6, %v9999_v39, %v270_v48 }
 0x14b   :  { %v276_v50 = vmul.f32 %v274_v49, %v10557_v15 }
 0x14d   :  { %v282_v53 = vmul.f32 %v9988_v47, %v276_v50 }
 0x14f   :  { %v288_v55 = vadd.f32 %v9989_v52, %v282_v53 }
 0x151   :  { %v289_v56 = vpack.c.bf16 %v288_v55, %v287_v54 }
 0x153   :  { %458 = vmatmul.bf16.vlgmr.msra.gmra.mxu0 %v289_v56  ;;  %472 = vmatmul.bf16.vlgmr.msra.gmra.mxu1 %v289_v56 }
 0x154   :  { %486 = vmatmul.bf16.vlgmr.msra.gmra.mxu2 %v289_v56 }
 0x1d0   :  { %v459_v57 = vpop.f32.mrf.mxu0  ;;  %v473_v58 = vpop.f32.mrf.mxu1 }
 0x1d1   :  { %v497_v11 = vpack.c.bf16 %v459_v57, %v459_v57  ;;  %v499_v59 = vpack.c.bf16 %v473_v58, %v473_v58 }
 0x1d3   :  { %v639_v60 = vunpack.c.l.b16 %v497_v11  ;;  %v644_v61 = vunpack.c.l.b16 %v499_v59  ;;  %v508_v62 = vsel %vm503_vm7, %v499_v59, 0 }
 0x1d4   :  { %517 = vmatpush.bf16.xpose.msra.mxu3 %v508_v62 }
 0x1d5   :  { %v640_v15 = vpack.c.b16 %v639_v60, %v639_v60  ;;  %v645_v63 = vpack.c.b16 %v644_v61, %v644_v61 }
 0x1d7   :  { %v487_v0 = vpop.f32.mrf.mxu2  ;;  %646 = vrot.lane.b32.xlu2 %v645_v63, %s10410_s3  ;;  %641 = vrot.lane.b32.xlu0 %v640_v15, %s10410_s3 }
 0x1d8   :  { %v10568_v1 = vpack.c.bf16 %v487_v0, %v487_v0  ;;  %v461_v2 = vpop.f32.mrf.mxu0  ;;  %v475_v3 = vpop.f32.mrf.mxu1 }
 0x1d9   :  { %v498_v4 = vpack.c.bf16 %v461_v2, %v461_v2  ;;  %v500_v5 = vpack.c.bf16 %v475_v3, %v475_v3 }
 0x1da   :  { %v604_v10 = vsel %vm602_vm8, %v10568_v1, 0  ;;  %v751_v29 = vunpack.c.l.b16 %v10568_v1 }
 0x1db   :  { %v668_v6 = vunpack.c.l.b16 %v498_v4  ;;  %v673_v7 = vunpack.c.l.b16 %v500_v5  ;;  %7195 = vmatmul.msk.bf16.vlgmr.msra.gmra.mxu3 %vm503_vm7, %v497_v11  ;;  %v527_v9 = vsel %vm503_vm7, %v500_v5, 0 }
 0x1dc   :  { %536 = vmatpush.bf16.xpose.msrb.mxu3 %v527_v9 }
 0x1dd   :  { %v674_v12 = vpack.c.b16 %v673_v7, %v673_v7  ;;  %v669_v13 = vpack.c.b16 %v668_v6, %v668_v6 }
 0x1df   :  { %v489_v14 = vpop.f32.mrf.mxu2  ;;  %675 = vrot.lane.b32.xlu2 %v674_v12, %s10410_s3  ;;  %821 = vrot.lane.b32.xlu0 %v669_v13, %s10406_s11 }
 0x1e0   :  { %v10576_v16 = vpack.c.bf16 %v489_v14, %v489_v14  ;;  %670 = vrot.lane.b32.xlu1 %v669_v13, %s10410_s3 }
 0x1e2   :  { %v623_v17 = vsel %vm602_vm8, %v10576_v16, 0 }
 0x1e3   :  { %632 = vmatpush.bf16.msrb.mxu0 %v623_v17 }
 0x1e4   :  { %613 = vmatpush.bf16.msra.mxu3 %v604_v10 }
 0x1e7   :  { %800 = vrot.lane.b32.xlu2 %v645_v63, %s10406_s11  ;;  %940 = vrot.lane.b32.xlu0 %v640_v15, %s10411_s29 }
 0x1e8   :  { %965 = vrot.lane.b32.xlu1 %v674_v12, %s10411_s29 }
 0x1eb   :  { %7196 = vmatmul.msk.bf16.vlgmr.msrb.gmra.mxu3 %vm503_vm7, %v498_v4 }
 0x1ef   :  { %823 = vrot.lane.b32.xlu2 %v674_v12, %s10406_s11 }
 0x1f7   :  { %798 = vrot.lane.b32.xlu2 %v640_v15, %s10406_s11 }
 0x1ff   :  { %942 = vrot.lane.b32.xlu2 %v645_v63, %s10411_s29 }
 0x207   :  { %963 = vrot.lane.b32.xlu2 %v669_v13, %s10411_s29 }
 0x231   :  { %v647_v18 = vpop.permute.xlu2 %646 }
 0x232   :  { %v652_v19 = vsel %vm503_vm7, %v647_v18, 0 }
 0x233   :  { %661 = vmatpush.bf16.xpose.msrb.mxu1 %v652_v19 }
 0x239   :  { %v676_v20 = vpop.permute.xlu2 %675 }
 0x23a   :  { %v681_v21 = vsel %vm503_vm7, %v676_v20, 0 }
 0x23b   :  { %690 = vmatpush.bf16.xpose.msrb.mxu2 %v681_v21 }
 0x241   :  { %v801_v22 = vpop.permute.xlu2 %800 }
 0x242   :  { %v806_v23 = vsel %vm503_vm7, %v801_v22, 0 }
 0x243   :  { %815 = vmatpush.bf16.xpose.msra.mxu1 %v806_v23 }
 0x249   :  { %v824_v24 = vpop.permute.xlu2 %823  ;;  %v642_v25 = vpop.permute.xlu0 %641 }
 0x24a   :  { %v829_v26 = vsel %vm503_vm7, %v824_v24, 0  ;;  %7199 = vmatmul.msk.bf16.vlgmr.msrb.gmra.mxu1 %vm503_vm7, %v642_v25 }
 0x24b   :  { %838 = vmatpush.bf16.xpose.msra.mxu2 %v829_v26 }
 0x251   :  { %v799_v27 = vpop.permute.xlu2 %798  ;;  %v822_v38 = vpop.permute.xlu0 %821 }
 0x252   :  { %v671_v28 = vpop.permute.xlu1 %670 }
 0x253   :  { %7200 = vmatmul.msk.bf16.vlgmr.msrb.gmra.mxu2 %vm503_vm7, %v671_v28 }
 0x259   :  { %v943_v30 = vpop.permute.xlu2 %942  ;;  %v941_v43 = vpop.permute.xlu0 %940 }
 0x25a   :  { %v948_v31 = vsel %vm503_vm7, %v943_v30, 0  ;;  %v966_v32 = vpop.permute.xlu1 %965  ;;  %7203 = vmatmul.msk.bf16.vlgmr.msra.gmra.mxu1 %vm503_vm7, %v799_v27  ;;  %v775_v30 = vunpack.c.l.b16 %v10576_v16 }
 0x25b   :  { %v971_v35 = vsel %vm503_vm7, %v966_v32, 0  ;;  %957 = vmatpush.bf16.xpose.msrb.mxu1 %v948_v31  ;;  %v10648_v31 = vpack.c.b16 %v751_v29, %v751_v29 }
 0x25c   :  { %980 = vmatpush.bf16.xpose.msrb.mxu2 %v971_v35  ;;  %v10650_v32 = vpack.c.b16 %v775_v30, %v775_v30 }
 0x25e   :  { %v519_v36 = vpop.f32.mrf.mxu3 }
 0x25f   :  { %v542_v39 = vmul.f32 0.088388346, %v519_v36 }
 0x261   :  { %v546_v40 = vsel %vm10601_vm9, %v542_v39, -inf  ;;  %v964_v47 = vpop.permute.xlu2 %963 }
 0x262   :  { %v549_v41 = vsel %vm548_vm10, %v546_v40, -inf }
 0x263   :  { %7204 = vmatmul.msk.bf16.vlgmr.msra.gmra.mxu2 %vm503_vm7, %v822_v38  ;;  %550 = vmax.xlane.f32.xlu1 %v549_v41 }
 0x266   :  { %v521_v42 = vpop.f32.mrf.mxu3 }
 0x26a   :  { %7207 = vmatmul.msk.bf16.vlgmr.msrb.gmra.mxu1 %vm503_vm7, %v941_v43 }
 0x26e   :  { %v538_v44 = vpop.f32.mrf.mxu3 }
 0x26f   :  { %v543_v45 = vmul.f32 0.088388346, %v538_v44 }
 0x271   :  { %v547_v46 = vsel %vm10601_vm9, %v543_v45, -inf }
 0x272   :  { %v552_v48 = vsel %vm548_vm10, %v547_v46, -inf }
 0x273   :  { %7208 = vmatmul.msk.bf16.vlgmr.msrb.gmra.mxu2 %vm503_vm7, %v964_v47  ;;  %553 = vmax.xlane.f32.xlu0 %v552_v48 }
 0x276   :  { %v540_v49 = vpop.f32.mrf.mxu3 }
 0x2c7   :  { %v663_v50 = vpop.f32.mrf.mxu1 }
 0x2c8   :  { %v696_v51 = vmul.f32 0.088388346, %v663_v50 }
 0x2ca   :  { %v698_v52 = vsel %vm10601_vm9, %v696_v51, -inf }
 0x2cb   :  { %v700_v53 = vsel %vm548_vm10, %v698_v52, -inf }
 0x2cc   :  { %701 = vmax.xlane.f32.xlu2 %v700_v53 }
 0x2cf   :  { %v665_v54 = vpop.f32.mrf.mxu1 }
 0x2d6   :  { %v692_v55 = vpop.f32.mrf.mxu2  ;;  %v551_v56 = vpop.xlane.xlu1 %550 }
 0x2d7   :  { %v697_v57 = vmul.f32 0.088388346, %v692_v55  ;;  %v555_v58 = vsub.f32 %v546_v40, %v551_v56  ;;  %v817_v11 = vpop.f32.mrf.mxu1 }
 0x2d8   :  { %v844_v59 = vmul.f32 0.088388346, %v817_v11 }
 0x2d9   :  { %v557_v60 = vmul.f32 1.442695, %v555_v58  ;;  %v699_v61 = vsel %vm10601_vm9, %v697_v57, -inf }
 0x2da   :  { %v703_v62 = vsel %vm548_vm10, %v699_v61, -inf  ;;  %v846_v15 = vsel %vm10601_vm9, %v844_v59, -inf }
 0x2db   :  { %10000 = vpow2.f32 %v557_v60  ;;  %704 = vmax.xlane.f32.xlu1 %v703_v62  ;;  %v848_v63 = vsel %vm548_vm10, %v846_v15, -inf }
 0x2dc   :  { %849 = vmax.xlane.f32.xlu0 %v848_v63 }
 0x2de   :  { %v694_v0 = vpop.f32.mrf.mxu2 }
 0x2df   :  { %v819_v2 = vpop.f32.mrf.mxu1 }
 0x2e1   :  { %v10623_v3 = vpop.eup %10000 }
 0x2e2   :  { %v561_v4 = vsel %vm548_vm10, %v10623_v3, 0.0 }
 0x2e4   :  { %562 = vadd.xlane.f32.xlu0 %v561_v4 }
 0x2e6   :  { %v840_v5 = vpop.f32.mrf.mxu2  ;;  %v554_v6 = vpop.xlane.xlu0 %553 }
 0x2e7   :  { %v845_v7 = vmul.f32 0.088388346, %v840_v5  ;;  %v556_v9 = vsub.f32 %v547_v46, %v554_v6  ;;  %v959_v10 = vpop.f32.mrf.mxu1 }
 0x2e8   :  { %v986_v21 = vmul.f32 0.088388346, %v959_v10 }
 0x2e9   :  { %v559_v12 = vmul.f32 1.442695, %v556_v9  ;;  %v847_v13 = vsel %vm10601_vm9, %v845_v7, -inf }
 0x2ea   :  { %v851_v14 = vsel %vm548_vm10, %v847_v13, -inf  ;;  %v10636_v24 = vsel %vm10601_vm9, %v986_v21, -inf }
 0x2eb   :  { %10002 = vpow2.f32 %v559_v12  ;;  %852 = vmax.xlane.f32.xlu2 %v851_v14  ;;  %v990_v27 = vsel %vm548_vm10, %v10636_v24, -inf }
 0x2ee   :  { %v842_v17 = vpop.f32.mrf.mxu2 }
 0x2ef   :  { %v961_v18 = vpop.f32.mrf.mxu1 }
 0x2f1   :  { %v10630_v19 = vpop.eup %10002 }
 0x2f2   :  { %v564_v20 = vsel %vm548_vm10, %v10630_v19, 0.0 }
 0x2f3   :  { %565 = vadd.xlane.f32.xlu1 %v564_v20 }
 0x2f6   :  { %v982_v22 = vpop.f32.mrf.mxu2 }
 0x2f7   :  { %v987_v23 = vmul.f32 0.088388346, %v982_v22 }
 0x2f9   :  { %v10640_v25 = vsel %vm10601_vm9, %v987_v23, -inf }
 0x2fa   :  { %v993_v26 = vsel %vm548_vm10, %v10640_v25, -inf }
 0x2fb   :  { %994 = vmax.xlane.f32.xlu2 %v993_v26  ;;  %991 = vmax.xlane.f32.xlu1 %v990_v27 }
 0x2fe   :  { %v984_v28 = vpop.f32.mrf.mxu2 }
 0x313   :  { %898 = vrot.lane.b32.xlu2 %v10648_v31, %s10406_s11 }
 0x314   :  { %777 = vrot.lane.b32.xlu1 %v10650_v32, %s10410_s3 }
 0x33f   :  { %v702_v33 = vpop.xlane.xlu2 %701 }
 0x340   :  { %v706_v35 = vsub.f32 %v698_v52, %v702_v33 }
 0x342   :  { %v708_v36 = vmul.f32 1.442695, %v706_v35 }
 0x344   :  { %10004 = vpow2.f32 %v708_v36 }
 0x34a   :  { %v10656_v37 = vpop.eup %10004 }
 0x34b   :  { %v712_v1 = vsel %vm548_vm10, %v10656_v37, 0.0 }
 0x34c   :  { %713 = vadd.xlane.f32.xlu0 %v712_v1 }
 0x34e   :  { %v705_v16 = vpop.xlane.xlu1 %704 }
 0x34f   :  { %v707_v38 = vsub.f32 %v699_v61, %v705_v16  ;;  %v850_v39 = vpop.xlane.xlu0 %849 }
 0x350   :  { %v854_v40 = vsub.f32 %v846_v15, %v850_v39 }
 0x351   :  { %v710_v41 = vmul.f32 1.442695, %v707_v38 }
 0x352   :  { %v856_v42 = vmul.f32 1.442695, %v854_v40 }
 0x353   :  { %10006 = vpow2.f32 %v710_v41 }
 0x354   :  { %10008 = vpow2.f32 %v856_v42 }
 0x357   :  { %v563_v43 = vpop.xlane.xlu0 %562 }
 0x358   :  { %10010 = vrcp.f32 %v563_v43  ;;  %v578_v54 = vand.u32 2147483648, %v563_v43  ;;  %v576_v56 = vand.u32 2147483647, %v563_v43  ;;  %vm572_vm12 = vweird.f32 %v563_v43 }
 0x359   :  { %v10660_v44 = vpop.eup %10006 }
 0x35a   :  { %v10662_v45 = vpop.eup %10008  ;;  %v715_v46 = vsel %vm548_vm10, %v10660_v44, 0.0  ;;  %v579_v58 = vor.u32 1.1754944e-38, %v578_v54  ;;  %vm577_vm14 = vcmp.eq.f32.partialorder %v576_v56, 8.507059e+37 }
 0x35b   :  { %716 = vadd.xlane.f32.xlu2 %v715_v46  ;;  %v860_v47 = vsel %vm548_vm10, %v10662_v45, 0.0 }
 0x35c   :  { %861 = vadd.xlane.f32.xlu1 %v860_v47 }
 0x35e   :  { %v10011_v48 = vpop.eup %10010  ;;  %v853_v49 = vpop.xlane.xlu2 %852 }
 0x35f   :  { %v568_v50 = vmul.f32 %v10011_v48, %v563_v43  ;;  %v855_v51 = vsub.f32 %v847_v13, %v853_v49  ;;  %vm573_vm11 = vweird.f32 %v10011_v48 }
 0x360   :  { %753 = vrot.lane.b32.xlu0 %v10648_v31, %s10410_s3  ;;  %vm574_vm13 = vmor %vm572_vm12, %vm573_vm11 }
 0x361   :  { %v569_v52 = vsub.f32 1.0, %v568_v50  ;;  %v858_v53 = vmul.f32 1.442695, %v855_v51 }
 0x363   :  { %v570_v55 = vmul.f32 %v10011_v48, %v569_v52  ;;  %10012 = vpow2.f32 %v858_v53 }
 0x365   :  { %v571_v57 = vadd.f32 %v10011_v48, %v570_v55 }
 0x366   :  { %v566_v11 = vpop.xlane.xlu1 %565 }
 0x367   :  { %v575_v59 = vsel %vm574_vm13, %v10011_v48, %v571_v57  ;;  %10014 = vrcp.f32 %v566_v11  ;;  %v593_v7 = vand.u32 2147483648, %v566_v11  ;;  %v591_v12 = vand.u32 2147483647, %v566_v11 }
 0x368   :  { %v580_v60 = vsel %vm577_vm14, %v579_v58, %v575_v59  ;;  %vm587_vm0 = vweird.f32 %v566_v11 }
 0x369   :  { %v10670_v61 = vpop.eup %10012  ;;  %v581_v62 = vmul.f32 %v10623_v3, %v580_v60  ;;  %v594_v3 = vor.u32 1.1754944e-38, %v593_v7  ;;  %vm592_vm2 = vcmp.eq.f32.partialorder %v591_v12, 8.507059e+37 }
 0x36a   :  { %v863_v15 = vsel %vm548_vm10, %v10670_v61, 0.0 }
 0x36b   :  { %864 = vadd.xlane.f32.xlu2 %v863_v15  ;;  %v597_v63 = vpack.c.bf16 %v581_v62, %v581_v62 }
 0x36d   :  { %v10015_v0 = vpop.eup %10014  ;;  %7197 = vmatmul.msk.bf16.vlgmr.msra.gmra.mxu3 %vm548_vm10, %v597_v63 }
 0x36e   :  { %v583_v2 = vmul.f32 %v10015_v0, %v566_v11  ;;  %v992_v4 = vpop.xlane.xlu1 %991  ;;  %vm588_vm15 = vweird.f32 %v10015_v0  ;;  %v995_v14 = vpop.xlane.xlu2 %994 }
 0x36f   :  { %v996_v5 = vsub.f32 %v10636_v24, %v992_v4  ;;  %vm589_vm1 = vmor %vm587_vm0, %vm588_vm15  ;;  %v997_v20 = vsub.f32 %v10640_v25, %v995_v14 }
 0x370   :  { %v584_v6 = vsub.f32 1.0, %v583_v2 }
 0x371   :  { %v998_v9 = vmul.f32 1.442695, %v996_v5  ;;  %v1000_v26 = vmul.f32 1.442695, %v997_v20 }
 0x372   :  { %v585_v10 = vmul.f32 %v10015_v0, %v584_v6 }
 0x373   :  { %10016 = vpow2.f32 %v998_v9 }
 0x374   :  { %v586_v13 = vadd.f32 %v10015_v0, %v585_v10  ;;  %10018 = vpow2.f32 %v1000_v26 }
 0x375   :  { %919 = vrot.lane.b32.xlu1 %v10650_v32, %s10406_s11 }
 0x376   :  { %v590_v17 = vsel %vm589_vm1, %v10015_v0, %v586_v13  ;;  %v899_v33 = vpop.permute.xlu2 %898 }
 0x377   :  { %v595_v18 = vsel %vm592_vm2, %v594_v3, %v590_v17  ;;  %v904_v48 = vsel %vm602_vm8, %v899_v33, 0 }
 0x378   :  { %v596_v21 = vmul.f32 %v10630_v19, %v595_v18 }
 0x379   :  { %v10681_v22 = vpop.eup %10016 }
 0x37a   :  { %v598_v23 = vpack.c.bf16 %v596_v21, %v596_v21  ;;  %v1002_v24 = vsel %vm548_vm10, %v10681_v22, 0.0  ;;  %v10688_v27 = vpop.eup %10018 }
 0x37b   :  { %1003 = vadd.xlane.f32.xlu2 %v1002_v24  ;;  %v1005_v19 = vsel %vm548_vm10, %v10688_v27, 0.0 }
 0x37c   :  { %7198 = vmatmul.msk.bf16.vlgmr.msrb.gmra.mxu0 %vm548_vm10, %v598_v23 }
 0x37d   :  { %1040 = vrot.lane.b32.xlu1 %v10648_v31, %s10411_s29 }
 0x386   :  { %v778_v28 = vpop.permute.xlu1 %777 }
 0x387   :  { %v783_v25 = vsel %vm602_vm8, %v778_v28, 0 }
 0x388   :  { %792 = vmatpush.bf16.msra.mxu0 %v783_v25 }
 0x38a   :  { %1006 = vadd.xlane.f32.xlu0 %v1005_v19 }
 0x393   :  { %1061 = vrot.lane.b32.xlu2 %v10650_v32, %s10411_s29 }
 0x3bf   :  { %v714_v29 = vpop.xlane.xlu0 %713 }
 0x3c0   :  { %10020 = vrcp.f32 %v714_v29  ;;  %v729_v36 = vand.u32 2147483648, %v714_v29  ;;  %v727_v16 = vand.u32 2147483647, %v714_v29  ;;  %vm723_vm4 = vweird.f32 %v714_v29 }
 0x3c2   :  { %v730_v39 = vor.u32 1.1754944e-38, %v729_v36  ;;  %vm728_vm6 = vcmp.eq.f32.partialorder %v727_v16, 8.507059e+37 }
 0x3c6   :  { %v10021_v30 = vpop.eup %10020 }
 0x3c7   :  { %v719_v35 = vmul.f32 %v10021_v30, %v714_v29  ;;  %vm724_vm3 = vweird.f32 %v10021_v30 }
 0x3c8   :  { %vm725_vm5 = vmor %vm723_vm4, %vm724_vm3 }
 0x3c9   :  { %v720_v31 = vsub.f32 1.0, %v719_v35 }
 0x3cb   :  { %v721_v1 = vmul.f32 %v10021_v30, %v720_v31 }
 0x3cd   :  { %v722_v38 = vadd.f32 %v10021_v30, %v721_v1 }
 0x3ce   :  { %v717_v40 = vpop.xlane.xlu2 %716 }
 0x3cf   :  { %v726_v41 = vsel %vm725_vm5, %v10021_v30, %v722_v38  ;;  %10022 = vrcp.f32 %v717_v40  ;;  %v862_v42 = vpop.xlane.xlu1 %861  ;;  %v744_v55 = vand.u32 2147483648, %v717_v40  ;;  %vm738_vm12 = vweird.f32 %v717_v40 }
 0x3d0   :  { %v731_v32 = vsel %vm728_vm6, %v730_v39, %v726_v41  ;;  %10024 = vrcp.f32 %v862_v42  ;;  %v877_v58 = vand.u32 2147483648, %v862_v42  ;;  %v875_v59 = vand.u32 2147483647, %v862_v42 }
 0x3d1   :  { %v732_v43 = vmul.f32 %v10656_v37, %v731_v32  ;;  %v742_v37 = vand.u32 2147483647, %v717_v40  ;;  %v745_v62 = vor.u32 1.1754944e-38, %v744_v55  ;;  %vm871_vm14 = vweird.f32 %v862_v42 }
 0x3d2   :  { %v754_v46 = vpop.permute.xlu0 %753  ;;  %v878_v0 = vor.u32 1.1754944e-38, %v877_v58  ;;  %vm876_vm1 = vcmp.eq.f32.partialorder %v875_v59, 8.507059e+37 }
 0x3d3   :  { %v759_v47 = vsel %vm602_vm8, %v754_v46, 0  ;;  %v748_v50 = vpack.c.bf16 %v732_v43, %v732_v43  ;;  %vm743_vm15 = vcmp.eq.f32.partialorder %v742_v37, 8.507059e+37 }
 0x3d4   :  { %768 = vmatpush.bf16.msrb.mxu3 %v759_v47 }
 0x3d5   :  { %v10023_v49 = vpop.eup %10022 }
 0x3d6   :  { %v10025_v51 = vpop.eup %10024  ;;  %v734_v52 = vmul.f32 %v10023_v49, %v717_v40  ;;  %vm739_vm9 = vweird.f32 %v10023_v49 }
 0x3d7   :  { %v867_v53 = vmul.f32 %v10025_v51, %v862_v42  ;;  %7201 = vmatmul.msk.bf16.vlgmr.msrb.gmra.mxu3 %vm548_vm10, %v748_v50  ;;  %vm872_vm11 = vweird.f32 %v10025_v51  ;;  %vm740_vm13 = vmor %vm738_vm12, %vm739_vm9 }
 0x3d8   :  { %913 = vmatpush.bf16.msra.mxu3 %v904_v48  ;;  %v735_v54 = vsub.f32 1.0, %v734_v52  ;;  %vm873_vm0 = vmor %vm871_vm14, %vm872_vm11 }
 0x3d9   :  { %v868_v56 = vsub.f32 1.0, %v867_v53 }
 0x3da   :  { %v736_v57 = vmul.f32 %v10023_v49, %v735_v54 }
 0x3db   :  { %v869_v11 = vmul.f32 %v10025_v51, %v868_v56 }
 0x3dc   :  { %v737_v60 = vadd.f32 %v10023_v49, %v736_v57 }
 0x3dd   :  { %v870_v15 = vadd.f32 %v10025_v51, %v869_v11 }
 0x3de   :  { %v741_v63 = vsel %vm740_vm13, %v10023_v49, %v737_v60  ;;  %v865_v2 = vpop.xlane.xlu2 %864 }
 0x3df   :  { %v746_v4 = vsel %vm743_vm15, %v745_v62, %v741_v63  ;;  %v874_v5 = vsel %vm873_vm0, %v10025_v51, %v870_v15  ;;  %10026 = vrcp.f32 %v865_v2  ;;  %v892_v20 = vand.u32 2147483648, %v865_v2 }
 0x3e0   :  { %v747_v6 = vmul.f32 %v10660_v44, %v746_v4  ;;  %v879_v7 = vsel %vm876_vm1, %v878_v0, %v874_v5  ;;  %v890_v44 = vand.u32 2147483647, %v865_v2  ;;  %vm886_vm3 = vweird.f32 %v865_v2 }
 0x3e1   :  { %v880_v9 = vmul.f32 %v10662_v45, %v879_v7  ;;  %v893_v45 = vor.u32 1.1754944e-38, %v892_v20  ;;  %v9418_v20 = vld [vmem:[%s11319_s5 + $0x18] sm:$0xff]  ;;  %vm1108_vm0 = vcmask 523264   ;;  %vm1111_vm1 = vcmask 785408  }
 0x3e2   :  { %v749_v10 = vpack.c.bf16 %v747_v6, %v747_v6  ;;  %vm891_vm5 = vcmp.eq.f32.partialorder %v890_v44, 8.507059e+37  ;;  %v9416_v44 = vld [vmem:[%s11319_s5 + $0x8] sm:$0xff] }
 0x3e3   :  { %v896_v13 = vpack.c.bf16 %v880_v9, %v880_v9 }
 0x3e4   :  { %7202 = vmatmul.msk.bf16.vlgmr.msra.gmra.mxu0 %vm548_vm10, %v749_v10 }
 0x3e5   :  { %v10027_v12 = vpop.eup %10026 }
 0x3e6   :  { %v882_v3 = vmul.f32 %v10027_v12, %v865_v2  ;;  %vm887_vm2 = vweird.f32 %v10027_v12 }
 0x3e7   :  { %v920_v14 = vpop.permute.xlu1 %919  ;;  %7205 = vmatmul.msk.bf16.vlgmr.msra.gmra.mxu3 %vm548_vm10, %v896_v13  ;;  %vm888_vm4 = vmor %vm886_vm3, %vm887_vm2 }
 0x3e8   :  { %v883_v17 = vsub.f32 1.0, %v882_v3  ;;  %v925_v18 = vsel %vm602_vm8, %v920_v14, 0  ;;  %v9422_v3 = vld [vmem:[%s11319_s5 + $0x38] sm:$0xff]  ;;  %v9421_v14 = vld [vmem:[%s11319_s5 + $0x30] sm:$0xff] }
 0x3e9   :  { %934 = vmatpush.bf16.msrb.mxu0 %v925_v18  ;;  %1183 = vmatpush.bf16.msra.mxu1 %v9422_v3  ;;  %v9419_v18 = vld [vmem:[%s11319_s5 + $0x20] sm:$0xff]  ;;  %v7791_v3 = vld [vmem:[#allocation16 + $0x400] sm:$0xf] }
 0x3ea   :  { %v884_v21 = vmul.f32 %v10027_v12, %v883_v17  ;;  %v9420_v17 = vld [vmem:[%s11319_s5 + $0x28] sm:$0xff] }
 0x3ec   :  { %v885_v23 = vadd.f32 %v10027_v12, %v884_v21  ;;  %v9417_v21 = vld [vmem:[%s11319_s5 + $0x10] sm:$0xff] }
 0x3ed   :  { %1184 = vmatpush.bf16.msra.mxu1 %v9421_v14  ;;  %v9575_v14 = vld [vmem:[#allocation16 + $0x47c] sm:$0xf0] }
 0x3ee   :  { %v889_v24 = vsel %vm888_vm4, %v10027_v12, %v885_v23  ;;  %v1004_v28 = vpop.xlane.xlu2 %1003  ;;  %v9415_v23 = vld [vmem:[%s11319_s5] sm:$0xff] }
 0x3ef   :  { %v894_v26 = vsel %vm891_vm5, %v893_v45, %v889_v24  ;;  %v1041_v25 = vpop.permute.xlu1 %1040  ;;  %10028 = vrcp.f32 %v1004_v28  ;;  %v1017_v41 = vand.u32 2147483647, %v1004_v28  ;;  %vm1013_vm9 = vweird.f32 %v1004_v28 }
 0x3f0   :  { %v895_v19 = vmul.f32 %v10670_v61, %v894_v26  ;;  %v10705_v29 = vpop.f32.mrf.mxu3  ;;  %v1046_v30 = vsel %vm602_vm8, %v1041_v25, 0  ;;  %v1019_v61 = vand.u32 2147483648, %v1004_v28 }
 0x3f1   :  { %1055 = vmatpush.bf16.msrb.mxu3 %v1046_v30  ;;  %vm1018_vm12 = vcmp.eq.f32.partialorder %v1017_v41, 8.507059e+37  ;;  %1185 = vmatpush.bf16.msra.mxu1 %v9420_v17  ;;  %v9990_v41 = vld [vmem:[#allocation10] ss:$0 sm:$0xff] }
 0x3f2   :  { %v897_v33 = vpack.c.bf16 %v895_v19, %v895_v19  ;;  %v1020_v43 = vor.u32 1.1754944e-38, %v1019_v61 }
 0x3f4   :  { %7206 = vmatmul.msk.bf16.vlgmr.msrb.gmra.mxu0 %vm548_vm10, %v897_v33 }
 0x3f5   :  { %v10029_v35 = vpop.eup %10028  ;;  %1186 = vmatpush.bf16.msra.mxu1 %v9419_v18  ;;  %v9559_v18 = vld [vmem:[#allocation16 + $0x404] sm:$0xf] }
 0x3f6   :  { %v1009_v31 = vmul.f32 %v10029_v35, %v1004_v28  ;;  %v1062_v36 = vpop.permute.xlu2 %1061  ;;  %vm1014_vm6 = vweird.f32 %v10029_v35 }
 0x3f7   :  { %v1067_v1 = vsel %vm602_vm8, %v1062_v36, 0  ;;  %vm1015_vm11 = vmor %vm1013_vm9, %vm1014_vm6 }
 0x3f8   :  { %v617_v16 = vpop.f32.mrf.mxu3  ;;  %v1010_v38 = vsub.f32 1.0, %v1009_v31  ;;  %1076 = vmatpush.bf16.msra.mxu0 %v1067_v1 }
 0x3f9   :  { %v10710_v39 = vpop.f32.mrf.mxu0  ;;  %1187 = vmatpush.bf16.msra.mxu1 %v9418_v20  ;;  %v7793_v20 = vld [vmem:[#allocation16 + $0x480] sm:$0xf0] }
 0x3fa   :  { %v1011_v40 = vmul.f32 %v10029_v35, %v1010_v38 }
 0x3fc   :  { %v1012_v42 = vadd.f32 %v10029_v35, %v1011_v40 }
 0x3fd   :  { %v1007_v32 = vpop.xlane.xlu0 %1006  ;;  %1188 = vmatpush.bf16.msra.mxu1 %v9417_v21  ;;  %v9427_v21 = vld [vmem:[%s11323_s9 + $0x20] sm:$0xff] }
 0x3fe   :  { %10030 = vrcp.f32 %v1007_v32  ;;  %v1016_v46 = vsel %vm1015_vm11, %v10029_v35, %v1012_v42  ;;  %v1034_v54 = vand.u32 2147483648, %v1007_v32  ;;  %v1032_v56 = vand.u32 2147483647, %v1007_v32 }
 0x3ff   :  { %v1021_v47 = vsel %vm1018_vm12, %v1020_v43, %v1016_v46  ;;  %vm1028_vm13 = vweird.f32 %v1007_v32 }
 0x400   :  { %v1022_v48 = vmul.f32 %v10681_v22, %v1021_v47  ;;  %v1035_v37 = vor.u32 1.1754944e-38, %v1034_v54  ;;  %vm1033_vm15 = vcmp.eq.f32.partialorder %v1032_v56, 8.507059e+37  ;;  %v10061_v47 = vld [vmem:[%s11337_s27 + $0x8] sm:$0xff]  ;;  %v8177_v54 = vld [vmem:[#allocation16 + $0x780] sm:$0xf0] }
 0x401   :  { %v636_v49 = vpop.f32.mrf.mxu0  ;;  %1189 = vmatpush.bf16.msra.mxu1 %v9416_v44  ;;  %v7799_v44 = vld [vmem:[#allocation16 + $0x408] sm:$0xf] }
 0x402   :  { %v1038_v50 = vpack.c.bf16 %v1022_v48, %v1022_v48  ;;  %v9430_v49 = vld [vmem:[%s11323_s9 + $0x38] sm:$0xff] }
 0x403   :  { %1320 = vmatpush.bf16.msra.mxu2 %v9430_v49  ;;  %v9495_v49 = vld [vmem:[#allocation16 + $0x204] sm:$0xf] }
 0x404   :  { %v10031_v51 = vpop.eup %10030  ;;  %7209 = vmatmul.msk.bf16.vlgmr.msrb.gmra.mxu3 %vm548_vm10, %v1038_v50  ;;  %v8175_v50 = vld [vmem:[#allocation16 + $0x700] sm:$0xf] }
 0x405   :  { %v1024_v52 = vmul.f32 %v10031_v51, %v1007_v32  ;;  %vm1029_vm8 = vweird.f32 %v10031_v51  ;;  %1190 = vmatpush.bf16.msra.mxu1 %v9415_v23  ;;  %v9576_v23 = vld [vmem:[#allocation16 + $0x484] sm:$0xf0] }
 0x406   :  { %vm1030_vm14 = vmor %vm1028_vm13, %vm1029_vm8 }
 0x407   :  { %v1025_v53 = vsub.f32 1.0, %v1024_v52 }
 0x409   :  { %v1026_v55 = vmul.f32 %v10031_v51, %v1025_v53  ;;  %v9655_v53 = vld [vmem:[#allocation16 + $0x704] sm:$0xf] }
 0x40a   :  { %v8180_v56 = vor.u32 %v9655_v53, %v8177_v54  ;;  %v7543_v53 = vld [vmem:[#allocation16 + $0x208] sm:$0xf] }
 0x40b   :  { %v1027_v57 = vadd.f32 %v10031_v51, %v1026_v55  ;;  %v8183_v55 = vld [vmem:[#allocation16 + $0x708] sm:$0xf] }
 0x40c   :  { %3168 = vmatpush.bf16.msrb.mxu0 %v8180_v56 }
 0x40d   :  { %v1031_v58 = vsel %vm1030_vm14, %v10031_v51, %v1027_v57  ;;  %v9671_v51 = vld [vmem:[#allocation16 + $0x77c] sm:$0xf0]  ;;  %v9672_v57 = vld [vmem:[#allocation16 + $0x784] sm:$0xf0] }
 0x40e   :  { %v1036_v11 = vsel %vm1033_vm15, %v1035_v37, %v1031_v58  ;;  %v8176_v52 = vor.u32 %v9671_v51, %v8175_v50  ;;  %v9429_v37 = vld [vmem:[%s11323_s9 + $0x30] sm:$0xff]  ;;  %v8047_v58 = vld [vmem:[#allocation16 + $0x600] sm:$0xf] }
 0x40f   :  { %v1037_v22 = vmul.f32 %v10688_v27, %v1036_v11  ;;  %v8184_v11 = vor.u32 %v9672_v57, %v8183_v55  ;;  %1321 = vmatpush.bf16.msra.mxu2 %v9429_v37  ;;  %v9425_v50 = vld [vmem:[%s11323_s9 + $0x10] sm:$0xff]  ;;  %v9512_v55 = vld [vmem:[#allocation16 + $0x284] sm:$0xf0]  ;;  %v7407_v57 = vld [vmem:[#allocation16 + $0x100] sm:$0xf] }
 0x410   :  { %3154 = vmatpush.bf16.msra.mxu3 %v8176_v52  ;;  %v7537_v52 = vld [vmem:[#allocation16 + $0x280] sm:$0xf0]  ;;  %v7544_v56 = vor.u32 %v9512_v55, %v7543_v53  ;;  %v9479_v37 = vld [vmem:[#allocation16 + $0x17c] sm:$0xf0]  ;;  %v9610_v53 = vld [vmem:[#allocation16 + $0x594] sm:$0xf0] }
 0x411   :  { %v1039_v59 = vpack.c.bf16 %v1037_v22, %v1037_v22  ;;  %v9639_v22 = vld [vmem:[#allocation16 + $0x67c] sm:$0xf0]  ;;  %3182 = vmatpush.bf16.msrb.mxu1 %v8184_v11  ;;  %v7540_v54 = vor.u32 %v9495_v49, %v7537_v52  ;;  %v9424_v11 = vld [vmem:[%s11323_s9 + $0x8] sm:$0xff]  ;;  %v7937_v49 = vld [vmem:[#allocation16 + $0x590] sm:$0xf0] }
 0x412   :  { %v7943_v52 = vld [vmem:[#allocation16 + $0x518] sm:$0xf]  ;;  %v9560_v55 = vld [vmem:[#allocation16 + $0x40c] sm:$0xf] }
 0x413   :  { %7210 = vmatmul.msk.bf16.vlgmr.msra.gmra.mxu0 %vm548_vm10, %v1039_v59  ;;  %v9623_v59 = vld [vmem:[#allocation16 + $0x604] sm:$0xf] }
 0x45a   :  { %v770_v60 = vpop.f32.mrf.mxu3 }
 0x461   :  { %v794_v62 = vpop.f32.mrf.mxu0 }
 0x462   :  { %v9970_v15 = vpack.i.bf16 %v794_v62, %v770_v60  ;;  %v772_v63 = vpop.f32.mrf.mxu3  ;;  %v8049_v60 = vld [vmem:[#allocation16 + $0x680] sm:$0xf0]  ;;  %v8048_v62 = vor.u32 %v9639_v22, %v8047_v58  ;;  %v7408_v22 = vor.u32 %v9479_v37, %v7407_v57  ;;  %v7807_v57 = vld [vmem:[#allocation16 + $0x410] sm:$0xf] }
 0x463   :  { %v8055_v63 = vld [vmem:[#allocation16 + $0x608] sm:$0xf]  ;;  %v9463_v58 = vld [vmem:[#allocation16 + $0x104] sm:$0xf] }
 0x464   :  { %9971 = vrot.lane.b32.xlu1 %v9970_v15, %s10411_s29  ;;  %v8052_v15 = vor.u32 %v9623_v59, %v8049_v60  ;;  %3155 = vmatpush.bf16.msra.mxu3 %v8048_v62  ;;  %v7409_v59 = vld [vmem:[#allocation16 + $0x180] sm:$0xf0]  ;;  %v7415_v60 = vld [vmem:[#allocation16 + $0x108] sm:$0xf] }
 0x465   :  { %v7412_v62 = vor.u32 %v9463_v58, %v7409_v59  ;;  %v9577_v58 = vld [vmem:[#allocation16 + $0x48c] sm:$0xf0] }
 0x466   :  { %3169 = vmatpush.bf16.msrb.mxu0 %v8052_v15  ;;  %v9480_v15 = vld [vmem:[#allocation16 + $0x184] sm:$0xf0]  ;;  %v7808_v59 = vor.u32 %v9577_v58, %v7807_v57  ;;  %v7303_v57 = vld [vmem:[#allocation16 + $0x18] sm:$0xf] }
 0x469   :  { %v796_v0 = vpop.f32.mrf.mxu0 }
 0x46a   :  { %v915_v2 = vpop.f32.mrf.mxu3  ;;  %v9640_v0 = vld [vmem:[#allocation16 + $0x684] sm:$0xf0] }
 0x471   :  { %v936_v4 = vpop.f32.mrf.mxu0 }
 0x472   :  { %v917_v5 = vpop.f32.mrf.mxu3  ;;  %v9975_v6 = vpack.i.bf16 %v936_v4, %v915_v2  ;;  %v9428_v2 = vld [vmem:[%s11323_s9 + $0x28] sm:$0xff]  ;;  %v8056_v4 = vor.u32 %v9640_v0, %v8055_v63  ;;  %v7416_v63 = vor.u32 %v9480_v15, %v7415_v60  ;;  %v7279_v0 = vld [vmem:[#allocation16] sm:$0xf]  ;;  %v9578_v15 = vld [vmem:[#allocation16 + $0x494] sm:$0xf0] }
 0x473   :  { %v7919_v5 = vld [vmem:[#allocation16 + $0x500] sm:$0xf]  ;;  %1322 = vmatpush.bf16.msra.mxu2 %v9428_v2 }
 0x474   :  { %9976 = vrot.lane.b32.xlu2 %v9975_v6, %s10406_s11  ;;  %v9607_v6 = vld [vmem:[#allocation16 + $0x57c] sm:$0xf0]  ;;  %3183 = vmatpush.bf16.msrb.mxu1 %v8056_v4  ;;  %v9431_v4 = vld [vmem:[#allocation16 + $0x4] sm:$0xf] }
 0x475   :  { %v9447_v2 = vld [vmem:[#allocation16 + $0x7c] sm:$0xf0] }
 0x477   :  { %1323 = vmatpush.bf16.msra.mxu2 %v9427_v21 }
 0x479   :  { %v938_v7 = vpop.f32.mrf.mxu0 }
 0x47a   :  { %v9591_v7 = vld [vmem:[#allocation16 + $0x504] sm:$0xf] }
 0x487   :  { %v1057_v9 = vpop.f32.mrf.mxu3 }
 0x48f   :  { %v1059_v10 = vpop.f32.mrf.mxu3 }
 0x490   :  { %v1078_v27 = vpop.f32.mrf.mxu0  ;;  %v7927_v10 = vld [vmem:[#allocation16 + $0x508] sm:$0xf] }
 0x491   :  { %v9980_v12 = vpack.i.bf16 %v1078_v27, %v1057_v9  ;;  %v7921_v9 = vld [vmem:[#allocation16 + $0x580] sm:$0xf0]  ;;  %v9608_v27 = vld [vmem:[#allocation16 + $0x584] sm:$0xf0] }
 0x492   :  { %v7928_v17 = vor.u32 %v9608_v27, %v7927_v10  ;;  %v9448_v27 = vld [vmem:[#allocation16 + $0x84] sm:$0xf0] }
 0x493   :  { %9981 = vrot.lane.b32.xlu1 %v9980_v12, %s10410_s3  ;;  %v7920_v12 = vor.u32 %v9607_v6, %v7919_v5  ;;  %v9423_v5 = vld [vmem:[%s11323_s9] sm:$0xff]  ;;  %v7280_v6 = vor.u32 %v9447_v2, %v7279_v0  ;;  %v9528_v0 = vld [vmem:[#allocation16 + $0x30c] sm:$0xf] }
 0x494   :  { %3184 = vmatpush.bf16.msrb.mxu1 %v7928_v17  ;;  %v8191_v17 = vld [vmem:[#allocation16 + $0x710] sm:$0xf]  ;;  %v7673_v2 = vld [vmem:[#allocation16 + $0x388] sm:$0xf0] }
 0x495   :  { %3156 = vmatpush.bf16.msra.mxu3 %v7920_v12  ;;  %v9656_v12 = vld [vmem:[#allocation16 + $0x70c] sm:$0xf] }
 0x498   :  { %v1080_v13 = vpop.f32.mrf.mxu0 }
 0x499   :  { %v7924_v13 = vor.u32 %v9591_v7, %v7921_v9  ;;  %v7281_v7 = vld [vmem:[#allocation16 + $0x80] sm:$0xf0]  ;;  %v7287_v9 = vld [vmem:[#allocation16 + $0x8] sm:$0xf] }
 0x49a   :  { %v7284_v10 = vor.u32 %v9431_v4, %v7281_v7  ;;  %v7679_v4 = vld [vmem:[#allocation16 + $0x310] sm:$0xf]  ;;  %v9529_v7 = vld [vmem:[#allocation16 + $0x314] sm:$0xf] }
 0x49b   :  { %3170 = vmatpush.bf16.msrb.mxu0 %v7924_v13  ;;  %v8185_v13 = vld [vmem:[#allocation16 + $0x788] sm:$0xf0] }
 0x4ce   :  { %v9977_v28 = vpop.permute.xlu2 %9976 }
 0x4cf   :  { %v9979_v30 = vunpack.i.h.bf16 %v9977_v28  ;;  %v9978_v33 = vunpack.i.l.bf16 %v9977_v28  ;;  %v9543_v28 = vld [vmem:[#allocation16 + $0x37c] sm:$0xf0] }
 0x4d6   :  { %v9972_v45 = vpop.permute.xlu1 %9971 }
 0x4d7   :  { %v9974_v24 = vunpack.i.h.bf16 %v9972_v45  ;;  %v9973_v26 = vunpack.i.l.bf16 %v9972_v45  ;;  %v7792_v45 = vor.u32 %v9575_v14, %v7791_v3  ;;  %v7288_v3 = vor.u32 %v9448_v27, %v7287_v9  ;;  %v7681_v9 = vld [vmem:[#allocation16 + $0x390] sm:$0xf0] }
 0x4d8   :  { %v8188_v14 = vor.u32 %v9656_v12, %v8185_v13  ;;  %v7684_v27 = vor.u32 %v9529_v7, %v7681_v9  ;;  %v7687_v12 = vld [vmem:[#allocation16 + $0x318] sm:$0xf] }
 0x4d9   :  { %v1107_v25 = vsel %vm503_vm7, %v10710_v39, %v9974_v24  ;;  %v1106_v19 = vsel %vm503_vm7, %v10705_v29, %v9973_v26  ;;  %v10060_v29 = vld [vmem:[%s11337_s27] sm:$0xff]  ;;  %v7796_v24 = vor.u32 %v9559_v18, %v7793_v20  ;;  %v7663_v26 = vld [vmem:[#allocation16 + $0x300] sm:$0xf]  ;;  %3157 = vmatpush.bf16.msra.mxu3 %v7792_v45  ;;  %v9673_v18 = vld [vmem:[#allocation16 + $0x78c] sm:$0xf0] }
 0x4da   :  { %v1109_v1 = vsel %vm1108_vm0, %v1106_v19, %v9978_v33  ;;  %v1110_v16 = vsel %vm1108_vm0, %v1107_v25, %v9979_v30  ;;  %v7800_v25 = vor.u32 %v9576_v23, %v7799_v44  ;;  %v9527_v19 = vld [vmem:[#allocation16 + $0x304] sm:$0xf]  ;;  %v9426_v33 = vld [vmem:[%s11323_s9 + $0x18] sm:$0xff]  ;;  %v9657_v20 = vld [vmem:[#allocation16 + $0x714] sm:$0xf]  ;;  %v8192_v21 = vor.u32 %v9673_v18, %v8191_v17  ;;  %s10412_s9 = smov 120  }
 0x4db   :  { %v7665_v30 = vld [vmem:[#allocation16 + $0x380] sm:$0xf0]  ;;  %3171 = vmatpush.bf16.msrb.mxu0 %v7796_v24  ;;  %1324 = vmatpush.bf16.msra.mxu2 %v9426_v33  ;;  %v8193_v44 = vld [vmem:[#allocation16 + $0x790] sm:$0xf0]  ;;  %v8199_v23 = vld [vmem:[#allocation16 + $0x718] sm:$0xf] }
 0x4dc   :  { %3185 = vmatpush.bf16.msrb.mxu1 %v7800_v25  ;;  %v9674_v45 = vld [vmem:[#allocation16 + $0x794] sm:$0xf0]  ;;  %v8196_v24 = vor.u32 %v9657_v20, %v8193_v44  ;;  %v8057_v25 = vld [vmem:[#allocation16 + $0x688] sm:$0xf0]  ;;  %v9641_v33 = vld [vmem:[#allocation16 + $0x68c] sm:$0xf0] }
 0x4dd   :  { %v9546_v13 = vld [vmem:[#allocation16 + $0x394] sm:$0xf0]  ;;  %v7545_v17 = vld [vmem:[#allocation16 + $0x288] sm:$0xf0]  ;;  %v7551_v18 = vld [vmem:[#allocation16 + $0x210] sm:$0xf] }
 0x4de   :  { %v9497_v44 = vld [vmem:[#allocation16 + $0x214] sm:$0xf] }
 0x4df   :  { %1325 = vmatpush.bf16.msra.mxu2 %v9425_v50 }
 0x4e3   :  { %1326 = vmatpush.bf16.msra.mxu2 %v9424_v11  ;;  %v9561_v11 = vld [vmem:[#allocation16 + $0x414] sm:$0xf] }
 0x4e7   :  { %1327 = vmatpush.bf16.msra.mxu2 %v9423_v5  ;;  %v7676_v5 = vor.u32 %v9528_v0, %v7673_v2 }
 0x4eb   :  { %3196 = vmatpush.bf16.msrb.mxu2 %v8188_v14  ;;  %v9496_v14 = vld [vmem:[#allocation16 + $0x20c] sm:$0xf] }
 0x4ec   :  { %v7548_v20 = vor.u32 %v9496_v14, %v7545_v17 }
 0x505   :  { %v9982_v35 = vpop.permute.xlu1 %9981 }
 0x506   :  { %v9984_v31 = vunpack.i.h.bf16 %v9982_v35  ;;  %v9983_v36 = vunpack.i.l.bf16 %v9982_v35  ;;  %v7671_v35 = vld [vmem:[#allocation16 + $0x308] sm:$0xf] }
 0x508   :  { %v1113_v38 = vsel %vm1111_vm1, %v1110_v16, %v9984_v31  ;;  %v1112_v61 = vsel %vm1111_vm1, %v1109_v1, %v9983_v36  ;;  %v9544_v31 = vld [vmem:[#allocation16 + $0x384] sm:$0xf0]  ;;  %v7664_v36 = vor.u32 %v9543_v28, %v7663_v26  ;;  %v7668_v1 = vor.u32 %v9527_v19, %v7665_v30  ;;  %v9624_v28 = vld [vmem:[#allocation16 + $0x60c] sm:$0xf]  ;;  %v8063_v19 = vld [vmem:[#allocation16 + $0x610] sm:$0xf] }
 0x509   :  { %v1114_v40 = vpack.c.bf16 %v1113_v38, %v1112_v61  ;;  %v7672_v38 = vor.u32 %v9544_v31, %v7671_v35  ;;  %v8200_v26 = vor.u32 %v9674_v45, %v8199_v23  ;;  %v8060_v30 = vor.u32 %v9624_v28, %v8057_v25  ;;  %v9625_v35 = vld [vmem:[#allocation16 + $0x614] sm:$0xf]  ;;  %v9514_v28 = vld [vmem:[#allocation16 + $0x294] sm:$0xf0] }
 0x50a   :  { %3158 = vmatpush.bf16.msra.mxu3 %v7664_v36  ;;  %3172 = vmatpush.bf16.msrb.mxu0 %v7668_v1  ;;  %v8065_v31 = vld [vmem:[#allocation16 + $0x690] sm:$0xf0]  ;;  %v8064_v36 = vor.u32 %v9641_v33, %v8063_v19  ;;  %v9464_v33 = vld [vmem:[#allocation16 + $0x10c] sm:$0xf] }
 0x50b   :  { %1191 = vmatmul.bf16.vlgmr.msra.gmra.mxu1 %v1114_v40  ;;  %v8068_v1 = vor.u32 %v9625_v35, %v8065_v31  ;;  %3197 = vmatpush.bf16.msrb.mxu2 %v8060_v30  ;;  %v7553_v23 = vld [vmem:[#allocation16 + $0x290] sm:$0xf0]  ;;  %v7417_v35 = vld [vmem:[#allocation16 + $0x188] sm:$0xf0]  ;;  %v7423_v31 = vld [vmem:[#allocation16 + $0x110] sm:$0xf] }
 0x50c   :  { %3186 = vmatpush.bf16.msrb.mxu1 %v7672_v38  ;;  %v9642_v38 = vld [vmem:[#allocation16 + $0x694] sm:$0xf0] }
 0x50e   :  { %3173 = vmatpush.bf16.msrb.mxu0 %v7540_v54  ;;  %v7944_v54 = vor.u32 %v9610_v53, %v7943_v52  ;;  %v9449_v52 = vld [vmem:[#allocation16 + $0x8c] sm:$0xf0]  ;;  %v9433_v53 = vld [vmem:[#allocation16 + $0x14] sm:$0xf] }
 0x510   :  { %3187 = vmatpush.bf16.msrb.mxu1 %v7544_v56  ;;  %v7801_v56 = vld [vmem:[#allocation16 + $0x488] sm:$0xf0] }
 0x511   :  { %v7804_v37 = vor.u32 %v9560_v55, %v7801_v56 }
 0x512   :  { %3174 = vmatpush.bf16.msrb.mxu0 %v7412_v62  ;;  %v7815_v62 = vld [vmem:[#allocation16 + $0x418] sm:$0xf] }
 0x514   :  { %3188 = vmatpush.bf16.msrb.mxu1 %v7416_v63  ;;  %v7816_v63 = vor.u32 %v9578_v15, %v7815_v62 }
 0x516   :  { %3175 = vmatpush.bf16.msrb.mxu0 %v7284_v10 }
 0x518   :  { %3189 = vmatpush.bf16.msrb.mxu1 %v7288_v3  ;;  %v7688_v3 = vor.u32 %v9546_v13, %v7687_v12 }
 0x51a   :  { %3224 = vmatpush.bf16.msra.mxu0 %v8196_v24  ;;  %v7556_v24 = vor.u32 %v9497_v44, %v7553_v23  ;;  %v8207_v44 = vld [vmem:[#allocation16 + $0x720] sm:$0xf] }
 0x51b   :  { %v9675_v23 = vld [vmem:[#allocation16 + $0x79c] sm:$0xf0] }
 0x51c   :  { %3238 = vmatpush.bf16.msra.mxu1 %v8200_v26  ;;  %v7559_v26 = vld [vmem:[#allocation16 + $0x218] sm:$0xf] }
 0x51d   :  { %v7560_v19 = vor.u32 %v9514_v28, %v7559_v26  ;;  %v8209_v28 = vld [vmem:[#allocation16 + $0x7a0] sm:$0xf0] }
 0x51e   :  { %3225 = vmatpush.bf16.msra.mxu0 %v8068_v1  ;;  %v9481_v1 = vld [vmem:[#allocation16 + $0x18c] sm:$0xf0] }
 0x588   :  { %v1192_v42 = vpop.f32.mrf.mxu1 }
 0x589   :  { %v1193_v32 = vadd.f32 %v9990_v41, %v1192_v42 }
 0x58b   :  { %v10750_v39 = vadd.f32 %v10060_v29, %v1193_v32 }
 0x58d   :  { %11340 = vst [vmem:[#allocation31_spill] sm:$0xff] %v10750_v39  ;;  %1199 = vadd.xlane.f32.xlu2 %v10750_v39 }
 0x590   :  { %v1194_v43 = vpop.f32.mrf.mxu1 }
 0x591   :  { %v1195_v46 = vadd.f32 %v9990_v41, %v1194_v43 }
 0x593   :  { %v10756_v48 = vadd.f32 %v10061_v47, %v1195_v46  ;;  %v7535_v46 = vld [vmem:[#allocation16 + $0x200] sm:$0xf] }
 0x594   :  { %v9511_v47 = vld [vmem:[#allocation16 + $0x27c] sm:$0xf0] }
 0x595   :  { %11341 = vst [vmem:[#allocation32_spill] sm:$0xff] %v10756_v48  ;;  %1201 = vadd.xlane.f32.xlu0 %v10756_v48  ;;  %v7536_v51 = vor.u32 %v9511_v47, %v7535_v46  ;;  %v9609_v46 = vld [vmem:[#allocation16 + $0x58c] sm:$0xf0]  ;;  %v9593_v47 = vld [vmem:[#allocation16 + $0x514] sm:$0xf] }
 0x597   :  { %3159 = vmatpush.bf16.msra.mxu3 %v7536_v51  ;;  %v7940_v51 = vor.u32 %v9593_v47, %v7937_v49  ;;  %v9432_v47 = vld [vmem:[#allocation16 + $0xc] sm:$0xf] }
 0x598   :  { %v7289_v49 = vld [vmem:[#allocation16 + $0x88] sm:$0xf0] }
 0x599   :  { %3226 = vmatpush.bf16.msra.mxu0 %v7940_v51  ;;  %v7292_v51 = vor.u32 %v9432_v47, %v7289_v49  ;;  %v7945_v47 = vld [vmem:[#allocation16 + $0x598] sm:$0xf0] }
 0x59b   :  { %3160 = vmatpush.bf16.msra.mxu3 %v7408_v22  ;;  %v7809_v22 = vld [vmem:[#allocation16 + $0x490] sm:$0xf0] }
 0x59c   :  { %v7812_v60 = vor.u32 %v9561_v11, %v7809_v22 }
 0x59e   :  { %3227 = vmatpush.bf16.msra.mxu0 %v7812_v60 }
 0x59f   :  { %3161 = vmatpush.bf16.msra.mxu3 %v7280_v6  ;;  %v9545_v6 = vld [vmem:[#allocation16 + $0x38c] sm:$0xf0] }
 0x5a0   :  { %v7680_v10 = vor.u32 %v9545_v6, %v7679_v4 }
 0x5a2   :  { %3228 = vmatpush.bf16.msra.mxu0 %v7684_v27 }
 0x5a3   :  { %3210 = vmatpush.bf16.msrb.mxu3 %v8192_v21  ;;  %v9513_v21 = vld [vmem:[#allocation16 + $0x28c] sm:$0xf0] }
 0x5a4   :  { %v7552_v45 = vor.u32 %v9513_v21, %v7551_v18  ;;  %v8201_v21 = vld [vmem:[#allocation16 + $0x798] sm:$0xf0] }
 0x5a6   :  { %3229 = vmatpush.bf16.msra.mxu0 %v7556_v24 }
 0x5a7   :  { %3211 = vmatpush.bf16.msrb.mxu3 %v8064_v36  ;;  %v7420_v36 = vor.u32 %v9464_v33, %v7417_v35  ;;  %v8208_v33 = vor.u32 %v9675_v23, %v8207_v44  ;;  %v9626_v35 = vld [vmem:[#allocation16 + $0x61c] sm:$0xf] }
 0x600   :  { %v1200_v16 = vpop.xlane.xlu2 %1199 }
 0x601   :  { %v1203_v61 = vmul.f32 %v1200_v16, %v10549_v8  ;;  %v8071_v16 = vld [vmem:[#allocation16 + $0x618] sm:$0xf] }
 0x603   :  { %v10776_v40 = vsub.f32 %v10750_v39, %v1203_v61  ;;  %v8072_v61 = vor.u32 %v9642_v38, %v8071_v16  ;;  %v9465_v16 = vld [vmem:[#allocation16 + $0x114] sm:$0xf]  ;;  %v9690_v39 = vld [vmem:[#allocation19 + $0x18] sm:$0xff] }
 0x604   :  { %v7425_v38 = vld [vmem:[#allocation16 + $0x190] sm:$0xf0] }
 0x605   :  { %v1207_v41 = vmul.f32 %v10776_v40, %v10776_v40  ;;  %3239 = vmatpush.bf16.msra.mxu1 %v8072_v61 }
 0x607   :  { %1209 = vadd.xlane.f32.xlu1 %v1207_v41  ;;  %v9592_v41 = vld [vmem:[#allocation16 + $0x50c] sm:$0xf] }
 0x608   :  { %v1202_v42 = vpop.xlane.xlu0 %1201 }
 0x609   :  { %v1204_v32 = vmul.f32 %v1202_v42, %v10549_v8  ;;  %v7929_v42 = vld [vmem:[#allocation16 + $0x588] sm:$0xf0]  ;;  %3240 = vmatpush.bf16.msra.mxu1 %v7944_v54  ;;  %v7297_v54 = vld [vmem:[#allocation16 + $0x90] sm:$0xf0] }
 0x60a   :  { %v7300_v56 = vor.u32 %v9433_v53, %v7297_v54  ;;  %v9595_v53 = vld [vmem:[#allocation16 + $0x524] sm:$0xf] }
 0x60b   :  { %v10782_v29 = vsub.f32 %v10756_v48, %v1204_v32  ;;  %v7935_v32 = vld [vmem:[#allocation16 + $0x510] sm:$0xf]  ;;  %v7953_v54 = vld [vmem:[#allocation16 + $0x5a0] sm:$0xf0] }
 0x60c   :  { %v7936_v50 = vor.u32 %v9609_v46, %v7935_v32  ;;  %v7431_v32 = vld [vmem:[#allocation16 + $0x118] sm:$0xf]  ;;  %v9715_v48 = vld [vmem:[#allocation19 + $0xe0] sm:$0xff] }
 0x60d   :  { %v1208_v43 = vmul.f32 %v10782_v29, %v10782_v29  ;;  %3241 = vmatpush.bf16.msra.mxu1 %v7816_v63 }
 0x60e   :  { %3212 = vmatpush.bf16.msrb.mxu3 %v7936_v50  ;;  %v7295_v50 = vld [vmem:[#allocation16 + $0x10] sm:$0xf] }
 0x60f   :  { %1211 = vadd.xlane.f32.xlu0 %v1208_v43  ;;  %v7932_v43 = vor.u32 %v9592_v41, %v7929_v42  ;;  %v7424_v41 = vor.u32 %v9481_v1, %v7423_v31  ;;  %v7428_v42 = vor.u32 %v9465_v16, %v7425_v38  ;;  %v7296_v55 = vor.u32 %v9449_v52, %v7295_v50  ;;  %v8073_v31 = vld [vmem:[#allocation16 + $0x698] sm:$0xf0]  ;;  %v9643_v16 = vld [vmem:[#allocation16 + $0x69c] sm:$0xf0]  ;;  %v9627_v38 = vld [vmem:[#allocation16 + $0x624] sm:$0xf] }
 0x610   :  { %v9611_v52 = vld [vmem:[#allocation16 + $0x59c] sm:$0xf0] }
 0x611   :  { %3198 = vmatpush.bf16.msrb.mxu2 %v7932_v43  ;;  %3242 = vmatpush.bf16.msra.mxu1 %v7688_v3  ;;  %v9482_v43 = vld [vmem:[#allocation16 + $0x194] sm:$0xf0]  ;;  %v9992_v3 = vld [vmem:[#allocation13] ss:$0 sm:$0xff] }
 0x612   :  { %3213 = vmatpush.bf16.msrb.mxu3 %v7808_v59  ;;  %v7432_v46 = vor.u32 %v9482_v43, %v7431_v32  ;;  %3230 = vmatpush.bf16.msra.mxu0 %v7428_v42  ;;  %v9644_v42 = vld [vmem:[#allocation16 + $0x6a4] sm:$0xf0]  ;;  %v8076_v32 = vor.u32 %v9626_v35, %v8073_v31  ;;  %v9466_v35 = vld [vmem:[#allocation16 + $0x11c] sm:$0xf] }
 0x613   :  { %v7433_v31 = vld [vmem:[#allocation16 + $0x198] sm:$0xf0] }
 0x615   :  { %3199 = vmatpush.bf16.msrb.mxu2 %v7804_v37  ;;  %3243 = vmatpush.bf16.msra.mxu1 %v7560_v19  ;;  %v9450_v37 = vld [vmem:[#allocation16 + $0x94] sm:$0xf0]  ;;  %v9676_v19 = vld [vmem:[#allocation16 + $0x7a4] sm:$0xf0] }
 0x616   :  { %3214 = vmatpush.bf16.msrb.mxu3 %v7680_v10  ;;  %v7304_v11 = vor.u32 %v9450_v37, %v7303_v57  ;;  %3231 = vmatpush.bf16.msra.mxu0 %v7300_v56  ;;  %v9991_v10 = vld [vmem:[#allocation11] ss:$0 sm:$0xff]  ;;  %v9612_v56 = vld [vmem:[#allocation16 + $0x5a4] sm:$0xf0] }
 0x619   :  { %3200 = vmatpush.bf16.msrb.mxu2 %v7676_v5  ;;  %3244 = vmatpush.bf16.msra.mxu1 %v7432_v46  ;;  %v9594_v46 = vld [vmem:[#allocation16 + $0x51c] sm:$0xf] }
 0x61a   :  { %3215 = vmatpush.bf16.msrb.mxu3 %v7552_v45  ;;  %v9659_v45 = vld [vmem:[#allocation16 + $0x724] sm:$0xf]  ;;  %v7948_v57 = vor.u32 %v9594_v46, %v7945_v47  ;;  %v7305_v47 = vld [vmem:[#allocation16 + $0x98] sm:$0xf0] }
 0x61d   :  { %3201 = vmatpush.bf16.msrb.mxu2 %v7548_v20  ;;  %3245 = vmatpush.bf16.msra.mxu1 %v7304_v11  ;;  %v9658_v20 = vld [vmem:[#allocation16 + $0x71c] sm:$0xf] }
 0x61e   :  { %3216 = vmatpush.bf16.msrb.mxu3 %v7424_v41  ;;  %v8087_v41 = vld [vmem:[#allocation16 + $0x628] sm:$0xf]  ;;  %v7817_v11 = vld [vmem:[#allocation16 + $0x498] sm:$0xf0] }
 0x61f   :  { %v8088_v50 = vor.u32 %v9644_v42, %v8087_v41  ;;  %v7447_v41 = vld [vmem:[#allocation16 + $0x128] sm:$0xf] }
 0x620   :  { %v9484_v42 = vld [vmem:[#allocation16 + $0x1a4] sm:$0xf0] }
 0x621   :  { %3202 = vmatpush.bf16.msrb.mxu2 %v7420_v36  ;;  %v8212_v36 = vor.u32 %v9659_v45, %v8209_v28  ;;  %v7567_v45 = vld [vmem:[#allocation16 + $0x220] sm:$0xf]  ;;  %v7569_v28 = vld [vmem:[#allocation16 + $0x2a0] sm:$0xf0] }
 0x622   :  { %3217 = vmatpush.bf16.msrb.mxu3 %v7296_v55  ;;  %v7959_v55 = vld [vmem:[#allocation16 + $0x528] sm:$0xf] }
 0x625   :  { %3203 = vmatpush.bf16.msrb.mxu2 %v7292_v51  ;;  %v7951_v51 = vld [vmem:[#allocation16 + $0x520] sm:$0xf] }
 0x626   :  { %v7952_v37 = vor.u32 %v9611_v52, %v7951_v51  ;;  %v7448_v52 = vor.u32 %v9484_v42, %v7447_v41  ;;  %v7847_v41 = vld [vmem:[#allocation16 + $0x438] sm:$0xf] }
 0x627   :  { %v9582_v42 = vld [vmem:[#allocation16 + $0x4b4] sm:$0xf0] }
 0x67a   :  { %v1210_v25 = vpop.xlane.xlu1 %1209 }
 0x67b   :  { %v1213_v30 = vmul.f32 %v1210_v25, %v10549_v8  ;;  %v8215_v25 = vld [vmem:[#allocation16 + $0x728] sm:$0xf] }
 0x67c   :  { %v8216_v1 = vor.u32 %v9676_v19, %v8215_v25  ;;  %v7575_v25 = vld [vmem:[#allocation16 + $0x228] sm:$0xf] }
 0x67d   :  { %v1215_v61 = vadd.f32 1e-05, %v1213_v30  ;;  %v8204_v30 = vor.u32 %v9658_v20, %v8201_v21  ;;  %v9498_v20 = vld [vmem:[#allocation16 + $0x21c] sm:$0xf]  ;;  %v9516_v19 = vld [vmem:[#allocation16 + $0x2a4] sm:$0xf0] }
 0x67e   :  { %v7561_v21 = vld [vmem:[#allocation16 + $0x298] sm:$0xf0] }
 0x67f   :  { %10032 = vrsqrt.f32 %v1215_v61  ;;  %vm1223_vm2 = vweird.f32 %v1215_v61 }
 0x682   :  { %v1212_v58 = vpop.xlane.xlu0 %1211 }
 0x683   :  { %v1214_v22 = vmul.f32 %v1212_v58, %v10549_v8  ;;  %v9562_v58 = vld [vmem:[#allocation16 + $0x41c] sm:$0xf] }
 0x685   :  { %v10033_v59 = vpop.eup %10032  ;;  %v1216_v60 = vadd.f32 1e-05, %v1214_v22  ;;  %v7956_v22 = vor.u32 %v9595_v53, %v7953_v54  ;;  %v9435_v53 = vld [vmem:[#allocation16 + $0x24] sm:$0xf] }
 0x686   :  { %v1218_v62 = vmul.f32 %v10033_v59, %v1215_v61  ;;  %vm1224_vm7 = vweird.f32 %v10033_v59  ;;  %v8081_v61 = vld [vmem:[#allocation16 + $0x6a0] sm:$0xf0] }
 0x687   :  { %10034 = vrsqrt.f32 %v1216_v60  ;;  %vm1225_vm3 = vmor %vm1223_vm2, %vm1224_vm7  ;;  %vm1233_vm5 = vweird.f32 %v1216_v60  ;;  %v8084_v49 = vor.u32 %v9627_v38, %v8081_v61  ;;  %v9467_v38 = vld [vmem:[#allocation16 + $0x124] sm:$0xf] }
 0x688   :  { %v1219_v15 = vmul.f32 %v10033_v59, %v1218_v62  ;;  %v9579_v62 = vld [vmem:[#allocation16 + $0x49c] sm:$0xf0]  ;;  %v7441_v61 = vld [vmem:[#allocation16 + $0x1a0] sm:$0xf0] }
 0x689   :  { %v7444_v51 = vor.u32 %v9467_v38, %v7441_v61  ;;  %v7313_v54 = vld [vmem:[#allocation16 + $0xa0] sm:$0xf0]  ;;  %v9565_v38 = vld [vmem:[#allocation16 + $0x434] sm:$0xf] }
 0x68a   :  { %v1220_v63 = vmul.f32 0.5, %v1219_v15  ;;  %v9563_v15 = vld [vmem:[#allocation16 + $0x424] sm:$0xf]  ;;  %v7841_v61 = vld [vmem:[#allocation16 + $0x4b0] sm:$0xf0] }
 0x68c   :  { %v1221_v0 = vsub.f32 1.5, %v1220_v63  ;;  %v7825_v63 = vld [vmem:[#allocation16 + $0x4a0] sm:$0xf0] }
 0x68d   :  { %v10035_v2 = vpop.eup %10034 }
 0x68e   :  { %v1222_v4 = vmul.f32 %v10033_v59, %v1221_v0  ;;  %v1228_v5 = vmul.f32 %v10035_v2, %v1216_v60  ;;  %vm1234_vm4 = vweird.f32 %v10035_v2  ;;  %v7823_v60 = vld [vmem:[#allocation16 + $0x420] sm:$0xf]  ;;  %v7831_v0 = vld [vmem:[#allocation16 + $0x428] sm:$0xf] }
 0x68f   :  { %vm1235_vm6 = vmor %vm1233_vm5, %vm1234_vm4 }
 0x690   :  { %v1229_v6 = vmul.f32 %v10035_v2, %v1228_v5  ;;  %v1226_v7 = vsel %vm1225_vm3, %v10033_v59, %v1222_v4  ;;  %v7960_v59 = vor.u32 %v9612_v56, %v7959_v55  ;;  %v7820_v4 = vor.u32 %v9562_v58, %v7817_v11  ;;  %v7319_v55 = vld [vmem:[#allocation16 + $0x28] sm:$0xf]  ;;  %v8223_v58 = vld [vmem:[#allocation16 + $0x730] sm:$0xf] }
 0x691   :  { %v1237_v27 = vmul.f32 %v1226_v7, %v10776_v40  ;;  %v7824_v5 = vor.u32 %v9579_v62, %v7823_v60  ;;  %v7689_v7 = vld [vmem:[#allocation16 + $0x398] sm:$0xf0]  ;;  %v9452_v56 = vld [vmem:[#allocation16 + $0xa4] sm:$0xf0]  ;;  %v9677_v11 = vld [vmem:[#allocation16 + $0x7ac] sm:$0xf0] }
 0x692   :  { %v1230_v8 = vmul.f32 0.5, %v1229_v6  ;;  %v9530_v6 = vld [vmem:[#allocation16 + $0x31c] sm:$0xf]  ;;  %v8225_v62 = vld [vmem:[#allocation16 + $0x7b0] sm:$0xf0] }
 0x693   :  { %v1243_v14 = vmul.f32 %v9991_v10, %v1237_v27  ;;  %v9547_v27 = vld [vmem:[#allocation16 + $0x39c] sm:$0xf0] }
 0x694   :  { %v1231_v9 = vsub.f32 1.5, %v1230_v8  ;;  %v7828_v8 = vor.u32 %v9563_v15, %v7825_v63  ;;  %v8231_v15 = vld [vmem:[#allocation16 + $0x738] sm:$0xf] }
 0x695   :  { %v1249_v24 = vadd.f32 %v9992_v3, %v1243_v14  ;;  %v9548_v14 = vld [vmem:[#allocation16 + $0x3a4] sm:$0xf0]  ;;  %v9678_v63 = vld [vmem:[#allocation16 + $0x7b4] sm:$0xf0] }
 0x696   :  { %v1232_v12 = vmul.f32 %v10035_v2, %v1231_v9 }
 0x698   :  { %v1236_v13 = vsel %vm1235_vm6, %v10035_v2, %v1232_v12  ;;  %v9580_v2 = vld [vmem:[#allocation16 + $0x4a4] sm:$0xf0]  ;;  %v9531_v12 = vld [vmem:[#allocation16 + $0x324] sm:$0xf] }
 0x699   :  { %v1238_v17 = vmul.f32 %v1236_v13, %v10782_v29  ;;  %v8079_v29 = vld [vmem:[#allocation16 + $0x620] sm:$0xf]  ;;  %v7832_v9 = vor.u32 %v9580_v2, %v7831_v0  ;;  %v7697_v13 = vld [vmem:[#allocation16 + $0x3a0] sm:$0xf0]  ;;  %v7316_v0 = vor.u32 %v9435_v53, %v7313_v54  ;;  %v7320_v2 = vor.u32 %v9452_v56, %v7319_v55  ;;  %v9533_v53 = vld [vmem:[#allocation16 + $0x334] sm:$0xf] }
 0x69a   :  { %v8080_v43 = vor.u32 %v9643_v16, %v8079_v29  ;;  %v7700_v44 = vor.u32 %v9531_v12, %v7697_v13  ;;  %v7439_v29 = vld [vmem:[#allocation16 + $0x120] sm:$0xf]  ;;  %v9629_v12 = vld [vmem:[#allocation16 + $0x634] sm:$0xf]  ;;  %v7719_v55 = vld [vmem:[#allocation16 + $0x338] sm:$0xf] }
 0x69b   :  { %v1244_v18 = vmul.f32 %v9991_v10, %v1238_v17  ;;  %v7695_v10 = vld [vmem:[#allocation16 + $0x320] sm:$0xf]  ;;  %v7692_v17 = vor.u32 %v9530_v6, %v7689_v7  ;;  %v9628_v6 = vld [vmem:[#allocation16 + $0x62c] sm:$0xf]  ;;  %v8097_v13 = vld [vmem:[#allocation16 + $0x6b0] sm:$0xf0] }
 0x69c   :  { %v9483_v16 = vld [vmem:[#allocation16 + $0x19c] sm:$0xf0]  ;;  %v8089_v7 = vld [vmem:[#allocation16 + $0x6a8] sm:$0xf0]  ;;  %v7713_v54 = vld [vmem:[#allocation16 + $0x3b0] sm:$0xf0] }
 0x69d   :  { %v1250_v26 = vadd.f32 %v9992_v3, %v1244_v18  ;;  %v7703_v3 = vld [vmem:[#allocation16 + $0x328] sm:$0xf]  ;;  %v7696_v18 = vor.u32 %v9547_v27, %v7695_v10  ;;  %v7440_v46 = vor.u32 %v9483_v16, %v7439_v29  ;;  %v8095_v10 = vld [vmem:[#allocation16 + $0x630] sm:$0xf]  ;;  %v9550_v56 = vld [vmem:[#allocation16 + $0x3b4] sm:$0xf0] }
 0x69e   :  { %v7704_v23 = vor.u32 %v9548_v14, %v7703_v3  ;;  %v9645_v27 = vld [vmem:[#allocation16 + $0x6ac] sm:$0xf0]  ;;  %v8103_v3 = vld [vmem:[#allocation16 + $0x638] sm:$0xf] }
 0x69f   :  { %v10799_v40 = vpack.c.bf16 %v1250_v26, %v1249_v24  ;;  %v9515_v24 = vld [vmem:[#allocation16 + $0x29c] sm:$0xf0]  ;;  %v9499_v26 = vld [vmem:[#allocation16 + $0x224] sm:$0xf]  ;;  %v9646_v14 = vld [vmem:[#allocation16 + $0x6b4] sm:$0xf0] }
 0x6a0   :  { %v7839_v29 = vld [vmem:[#allocation16 + $0x430] sm:$0xf] }
 0x6a1   :  { %1328 = vmatmul.bf16.vlgmr.msra.gmra.mxu2 %v10799_v40  ;;  %3162 = vmatmul.bf16.vlgmr.msra.gmra.mxu3 %v10799_v40  ;;  %v9581_v16 = vld [vmem:[#allocation16 + $0x4ac] sm:$0xf0] }
 0x6a2   :  { %3176 = vmatmul.bf16.vlgmr.msrb.gmra.mxu0 %v10799_v40  ;;  %3190 = vmatmul.bf16.vlgmr.msrb.gmra.mxu1 %v10799_v40 }
 0x6a3   :  { %3252 = vmatpush.bf16.msra.mxu2 %v8204_v30  ;;  %3266 = vmatpush.bf16.msra.mxu3 %v8208_v33  ;;  %v7564_v30 = vor.u32 %v9498_v20, %v7561_v21  ;;  %v7568_v33 = vor.u32 %v9515_v24, %v7567_v45  ;;  %v9596_v20 = vld [vmem:[#allocation16 + $0x52c] sm:$0xf]  ;;  %v7967_v45 = vld [vmem:[#allocation16 + $0x530] sm:$0xf] }
 0x6a4   :  { %3280 = vmatpush.bf16.msrb.mxu0 %v8212_v36  ;;  %3294 = vmatpush.bf16.msrb.mxu1 %v8216_v1  ;;  %v7572_v36 = vor.u32 %v9499_v26, %v7569_v28  ;;  %v7576_v1 = vor.u32 %v9516_v19, %v7575_v25  ;;  %v7961_v21 = vld [vmem:[#allocation16 + $0x5a8] sm:$0xf0]  ;;  %v9613_v24 = vld [vmem:[#allocation16 + $0x5ac] sm:$0xf0]  ;;  %v9597_v26 = vld [vmem:[#allocation16 + $0x534] sm:$0xf] }
 0x6a5   :  { %v7969_v28 = vld [vmem:[#allocation16 + $0x5b0] sm:$0xf0]  ;;  %v7975_v25 = vld [vmem:[#allocation16 + $0x538] sm:$0xf] }
 0x6a6   :  { %v9614_v19 = vld [vmem:[#allocation16 + $0x5b4] sm:$0xf0] }
 0x6a7   :  { %3253 = vmatpush.bf16.msra.mxu2 %v8076_v32  ;;  %3267 = vmatpush.bf16.msra.mxu3 %v8080_v43  ;;  %v9434_v32 = vld [vmem:[#allocation16 + $0x1c] sm:$0xf]  ;;  %v7436_v43 = vor.u32 %v9466_v35, %v7433_v31  ;;  %v9564_v35 = vld [vmem:[#allocation16 + $0x42c] sm:$0xf] }
 0x6a8   :  { %3281 = vmatpush.bf16.msrb.mxu0 %v8084_v49  ;;  %3295 = vmatpush.bf16.msrb.mxu1 %v8088_v50  ;;  %v7311_v49 = vld [vmem:[#allocation16 + $0x20] sm:$0xf]  ;;  %v7833_v31 = vld [vmem:[#allocation16 + $0x4a8] sm:$0xf0] }
 0x6a9   :  { %v9451_v50 = vld [vmem:[#allocation16 + $0x9c] sm:$0xf0] }
 0x6aa   :  { %v7312_v60 = vor.u32 %v9451_v50, %v7311_v49  ;;  %v7844_v49 = vor.u32 %v9565_v38, %v7841_v61  ;;  %v7848_v50 = vor.u32 %v9582_v42, %v7847_v41  ;;  %v8247_v38 = vld [vmem:[#allocation16 + $0x748] sm:$0xf] }
 0x6ab   :  { %3254 = vmatpush.bf16.msra.mxu2 %v7948_v57  ;;  %3268 = vmatpush.bf16.msra.mxu3 %v7952_v37  ;;  %v9660_v57 = vld [vmem:[#allocation16 + $0x72c] sm:$0xf]  ;;  %v9680_v61 = vld [vmem:[#allocation16 + $0x7c4] sm:$0xf0] }
 0x6ac   :  { %3282 = vmatpush.bf16.msrb.mxu0 %v7956_v22  ;;  %3296 = vmatpush.bf16.msrb.mxu1 %v7960_v59  ;;  %v8217_v37 = vld [vmem:[#allocation16 + $0x7a8] sm:$0xf0]  ;;  %v9661_v22 = vld [vmem:[#allocation16 + $0x734] sm:$0xf]  ;;  %v7308_v59 = vor.u32 %v9434_v32, %v7305_v47  ;;  %v7836_v32 = vor.u32 %v9564_v35, %v7833_v31  ;;  %v8239_v35 = vld [vmem:[#allocation16 + $0x740] sm:$0xf] }
 0x6ad   :  { %v7705_v47 = vld [vmem:[#allocation16 + $0x3a8] sm:$0xf0]  ;;  %v9679_v31 = vld [vmem:[#allocation16 + $0x7bc] sm:$0xf0] }
 0x6af   :  { %3255 = vmatpush.bf16.msra.mxu2 %v7820_v4  ;;  %3269 = vmatpush.bf16.msra.mxu3 %v7824_v5  ;;  %v8220_v4 = vor.u32 %v9660_v57, %v8217_v37  ;;  %v8224_v5 = vor.u32 %v9677_v11, %v8223_v58  ;;  %v9500_v58 = vld [vmem:[#allocation16 + $0x22c] sm:$0xf] }
 0x6b0   :  { %3283 = vmatpush.bf16.msrb.mxu0 %v7828_v8  ;;  %3297 = vmatpush.bf16.msrb.mxu1 %v7832_v9  ;;  %v8228_v8 = vor.u32 %v9661_v22, %v8225_v62  ;;  %v8232_v9 = vor.u32 %v9678_v63, %v8231_v15  ;;  %v7577_v11 = vld [vmem:[#allocation16 + $0x2a8] sm:$0xf0]  ;;  %v7716_v22 = vor.u32 %v9533_v53, %v7713_v54  ;;  %v9517_v62 = vld [vmem:[#allocation16 + $0x2ac] sm:$0xf0]  ;;  %v9501_v15 = vld [vmem:[#allocation16 + $0x234] sm:$0xf] }
 0x6b1   :  { %3204 = vmatmul.bf16.vlgmr.msrb.gmra.mxu2 %v10799_v40  ;;  %3218 = vmatmul.bf16.vlgmr.msrb.gmra.mxu3 %v10799_v40  ;;  %v7585_v63 = vld [vmem:[#allocation16 + $0x2b0] sm:$0xf0]  ;;  %v9631_v53 = vld [vmem:[#allocation16 + $0x644] sm:$0xf] }
 0x6b2   :  { %3232 = vmatmul.bf16.vlgmr.msra.gmra.mxu0 %v10799_v40  ;;  %3246 = vmatmul.bf16.vlgmr.msra.gmra.mxu1 %v10799_v40  ;;  %v8113_v54 = vld [vmem:[#allocation16 + $0x6c0] sm:$0xf0] }
 0x6b3   :  { %3256 = vmatpush.bf16.msra.mxu2 %v7692_v17  ;;  %3270 = vmatpush.bf16.msra.mxu3 %v7696_v18  ;;  %v8092_v17 = vor.u32 %v9628_v6, %v8089_v7  ;;  %v8096_v18 = vor.u32 %v9645_v27, %v8095_v10  ;;  %v9468_v6 = vld [vmem:[#allocation16 + $0x12c] sm:$0xf]  ;;  %v7455_v10 = vld [vmem:[#allocation16 + $0x130] sm:$0xf] }
 0x6b4   :  { %3284 = vmatpush.bf16.msrb.mxu0 %v7700_v44  ;;  %3298 = vmatpush.bf16.msrb.mxu1 %v7704_v23  ;;  %v8100_v44 = vor.u32 %v9629_v12, %v8097_v13  ;;  %v8104_v23 = vor.u32 %v9646_v14, %v8103_v3  ;;  %v7449_v7 = vld [vmem:[#allocation16 + $0x1a8] sm:$0xf0]  ;;  %v9485_v27 = vld [vmem:[#allocation16 + $0x1ac] sm:$0xf0]  ;;  %v9469_v12 = vld [vmem:[#allocation16 + $0x134] sm:$0xf] }
 0x6b5   :  { %v7457_v13 = vld [vmem:[#allocation16 + $0x1b0] sm:$0xf0]  ;;  %v7463_v3 = vld [vmem:[#allocation16 + $0x138] sm:$0xf] }
 0x6b6   :  { %v9486_v14 = vld [vmem:[#allocation16 + $0x1b4] sm:$0xf0] }
 0x6b7   :  { %3257 = vmatpush.bf16.msra.mxu2 %v7564_v30  ;;  %3271 = vmatpush.bf16.msra.mxu3 %v7568_v33  ;;  %v7964_v30 = vor.u32 %v9596_v20, %v7961_v21  ;;  %v7968_v33 = vor.u32 %v9613_v24, %v7967_v45  ;;  %v7456_v20 = vor.u32 %v9485_v27, %v7455_v10  ;;  %v7321_v21 = vld [vmem:[#allocation16 + $0xa8] sm:$0xf0]  ;;  %v7855_v10 = vld [vmem:[#allocation16 + $0x440] sm:$0xf] }
 0x6b8   :  { %3285 = vmatpush.bf16.msrb.mxu0 %v7572_v36  ;;  %3299 = vmatpush.bf16.msrb.mxu1 %v7576_v1  ;;  %v7972_v36 = vor.u32 %v9597_v26, %v7969_v28  ;;  %v7976_v1 = vor.u32 %v9614_v19, %v7975_v25  ;;  %v7460_v45 = vor.u32 %v9469_v12, %v7457_v13  ;;  %v9437_v26 = vld [vmem:[#allocation16 + $0x34] sm:$0xf]  ;;  %v7335_v25 = vld [vmem:[#allocation16 + $0x38] sm:$0xf]  ;;  %v9583_v27 = vld [vmem:[#allocation16 + $0x4bc] sm:$0xf0] }
 0x6b9   :  { %v7464_v24 = vor.u32 %v9486_v14, %v7463_v3  ;;  %v7329_v28 = vld [vmem:[#allocation16 + $0xb0] sm:$0xf0]  ;;  %v9454_v19 = vld [vmem:[#allocation16 + $0xb4] sm:$0xf0]  ;;  %v9567_v12 = vld [vmem:[#allocation16 + $0x444] sm:$0xf] }
 0x6ba   :  { %v7332_v41 = vor.u32 %v9437_v26, %v7329_v28  ;;  %v7336_v42 = vor.u32 %v9454_v19, %v7335_v25  ;;  %v7857_v13 = vld [vmem:[#allocation16 + $0x4c0] sm:$0xf0]  ;;  %v7863_v3 = vld [vmem:[#allocation16 + $0x448] sm:$0xf] }
 0x6bb   :  { %3258 = vmatpush.bf16.msra.mxu2 %v7436_v43  ;;  %3272 = vmatpush.bf16.msra.mxu3 %v7440_v46  ;;  %v7840_v43 = vor.u32 %v9581_v16, %v7839_v29  ;;  %v9532_v46 = vld [vmem:[#allocation16 + $0x32c] sm:$0xf]  ;;  %v8241_v16 = vld [vmem:[#allocation16 + $0x7c0] sm:$0xf0]  ;;  %v9584_v14 = vld [vmem:[#allocation16 + $0x4c4] sm:$0xf0] }
 0x6bc   :  { %3286 = vmatpush.bf16.msrb.mxu0 %v7444_v51  ;;  %3300 = vmatpush.bf16.msrb.mxu1 %v7448_v52  ;;  %v7711_v51 = vld [vmem:[#allocation16 + $0x330] sm:$0xf]  ;;  %v7708_v57 = vor.u32 %v9532_v46, %v7705_v47  ;;  %v9630_v46 = vld [vmem:[#allocation16 + $0x63c] sm:$0xf]  ;;  %v9535_v26 = vld [vmem:[#allocation16 + $0x344] sm:$0xf] }
 0x6bd   :  { %v9549_v52 = vld [vmem:[#allocation16 + $0x3ac] sm:$0xf0]  ;;  %v8105_v47 = vld [vmem:[#allocation16 + $0x6b8] sm:$0xf0]  ;;  %v7729_v28 = vld [vmem:[#allocation16 + $0x3c0] sm:$0xf0] }
 0x6be   :  { %v7712_v37 = vor.u32 %v9549_v52, %v7711_v51  ;;  %v8111_v51 = vld [vmem:[#allocation16 + $0x640] sm:$0xf]  ;;  %v7735_v25 = vld [vmem:[#allocation16 + $0x348] sm:$0xf] }
 0x6bf   :  { %3259 = vmatpush.bf16.msra.mxu2 %v7308_v59  ;;  %3273 = vmatpush.bf16.msra.mxu3 %v7312_v60  ;;  %v7720_v59 = vor.u32 %v9550_v56, %v7719_v55  ;;  %v7583_v60 = vld [vmem:[#allocation16 + $0x230] sm:$0xf]  ;;  %v9647_v52 = vld [vmem:[#allocation16 + $0x6bc] sm:$0xf0]  ;;  %v8119_v55 = vld [vmem:[#allocation16 + $0x648] sm:$0xf] }
 0x6c0   :  { %3287 = vmatpush.bf16.msrb.mxu0 %v7316_v0  ;;  %3301 = vmatpush.bf16.msrb.mxu1 %v7320_v2  ;;  %v7591_v0 = vld [vmem:[#allocation16 + $0x238] sm:$0xf]  ;;  %v9648_v56 = vld [vmem:[#allocation16 + $0x6c4] sm:$0xf0] }
 0x6c1   :  { %v9518_v2 = vld [vmem:[#allocation16 + $0x2b4] sm:$0xf0]  ;;  %v9552_v19 = vld [vmem:[#allocation16 + $0x3c4] sm:$0xf0] }
 0x6c2   :  { %3260 = vmatmul.bf16.vlgmr.msra.gmra.mxu2 %v10799_v40  ;;  %3274 = vmatmul.bf16.vlgmr.msra.gmra.mxu3 %v10799_v40 }
 0x6c3   :  { %3308 = vmatpush.bf16.msrb.mxu2 %v8220_v4  ;;  %3322 = vmatpush.bf16.msrb.mxu3 %v8224_v5  ;;  %v7580_v4 = vor.u32 %v9500_v58, %v7577_v11  ;;  %v7584_v5 = vor.u32 %v9517_v62, %v7583_v60  ;;  %v9598_v58 = vld [vmem:[#allocation16 + $0x53c] sm:$0xf]  ;;  %v7983_v60 = vld [vmem:[#allocation16 + $0x540] sm:$0xf] }
 0x6c4   :  { %3336 = vmatpush.bf16.msra.mxu0 %v8228_v8  ;;  %3350 = vmatpush.bf16.msra.mxu1 %v8232_v9  ;;  %v7588_v8 = vor.u32 %v9501_v15, %v7585_v63  ;;  %v7592_v9 = vor.u32 %v9518_v2, %v7591_v0  ;;  %v7977_v11 = vld [vmem:[#allocation16 + $0x5b8] sm:$0xf0]  ;;  %v9615_v62 = vld [vmem:[#allocation16 + $0x5bc] sm:$0xf0]  ;;  %v9599_v15 = vld [vmem:[#allocation16 + $0x544] sm:$0xf] }
 0x6c5   :  { %3288 = vmatmul.bf16.vlgmr.msrb.gmra.mxu0 %v10799_v40  ;;  %3302 = vmatmul.bf16.vlgmr.msrb.gmra.mxu1 %v10799_v40  ;;  %v7985_v63 = vld [vmem:[#allocation16 + $0x5c0] sm:$0xf0]  ;;  %v7991_v0 = vld [vmem:[#allocation16 + $0x548] sm:$0xf] }
 0x6c6   :  { %v9616_v2 = vld [vmem:[#allocation16 + $0x5c4] sm:$0xf0] }
 0x6c7   :  { %3309 = vmatpush.bf16.msrb.mxu2 %v8092_v17  ;;  %3323 = vmatpush.bf16.msrb.mxu3 %v8096_v18  ;;  %v9436_v17 = vld [vmem:[#allocation16 + $0x2c] sm:$0xf]  ;;  %v7452_v18 = vor.u32 %v9468_v6, %v7449_v7  ;;  %v9566_v6 = vld [vmem:[#allocation16 + $0x43c] sm:$0xf] }
 0x6c8   :  { %3337 = vmatpush.bf16.msra.mxu0 %v8100_v44  ;;  %3351 = vmatpush.bf16.msra.mxu1 %v8104_v23  ;;  %v7327_v44 = vld [vmem:[#allocation16 + $0x30] sm:$0xf]  ;;  %v7849_v7 = vld [vmem:[#allocation16 + $0x4b8] sm:$0xf0] }
 0x6c9   :  { %v9453_v23 = vld [vmem:[#allocation16 + $0xac] sm:$0xf0] }
 0x6ca   :  { %v7328_v29 = vor.u32 %v9453_v23, %v7327_v44  ;;  %v7860_v44 = vor.u32 %v9567_v12, %v7857_v13  ;;  %v7864_v23 = vor.u32 %v9584_v14, %v7863_v3  ;;  %v8263_v12 = vld [vmem:[#allocation16 + $0x758] sm:$0xf] }
 0x6cb   :  { %3310 = vmatpush.bf16.msrb.mxu2 %v7964_v30  ;;  %3324 = vmatpush.bf16.msrb.mxu3 %v7968_v33  ;;  %v9662_v30 = vld [vmem:[#allocation16 + $0x73c] sm:$0xf]  ;;  %v9682_v13 = vld [vmem:[#allocation16 + $0x7d4] sm:$0xf0] }
 0x6cc   :  { %3338 = vmatpush.bf16.msra.mxu0 %v7972_v36  ;;  %3352 = vmatpush.bf16.msra.mxu1 %v7976_v1  ;;  %v8233_v33 = vld [vmem:[#allocation16 + $0x7b8] sm:$0xf0]  ;;  %v9663_v36 = vld [vmem:[#allocation16 + $0x744] sm:$0xf]  ;;  %v7324_v1 = vor.u32 %v9436_v17, %v7321_v21  ;;  %v7852_v17 = vor.u32 %v9566_v6, %v7849_v7  ;;  %v8255_v6 = vld [vmem:[#allocation16 + $0x750] sm:$0xf] }
 0x6cd   :  { %v7721_v21 = vld [vmem:[#allocation16 + $0x3b8] sm:$0xf0]  ;;  %v9681_v7 = vld [vmem:[#allocation16 + $0x7cc] sm:$0xf0] }
 0x6cf   :  { %3311 = vmatpush.bf16.msrb.mxu2 %v7836_v32  ;;  %3325 = vmatpush.bf16.msrb.mxu3 %v7840_v43  ;;  %v8236_v32 = vor.u32 %v9662_v30, %v8233_v33  ;;  %v8240_v43 = vor.u32 %v9679_v31, %v8239_v35  ;;  %v9502_v35 = vld [vmem:[#allocation16 + $0x23c] sm:$0xf] }
 0x6d0   :  { %3339 = vmatpush.bf16.msra.mxu0 %v7844_v49  ;;  %3353 = vmatpush.bf16.msra.mxu1 %v7848_v50  ;;  %v8244_v49 = vor.u32 %v9663_v36, %v8241_v16  ;;  %v8248_v50 = vor.u32 %v9680_v61, %v8247_v38  ;;  %v7593_v31 = vld [vmem:[#allocation16 + $0x2b8] sm:$0xf0]  ;;  %v7732_v36 = vor.u32 %v9535_v26, %v7729_v28  ;;  %v9519_v16 = vld [vmem:[#allocation16 + $0x2bc] sm:$0xf0]  ;;  %v9503_v38 = vld [vmem:[#allocation16 + $0x244] sm:$0xf] }
 0x6d1   :  { %v7601_v61 = vld [vmem:[#allocation16 + $0x2c0] sm:$0xf0]  ;;  %v9633_v26 = vld [vmem:[#allocation16 + $0x654] sm:$0xf] }
 0x6d2   :  { %v8129_v28 = vld [vmem:[#allocation16 + $0x6d0] sm:$0xf0] }
 0x6d3   :  { %3312 = vmatpush.bf16.msrb.mxu2 %v7708_v57  ;;  %3326 = vmatpush.bf16.msrb.mxu3 %v7712_v37  ;;  %v8108_v57 = vor.u32 %v9630_v46, %v8105_v47  ;;  %v8112_v37 = vor.u32 %v9647_v52, %v8111_v51  ;;  %v9470_v46 = vld [vmem:[#allocation16 + $0x13c] sm:$0xf]  ;;  %v7471_v51 = vld [vmem:[#allocation16 + $0x140] sm:$0xf] }
 0x6d4   :  { %3340 = vmatpush.bf16.msra.mxu0 %v7716_v22  ;;  %3354 = vmatpush.bf16.msra.mxu1 %v7720_v59  ;;  %v8116_v22 = vor.u32 %v9631_v53, %v8113_v54  ;;  %v8120_v59 = vor.u32 %v9648_v56, %v8119_v55  ;;  %v7465_v47 = vld [vmem:[#allocation16 + $0x1b8] sm:$0xf0]  ;;  %v9487_v52 = vld [vmem:[#allocation16 + $0x1bc] sm:$0xf0]  ;;  %v9471_v53 = vld [vmem:[#allocation16 + $0x144] sm:$0xf] }
 0x6d5   :  { %v7473_v54 = vld [vmem:[#allocation16 + $0x1c0] sm:$0xf0]  ;;  %v7479_v55 = vld [vmem:[#allocation16 + $0x148] sm:$0xf] }
 0x6d6   :  { %v9488_v56 = vld [vmem:[#allocation16 + $0x1c4] sm:$0xf0] }
 0x6d7   :  { %3313 = vmatpush.bf16.msrb.mxu2 %v7580_v4  ;;  %3327 = vmatpush.bf16.msrb.mxu3 %v7584_v5  ;;  %v7980_v4 = vor.u32 %v9598_v58, %v7977_v11  ;;  %v7984_v5 = vor.u32 %v9615_v62, %v7983_v60  ;;  %v7472_v58 = vor.u32 %v9487_v52, %v7471_v51  ;;  %v7337_v11 = vld [vmem:[#allocation16 + $0xb8] sm:$0xf0]  ;;  %v7871_v51 = vld [vmem:[#allocation16 + $0x450] sm:$0xf] }
 0x6d8   :  { %3341 = vmatpush.bf16.msra.mxu0 %v7588_v8  ;;  %3355 = vmatpush.bf16.msra.mxu1 %v7592_v9  ;;  %v7988_v8 = vor.u32 %v9599_v15, %v7985_v63  ;;  %v7992_v9 = vor.u32 %v9616_v2, %v7991_v0  ;;  %v7476_v60 = vor.u32 %v9471_v53, %v7473_v54  ;;  %v9439_v15 = vld [vmem:[#allocation16 + $0x44] sm:$0xf]  ;;  %v7351_v0 = vld [vmem:[#allocation16 + $0x48] sm:$0xf]  ;;  %v9585_v52 = vld [vmem:[#allocation16 + $0x4cc] sm:$0xf0] }
 0x6d9   :  { %v7480_v62 = vor.u32 %v9488_v56, %v7479_v55  ;;  %v7345_v63 = vld [vmem:[#allocation16 + $0xc0] sm:$0xf0]  ;;  %v9456_v2 = vld [vmem:[#allocation16 + $0xc4] sm:$0xf0]  ;;  %v9569_v53 = vld [vmem:[#allocation16 + $0x454] sm:$0xf] }
 0x6da   :  { %v7348_v3 = vor.u32 %v9439_v15, %v7345_v63  ;;  %v7352_v14 = vor.u32 %v9456_v2, %v7351_v0  ;;  %v7873_v54 = vld [vmem:[#allocation16 + $0x4d0] sm:$0xf0]  ;;  %v7879_v55 = vld [vmem:[#allocation16 + $0x458] sm:$0xf] }
 0x6db   :  { %3314 = vmatpush.bf16.msrb.mxu2 %v7452_v18  ;;  %3328 = vmatpush.bf16.msrb.mxu3 %v7456_v20  ;;  %v7856_v18 = vor.u32 %v9583_v27, %v7855_v10  ;;  %v9534_v20 = vld [vmem:[#allocation16 + $0x33c] sm:$0xf]  ;;  %v8257_v27 = vld [vmem:[#allocation16 + $0x7d0] sm:$0xf0]  ;;  %v9586_v56 = vld [vmem:[#allocation16 + $0x4d4] sm:$0xf0] }
 0x6dc   :  { %3342 = vmatpush.bf16.msra.mxu0 %v7460_v45  ;;  %3356 = vmatpush.bf16.msra.mxu1 %v7464_v24  ;;  %v7727_v45 = vld [vmem:[#allocation16 + $0x340] sm:$0xf]  ;;  %v7724_v30 = vor.u32 %v9534_v20, %v7721_v21  ;;  %v9632_v20 = vld [vmem:[#allocation16 + $0x64c] sm:$0xf]  ;;  %v9537_v15 = vld [vmem:[#allocation16 + $0x354] sm:$0xf] }
 0x6dd   :  { %v9551_v24 = vld [vmem:[#allocation16 + $0x3bc] sm:$0xf0]  ;;  %v8121_v21 = vld [vmem:[#allocation16 + $0x6c8] sm:$0xf0]  ;;  %v7745_v63 = vld [vmem:[#allocation16 + $0x3d0] sm:$0xf0] }
 0x6de   :  { %v7728_v33 = vor.u32 %v9551_v24, %v7727_v45  ;;  %v8127_v45 = vld [vmem:[#allocation16 + $0x650] sm:$0xf]  ;;  %v7751_v0 = vld [vmem:[#allocation16 + $0x358] sm:$0xf] }
 0x6df   :  { %3315 = vmatpush.bf16.msrb.mxu2 %v7324_v1  ;;  %3329 = vmatpush.bf16.msrb.mxu3 %v7328_v29  ;;  %v7736_v1 = vor.u32 %v9552_v19, %v7735_v25  ;;  %v7599_v29 = vld [vmem:[#allocation16 + $0x240] sm:$0xf]  ;;  %v9649_v24 = vld [vmem:[#allocation16 + $0x6cc] sm:$0xf0]  ;;  %v8135_v25 = vld [vmem:[#allocation16 + $0x658] sm:$0xf] }
 0x6e0   :  { %3343 = vmatpush.bf16.msra.mxu0 %v7332_v41  ;;  %3357 = vmatpush.bf16.msra.mxu1 %v7336_v42  ;;  %v7607_v41 = vld [vmem:[#allocation16 + $0x248] sm:$0xf]  ;;  %v9650_v19 = vld [vmem:[#allocation16 + $0x6d4] sm:$0xf0] }
 0x6e1   :  { %v9520_v42 = vld [vmem:[#allocation16 + $0x2c4] sm:$0xf0]  ;;  %v9554_v2 = vld [vmem:[#allocation16 + $0x3d4] sm:$0xf0] }
 0x6e2   :  { %3316 = vmatmul.bf16.vlgmr.msrb.gmra.mxu2 %v10799_v40  ;;  %3330 = vmatmul.bf16.vlgmr.msrb.gmra.mxu3 %v10799_v40 }
 0x6e3   :  { %3364 = vmatpush.bf16.msra.mxu2 %v8236_v32  ;;  %3378 = vmatpush.bf16.msra.mxu3 %v8240_v43  ;;  %v7596_v32 = vor.u32 %v9502_v35, %v7593_v31  ;;  %v7600_v43 = vor.u32 %v9519_v16, %v7599_v29  ;;  %v9600_v35 = vld [vmem:[#allocation16 + $0x54c] sm:$0xf]  ;;  %v7999_v29 = vld [vmem:[#allocation16 + $0x550] sm:$0xf] }
 0x6e4   :  { %3392 = vmatpush.bf16.msrb.mxu0 %v8244_v49  ;;  %3406 = vmatpush.bf16.msrb.mxu1 %v8248_v50  ;;  %v7604_v49 = vor.u32 %v9503_v38, %v7601_v61  ;;  %v7608_v50 = vor.u32 %v9520_v42, %v7607_v41  ;;  %v7993_v31 = vld [vmem:[#allocation16 + $0x5c8] sm:$0xf0]  ;;  %v9617_v16 = vld [vmem:[#allocation16 + $0x5cc] sm:$0xf0]  ;;  %v9601_v38 = vld [vmem:[#allocation16 + $0x554] sm:$0xf] }
 0x6e5   :  { %3344 = vmatmul.bf16.vlgmr.msra.gmra.mxu0 %v10799_v40  ;;  %3358 = vmatmul.bf16.vlgmr.msra.gmra.mxu1 %v10799_v40  ;;  %v8001_v61 = vld [vmem:[#allocation16 + $0x5d0] sm:$0xf0]  ;;  %v8007_v41 = vld [vmem:[#allocation16 + $0x558] sm:$0xf] }
 0x6e6   :  { %v9618_v42 = vld [vmem:[#allocation16 + $0x5d4] sm:$0xf0] }
 0x6e7   :  { %3365 = vmatpush.bf16.msra.mxu2 %v8108_v57  ;;  %3379 = vmatpush.bf16.msra.mxu3 %v8112_v37  ;;  %v9438_v57 = vld [vmem:[#allocation16 + $0x3c] sm:$0xf]  ;;  %v7468_v37 = vor.u32 %v9470_v46, %v7465_v47  ;;  %v9568_v46 = vld [vmem:[#allocation16 + $0x44c] sm:$0xf] }
 0x6e8   :  { %3393 = vmatpush.bf16.msrb.mxu0 %v8116_v22  ;;  %3407 = vmatpush.bf16.msrb.mxu1 %v8120_v59  ;;  %v7343_v22 = vld [vmem:[#allocation16 + $0x40] sm:$0xf]  ;;  %v7865_v47 = vld [vmem:[#allocation16 + $0x4c8] sm:$0xf0] }
 0x6e9   :  { %v9455_v59 = vld [vmem:[#allocation16 + $0xbc] sm:$0xf0] }
 0x6ea   :  { %v7344_v10 = vor.u32 %v9455_v59, %v7343_v22  ;;  %v7876_v22 = vor.u32 %v9569_v53, %v7873_v54  ;;  %v7880_v59 = vor.u32 %v9586_v56, %v7879_v55  ;;  %v8279_v53 = vld [vmem:[#allocation16 + $0x768] sm:$0xf] }
 0x6eb   :  { %3366 = vmatpush.bf16.msra.mxu2 %v7980_v4  ;;  %3380 = vmatpush.bf16.msra.mxu3 %v7984_v5  ;;  %v9664_v4 = vld [vmem:[#allocation16 + $0x74c] sm:$0xf]  ;;  %v9684_v54 = vld [vmem:[#allocation16 + $0x7e4] sm:$0xf0] }
 0x6ec   :  { %3394 = vmatpush.bf16.msrb.mxu0 %v7988_v8  ;;  %3408 = vmatpush.bf16.msrb.mxu1 %v7992_v9  ;;  %v8249_v5 = vld [vmem:[#allocation16 + $0x7c8] sm:$0xf0]  ;;  %v9665_v8 = vld [vmem:[#allocation16 + $0x754] sm:$0xf]  ;;  %v7340_v9 = vor.u32 %v9438_v57, %v7337_v11  ;;  %v7868_v57 = vor.u32 %v9568_v46, %v7865_v47  ;;  %v8271_v46 = vld [vmem:[#allocation16 + $0x760] sm:$0xf] }
 0x6ed   :  { %v7737_v11 = vld [vmem:[#allocation16 + $0x3c8] sm:$0xf0]  ;;  %v9683_v47 = vld [vmem:[#allocation16 + $0x7dc] sm:$0xf0] }
 0x6ef   :  { %3367 = vmatpush.bf16.msra.mxu2 %v7852_v17  ;;  %3381 = vmatpush.bf16.msra.mxu3 %v7856_v18  ;;  %v8252_v17 = vor.u32 %v9664_v4, %v8249_v5  ;;  %v8256_v18 = vor.u32 %v9681_v7, %v8255_v6  ;;  %v9504_v6 = vld [vmem:[#allocation16 + $0x24c] sm:$0xf] }
 0x6f0   :  { %3395 = vmatpush.bf16.msrb.mxu0 %v7860_v44  ;;  %3409 = vmatpush.bf16.msrb.mxu1 %v7864_v23  ;;  %v8260_v44 = vor.u32 %v9665_v8, %v8257_v27  ;;  %v8264_v23 = vor.u32 %v9682_v13, %v8263_v12  ;;  %v7609_v7 = vld [vmem:[#allocation16 + $0x2c8] sm:$0xf0]  ;;  %v7748_v8 = vor.u32 %v9537_v15, %v7745_v63  ;;  %v9521_v27 = vld [vmem:[#allocation16 + $0x2cc] sm:$0xf0]  ;;  %v9505_v12 = vld [vmem:[#allocation16 + $0x254] sm:$0xf] }
 0x6f1   :  { %v7617_v13 = vld [vmem:[#allocation16 + $0x2d0] sm:$0xf0]  ;;  %v9635_v15 = vld [vmem:[#allocation16 + $0x664] sm:$0xf] }
 0x6f2   :  { %v8145_v63 = vld [vmem:[#allocation16 + $0x6e0] sm:$0xf0] }
 0x6f3   :  { %3368 = vmatpush.bf16.msra.mxu2 %v7724_v30  ;;  %3382 = vmatpush.bf16.msra.mxu3 %v7728_v33  ;;  %v8124_v30 = vor.u32 %v9632_v20, %v8121_v21  ;;  %v8128_v33 = vor.u32 %v9649_v24, %v8127_v45  ;;  %v9472_v20 = vld [vmem:[#allocation16 + $0x14c] sm:$0xf]  ;;  %v7487_v45 = vld [vmem:[#allocation16 + $0x150] sm:$0xf] }
 0x6f4   :  { %3396 = vmatpush.bf16.msrb.mxu0 %v7732_v36  ;;  %3410 = vmatpush.bf16.msrb.mxu1 %v7736_v1  ;;  %v8132_v36 = vor.u32 %v9633_v26, %v8129_v28  ;;  %v8136_v1 = vor.u32 %v9650_v19, %v8135_v25  ;;  %v7481_v21 = vld [vmem:[#allocation16 + $0x1c8] sm:$0xf0]  ;;  %v9489_v24 = vld [vmem:[#allocation16 + $0x1cc] sm:$0xf0]  ;;  %v9473_v26 = vld [vmem:[#allocation16 + $0x154] sm:$0xf] }
 0x6f5   :  { %v7489_v28 = vld [vmem:[#allocation16 + $0x1d0] sm:$0xf0]  ;;  %v7495_v25 = vld [vmem:[#allocation16 + $0x158] sm:$0xf] }
 0x6f6   :  { %v9490_v19 = vld [vmem:[#allocation16 + $0x1d4] sm:$0xf0] }
 0x6f7   :  { %3369 = vmatpush.bf16.msra.mxu2 %v7596_v32  ;;  %3383 = vmatpush.bf16.msra.mxu3 %v7600_v43  ;;  %v7996_v32 = vor.u32 %v9600_v35, %v7993_v31  ;;  %v8000_v43 = vor.u32 %v9617_v16, %v7999_v29  ;;  %v7488_v35 = vor.u32 %v9489_v24, %v7487_v45  ;;  %v7353_v31 = vld [vmem:[#allocation16 + $0xc8] sm:$0xf0]  ;;  %v9587_v24 = vld [vmem:[#allocation16 + $0x4dc] sm:$0xf0] }
 0x6f8   :  { %3397 = vmatpush.bf16.msrb.mxu0 %v7604_v49  ;;  %3411 = vmatpush.bf16.msrb.mxu1 %v7608_v50  ;;  %v8004_v49 = vor.u32 %v9601_v38, %v8001_v61  ;;  %v8008_v50 = vor.u32 %v9618_v42, %v8007_v41  ;;  %v7492_v29 = vor.u32 %v9473_v26, %v7489_v28  ;;  %v9441_v38 = vld [vmem:[#allocation16 + $0x54] sm:$0xf]  ;;  %v7367_v41 = vld [vmem:[#allocation16 + $0x58] sm:$0xf]  ;;  %v9571_v26 = vld [vmem:[#allocation16 + $0x464] sm:$0xf] }
 0x6f9   :  { %v7496_v16 = vor.u32 %v9490_v19, %v7495_v25  ;;  %v7361_v61 = vld [vmem:[#allocation16 + $0xd0] sm:$0xf0]  ;;  %v9458_v42 = vld [vmem:[#allocation16 + $0xd4] sm:$0xf0]  ;;  %v7889_v28 = vld [vmem:[#allocation16 + $0x4e0] sm:$0xf0] }
 0x6fa   :  { %v7364_v55 = vor.u32 %v9441_v38, %v7361_v61  ;;  %v7368_v56 = vor.u32 %v9458_v42, %v7367_v41  ;;  %v7895_v25 = vld [vmem:[#allocation16 + $0x468] sm:$0xf]  ;;  %v7759_v38 = vld [vmem:[#allocation16 + $0x360] sm:$0xf]  ;;  %v9539_v41 = vld [vmem:[#allocation16 + $0x364] sm:$0xf] }
 0x6fb   :  { %3370 = vmatpush.bf16.msra.mxu2 %v7468_v37  ;;  %3384 = vmatpush.bf16.msra.mxu3 %v7472_v58  ;;  %v7872_v37 = vor.u32 %v9585_v52, %v7871_v51  ;;  %v9536_v58 = vld [vmem:[#allocation16 + $0x34c] sm:$0xf]  ;;  %v8273_v52 = vld [vmem:[#allocation16 + $0x7e0] sm:$0xf0]  ;;  %v9588_v19 = vld [vmem:[#allocation16 + $0x4e4] sm:$0xf0] }
 0x6fc   :  { %3398 = vmatpush.bf16.msrb.mxu0 %v7476_v60  ;;  %3412 = vmatpush.bf16.msrb.mxu1 %v7480_v62  ;;  %v7743_v60 = vld [vmem:[#allocation16 + $0x350] sm:$0xf]  ;;  %v7740_v4 = vor.u32 %v9536_v58, %v7737_v11  ;;  %v9634_v58 = vld [vmem:[#allocation16 + $0x65c] sm:$0xf]  ;;  %v9555_v61 = vld [vmem:[#allocation16 + $0x3dc] sm:$0xf0] }
 0x6fd   :  { %v9553_v62 = vld [vmem:[#allocation16 + $0x3cc] sm:$0xf0]  ;;  %v8137_v11 = vld [vmem:[#allocation16 + $0x6d8] sm:$0xf0] }
 0x6fe   :  { %v7744_v5 = vor.u32 %v9553_v62, %v7743_v60  ;;  %v8143_v60 = vld [vmem:[#allocation16 + $0x660] sm:$0xf] }
 0x6ff   :  { %3371 = vmatpush.bf16.msra.mxu2 %v7340_v9  ;;  %3385 = vmatpush.bf16.msra.mxu3 %v7344_v10  ;;  %v7752_v9 = vor.u32 %v9554_v2, %v7751_v0  ;;  %v7615_v10 = vld [vmem:[#allocation16 + $0x250] sm:$0xf]  ;;  %v9651_v62 = vld [vmem:[#allocation16 + $0x6dc] sm:$0xf0]  ;;  %v8151_v0 = vld [vmem:[#allocation16 + $0x668] sm:$0xf] }
 0x700   :  { %3399 = vmatpush.bf16.msrb.mxu0 %v7348_v3  ;;  %3413 = vmatpush.bf16.msrb.mxu1 %v7352_v14  ;;  %v7623_v3 = vld [vmem:[#allocation16 + $0x258] sm:$0xf]  ;;  %v9652_v2 = vld [vmem:[#allocation16 + $0x6e4] sm:$0xf0] }
 0x701   :  { %v9522_v14 = vld [vmem:[#allocation16 + $0x2d4] sm:$0xf0] }
 0x702   :  { %3372 = vmatmul.bf16.vlgmr.msra.gmra.mxu2 %v10799_v40  ;;  %3386 = vmatmul.bf16.vlgmr.msra.gmra.mxu3 %v10799_v40 }
 0x703   :  { %3420 = vmatpush.bf16.msrb.mxu2 %v8252_v17  ;;  %3434 = vmatpush.bf16.msrb.mxu3 %v8256_v18  ;;  %v7612_v17 = vor.u32 %v9504_v6, %v7609_v7  ;;  %v7616_v18 = vor.u32 %v9521_v27, %v7615_v10  ;;  %v9602_v6 = vld [vmem:[#allocation16 + $0x55c] sm:$0xf]  ;;  %v8015_v10 = vld [vmem:[#allocation16 + $0x560] sm:$0xf] }
 0x704   :  { %3448 = vmatpush.bf16.msra.mxu0 %v8260_v44  ;;  %3462 = vmatpush.bf16.msra.mxu1 %v8264_v23  ;;  %v7620_v44 = vor.u32 %v9505_v12, %v7617_v13  ;;  %v7624_v23 = vor.u32 %v9522_v14, %v7623_v3  ;;  %v8009_v7 = vld [vmem:[#allocation16 + $0x5d8] sm:$0xf0]  ;;  %v9619_v27 = vld [vmem:[#allocation16 + $0x5dc] sm:$0xf0]  ;;  %v9603_v12 = vld [vmem:[#allocation16 + $0x564] sm:$0xf] }
 0x705   :  { %3400 = vmatmul.bf16.vlgmr.msrb.gmra.mxu0 %v10799_v40  ;;  %3414 = vmatmul.bf16.vlgmr.msrb.gmra.mxu1 %v10799_v40  ;;  %v8017_v13 = vld [vmem:[#allocation16 + $0x5e0] sm:$0xf0]  ;;  %v8023_v3 = vld [vmem:[#allocation16 + $0x568] sm:$0xf] }
 0x706   :  { %v9620_v14 = vld [vmem:[#allocation16 + $0x5e4] sm:$0xf0] }
 0x707   :  { %3421 = vmatpush.bf16.msrb.mxu2 %v8124_v30  ;;  %3435 = vmatpush.bf16.msrb.mxu3 %v8128_v33  ;;  %v9440_v30 = vld [vmem:[#allocation16 + $0x4c] sm:$0xf]  ;;  %v7484_v33 = vor.u32 %v9472_v20, %v7481_v21  ;;  %v9570_v20 = vld [vmem:[#allocation16 + $0x45c] sm:$0xf]  ;;  %v8024_v45 = vor.u32 %v9620_v14, %v8023_v3  ;;  %v7375_v3 = vld [vmem:[#allocation16 + $0x60] sm:$0xf] }
 0x708   :  { %3449 = vmatpush.bf16.msra.mxu0 %v8132_v36  ;;  %3463 = vmatpush.bf16.msra.mxu1 %v8136_v1  ;;  %v7359_v36 = vld [vmem:[#allocation16 + $0x50] sm:$0xf]  ;;  %v7881_v21 = vld [vmem:[#allocation16 + $0x4d8] sm:$0xf0]  ;;  %v9459_v14 = vld [vmem:[#allocation16 + $0xdc] sm:$0xf0] }
 0x709   :  { %v9457_v1 = vld [vmem:[#allocation16 + $0xcc] sm:$0xf0] }
 0x70a   :  { %v7360_v51 = vor.u32 %v9457_v1, %v7359_v36  ;;  %v7753_v36 = vld [vmem:[#allocation16 + $0x3d8] sm:$0xf0]  ;;  %v7892_v1 = vor.u32 %v9571_v26, %v7889_v28  ;;  %v9460_v26 = vld [vmem:[#allocation16 + $0xe4] sm:$0xf0]  ;;  %v9668_v28 = vld [vmem:[#allocation16 + $0x76c] sm:$0xf] }
 0x70b   :  { %3422 = vmatpush.bf16.msrb.mxu2 %v7996_v32  ;;  %3436 = vmatpush.bf16.msrb.mxu3 %v8000_v43  ;;  %v9666_v32 = vld [vmem:[#allocation16 + $0x75c] sm:$0xf] }
 0x70c   :  { %3450 = vmatpush.bf16.msra.mxu0 %v8004_v49  ;;  %3464 = vmatpush.bf16.msra.mxu1 %v8008_v50  ;;  %v8265_v43 = vld [vmem:[#allocation16 + $0x7d8] sm:$0xf0]  ;;  %v9667_v49 = vld [vmem:[#allocation16 + $0x764] sm:$0xf]  ;;  %v7356_v50 = vor.u32 %v9440_v30, %v7353_v31 }
 0x70d   :  { %v9993_v30 = vld [vmem:[#allocation14] ss:$0 sm:$0xff] }
 0x70e   :  { %v9538_v31 = vld [vmem:[#allocation16 + $0x35c] sm:$0xf] }
 0x70f   :  { %3423 = vmatpush.bf16.msrb.mxu2 %v7868_v57  ;;  %3437 = vmatpush.bf16.msrb.mxu3 %v7872_v37  ;;  %v8268_v57 = vor.u32 %v9666_v32, %v8265_v43  ;;  %v8272_v37 = vor.u32 %v9683_v47, %v8271_v46  ;;  %v7761_v32 = vld [vmem:[#allocation16 + $0x3e0] sm:$0xf0]  ;;  %v7767_v43 = vld [vmem:[#allocation16 + $0x368] sm:$0xf]  ;;  %v9506_v47 = vld [vmem:[#allocation16 + $0x25c] sm:$0xf] }
 0x710   :  { %3451 = vmatpush.bf16.msra.mxu0 %v7876_v22  ;;  %3465 = vmatpush.bf16.msra.mxu1 %v7880_v59  ;;  %v8276_v22 = vor.u32 %v9667_v49, %v8273_v52  ;;  %v8280_v59 = vor.u32 %v9684_v54, %v8279_v53  ;;  %v9556_v46 = vld [vmem:[#allocation16 + $0x3e4] sm:$0xf0]  ;;  %v7625_v52 = vld [vmem:[#allocation16 + $0x2d8] sm:$0xf0]  ;;  %v7631_v53 = vld [vmem:[#allocation16 + $0x260] sm:$0xf]  ;;  %v7764_v54 = vor.u32 %v9539_v41, %v7761_v32 }
 0x713   :  { %3424 = vmatpush.bf16.msrb.mxu2 %v7740_v4  ;;  %3438 = vmatpush.bf16.msrb.mxu3 %v7744_v5  ;;  %v8140_v4 = vor.u32 %v9634_v58, %v8137_v11  ;;  %v8144_v5 = vor.u32 %v9651_v62, %v8143_v60  ;;  %v7639_v11 = vld [vmem:[#allocation16 + $0x268] sm:$0xf]  ;;  %v7628_v60 = vor.u32 %v9506_v47, %v7625_v52 }
 0x714   :  { %3452 = vmatpush.bf16.msra.mxu0 %v7748_v8  ;;  %3466 = vmatpush.bf16.msra.mxu1 %v7752_v9  ;;  %v8148_v8 = vor.u32 %v9635_v15, %v8145_v63  ;;  %v8152_v9 = vor.u32 %v9652_v2, %v8151_v0  ;;  %v9474_v15 = vld [vmem:[#allocation16 + $0x15c] sm:$0xf] }
 0x715   :  { %v7497_v63 = vld [vmem:[#allocation16 + $0x1d8] sm:$0xf0] }
 0x717   :  { %3425 = vmatpush.bf16.msrb.mxu2 %v7612_v17  ;;  %3439 = vmatpush.bf16.msrb.mxu3 %v7616_v18  ;;  %v8012_v17 = vor.u32 %v9602_v6, %v8009_v7  ;;  %v8016_v18 = vor.u32 %v9619_v27, %v8015_v10  ;;  %v9491_v6 = vld [vmem:[#allocation16 + $0x1dc] sm:$0xf0]  ;;  %v9475_v7 = vld [vmem:[#allocation16 + $0x164] sm:$0xf]  ;;  %v7511_v10 = vld [vmem:[#allocation16 + $0x168] sm:$0xf] }
 0x718   :  { %3453 = vmatpush.bf16.msra.mxu0 %v7620_v44  ;;  %3467 = vmatpush.bf16.msra.mxu1 %v7624_v23  ;;  %v7887_v44 = vld [vmem:[#allocation16 + $0x460] sm:$0xf]  ;;  %v8020_v23 = vor.u32 %v9603_v12, %v8017_v13  ;;  %v9492_v27 = vld [vmem:[#allocation16 + $0x1e4] sm:$0xf0]  ;;  %v9442_v12 = vld [vmem:[#allocation16 + $0x5c] sm:$0xf] }
 0x719   :  { %v7369_v13 = vld [vmem:[#allocation16 + $0xd8] sm:$0xf0] }
 0x71b   :  { %3426 = vmatpush.bf16.msrb.mxu2 %v7484_v33  ;;  %3440 = vmatpush.bf16.msrb.mxu3 %v7488_v35  ;;  %v7884_v33 = vor.u32 %v9570_v20, %v7881_v21  ;;  %v7888_v35 = vor.u32 %v9587_v24, %v7887_v44  ;;  %v9443_v21 = vld [vmem:[#allocation16 + $0x64] sm:$0xf]  ;;  %v7383_v24 = vld [vmem:[#allocation16 + $0x68] sm:$0xf] }
 0x71c   :  { %3454 = vmatpush.bf16.msra.mxu0 %v7492_v29  ;;  %3468 = vmatpush.bf16.msra.mxu1 %v7496_v16  ;;  %v7896_v29 = vor.u32 %v9588_v19, %v7895_v25  ;;  %v7377_v44 = vld [vmem:[#allocation16 + $0xe0] sm:$0xf0]  ;;  %v8281_v19 = vld [vmem:[#allocation16 + $0x7e8] sm:$0xf0]  ;;  %v7384_v32 = vor.u32 %v9460_v26, %v7383_v24  ;;  %v9573_v26 = vld [vmem:[#allocation16 + $0x474] sm:$0xf] }
 0x71d   :  { %v7380_v41 = vor.u32 %v9443_v21, %v7377_v44  ;;  %v9589_v21 = vld [vmem:[#allocation16 + $0x4ec] sm:$0xf0] }
 0x71f   :  { %3427 = vmatpush.bf16.msrb.mxu2 %v7356_v50  ;;  %3441 = vmatpush.bf16.msrb.mxu3 %v7360_v51  ;;  %v7756_v50 = vor.u32 %v9538_v31, %v7753_v36  ;;  %v7760_v51 = vor.u32 %v9555_v61, %v7759_v38  ;;  %v8289_v31 = vld [vmem:[#allocation16 + $0x7f0] sm:$0xf0]  ;;  %v8295_v38 = vld [vmem:[#allocation16 + $0x778] sm:$0xf] }
 0x720   :  { %3455 = vmatpush.bf16.msra.mxu0 %v7364_v55  ;;  %3469 = vmatpush.bf16.msra.mxu1 %v7368_v56  ;;  %v7768_v55 = vor.u32 %v9556_v46, %v7767_v43  ;;  %v9523_v56 = vld [vmem:[#allocation16 + $0x2dc] sm:$0xf0]  ;;  %v9686_v61 = vld [vmem:[#allocation16 + $0x7f4] sm:$0xf0]  ;;  %v8284_v46 = vor.u32 %v9668_v28, %v8281_v19 }
 0x721   :  { %v7632_v62 = vor.u32 %v9523_v56, %v7631_v53  ;;  %v8296_v53 = vor.u32 %v9686_v61, %v8295_v38  ;;  %v9637_v56 = vld [vmem:[#allocation16 + $0x674] sm:$0xf]  ;;  %v7911_v19 = vld [vmem:[#allocation16 + $0x478] sm:$0xf] }
 0x722   :  { %3428 = vmatmul.bf16.vlgmr.msrb.gmra.mxu2 %v10799_v40  ;;  %3442 = vmatmul.bf16.vlgmr.msrb.gmra.mxu3 %v10799_v40 }
 0x723   :  { %3476 = vmatpush.bf16.msra.mxu2 %v8268_v57  ;;  %3490 = vmatpush.bf16.msra.mxu3 %v8272_v37  ;;  %v9507_v57 = vld [vmem:[#allocation16 + $0x264] sm:$0xf] }
 0x724   :  { %3504 = vmatpush.bf16.msrb.mxu0 %v8276_v22  ;;  %3518 = vmatpush.bf16.msrb.mxu1 %v8280_v59  ;;  %v1329_v16 = vpop.f32.mrf.mxu2  ;;  %v7633_v37 = vld [vmem:[#allocation16 + $0x2e0] sm:$0xf0]  ;;  %v9524_v22 = vld [vmem:[#allocation16 + $0x2e4] sm:$0xf0] }
 0x725   :  { %3456 = vmatmul.bf16.vlgmr.msra.gmra.mxu0 %v10799_v40  ;;  %3470 = vmatmul.bf16.vlgmr.msra.gmra.mxu1 %v10799_v40  ;;  %v10825_v42 = vadd.f32 %v9993_v30, %v1329_v16  ;;  %v7636_v0 = vor.u32 %v9507_v57, %v7633_v37  ;;  %v7640_v2 = vor.u32 %v9524_v22, %v7639_v11  ;;  %v8161_v57 = vld [vmem:[#allocation16 + $0x6f0] sm:$0xf0]  ;;  %v8167_v37 = vld [vmem:[#allocation16 + $0x678] sm:$0xf]  ;;  %v9604_v11 = vld [vmem:[#allocation16 + $0x56c] sm:$0xf] }
 0x726   :  { %v7376_v16 = vor.u32 %v9459_v14, %v7375_v3  ;;  %v8025_v22 = vld [vmem:[#allocation16 + $0x5e8] sm:$0xf0] }
 0x727   :  { %3477 = vmatpush.bf16.msra.mxu2 %v8140_v4  ;;  %3491 = vmatpush.bf16.msra.mxu3 %v8144_v5  ;;  %v1336_v49 = vand.u32 2147483647, %v10825_v42  ;;  %v7503_v5 = vld [vmem:[#allocation16 + $0x160] sm:$0xf]  ;;  %v9572_v3 = vld [vmem:[#allocation16 + $0x46c] sm:$0xf] }
 0x728   :  { %3505 = vmatpush.bf16.msrb.mxu0 %v8148_v8  ;;  %3519 = vmatpush.bf16.msrb.mxu1 %v8152_v9  ;;  %v7505_v9 = vld [vmem:[#allocation16 + $0x1e0] sm:$0xf0]  ;;  %v7504_v20 = vor.u32 %v9491_v6, %v7503_v5  ;;  %v8033_v5 = vld [vmem:[#allocation16 + $0x5f0] sm:$0xf0]  ;;  %v7897_v14 = vld [vmem:[#allocation16 + $0x4e8] sm:$0xf0] }
 0x729   :  { %v1338_v58 = vsub.f32 0.0, %v1336_v49  ;;  %v9636_v49 = vld [vmem:[#allocation16 + $0x66c] sm:$0xf]  ;;  %v1334_v28 = vmax.f32 %v10825_v42, 0.0 }
 0x72b   :  { %3478 = vmatpush.bf16.msra.mxu2 %v8012_v17  ;;  %3492 = vmatpush.bf16.msra.mxu3 %v8016_v18  ;;  %v1340_v59 = vmul.f32 1.442695, %v1338_v58  ;;  %v7500_v18 = vor.u32 %v9474_v15, %v7497_v63  ;;  %v9654_v58 = vld [vmem:[#allocation16 + $0x6f4] sm:$0xf0]  ;;  %v9621_v15 = vld [vmem:[#allocation16 + $0x5ec] sm:$0xf0] }
 0x72c   :  { %3506 = vmatpush.bf16.msrb.mxu0 %v8020_v23  ;;  %3520 = vmatpush.bf16.msrb.mxu1 %v8024_v45  ;;  %v1331_v4 = vpop.f32.mrf.mxu2  ;;  %v7508_v23 = vor.u32 %v9475_v7, %v7505_v9  ;;  %v7512_v45 = vor.u32 %v9492_v27, %v7511_v10  ;;  %v8039_v9 = vld [vmem:[#allocation16 + $0x578] sm:$0xf] }
 0x72d   :  { %10036 = vpow2.f32 %v1340_v59  ;;  %v10828_v8 = vadd.f32 %v9993_v30, %v1331_v4  ;;  %v8287_v30 = vld [vmem:[#allocation16 + $0x770] sm:$0xf]  ;;  %v9605_v4 = vld [vmem:[#allocation16 + $0x574] sm:$0xf]  ;;  %v9622_v10 = vld [vmem:[#allocation16 + $0x5f4] sm:$0xf0] }
 0x72e   :  { %v8040_v24 = vor.u32 %v9622_v10, %v8039_v9  ;;  %v7513_v9 = vld [vmem:[#allocation16 + $0x1e8] sm:$0xf0] }
 0x72f   :  { %3479 = vmatpush.bf16.msra.mxu2 %v7884_v33  ;;  %3493 = vmatpush.bf16.msra.mxu3 %v7888_v35  ;;  %v1337_v17 = vand.u32 2147483647, %v10828_v8  ;;  %v9685_v33 = vld [vmem:[#allocation16 + $0x7ec] sm:$0xf0]  ;;  %v9669_v35 = vld [vmem:[#allocation16 + $0x774] sm:$0xf] }
 0x730   :  { %3507 = vmatpush.bf16.msrb.mxu0 %v7892_v1  ;;  %3521 = vmatpush.bf16.msrb.mxu1 %v7896_v29  ;;  %v7372_v29 = vor.u32 %v9442_v12, %v7369_v13  ;;  %v8288_v47 = vor.u32 %v9685_v33, %v8287_v30  ;;  %v8292_v52 = vor.u32 %v9669_v35, %v8289_v31  ;;  %v9590_v30 = vld [vmem:[#allocation16 + $0x4f4] sm:$0xf0]  ;;  %v9540_v35 = vld [vmem:[#allocation16 + $0x36c] sm:$0xf] }
 0x731   :  { %v1339_v25 = vsub.f32 0.0, %v1337_v17  ;;  %v8028_v12 = vor.u32 %v9604_v11, %v8025_v22  ;;  %v7903_v17 = vld [vmem:[#allocation16 + $0x470] sm:$0xf] }
 0x733   :  { %3480 = vmatpush.bf16.msra.mxu2 %v7756_v50  ;;  %3494 = vmatpush.bf16.msra.mxu3 %v7760_v51  ;;  %v10831_v36 = vpop.eup %10036  ;;  %v1342_v1 = vmul.f32 1.442695, %v1339_v25  ;;  %v8153_v50 = vld [vmem:[#allocation16 + $0x6e8] sm:$0xf0]  ;;  %v7905_v25 = vld [vmem:[#allocation16 + $0x4f0] sm:$0xf0] }
 0x734   :  { %3508 = vmatpush.bf16.msrb.mxu0 %v7764_v54  ;;  %3522 = vmatpush.bf16.msrb.mxu1 %v7768_v55  ;;  %v1344_v43 = vadd.f32 1.0, %v10831_v36  ;;  %v1347_v51 = vmul.f32 -0.5, %v10831_v36  ;;  %v8159_v54 = vld [vmem:[#allocation16 + $0x670] sm:$0xf]  ;;  %v8156_v59 = vor.u32 %v9636_v49, %v8153_v50  ;;  %v1350_v6 = vand.u32 2147483647, %v10831_v36 }
 0x735   :  { %10038 = vpow2.f32 %v1342_v1  ;;  %v9653_v55 = vld [vmem:[#allocation16 + $0x6ec] sm:$0xf0]  ;;  %v7900_v1 = vor.u32 %v9572_v3, %v7897_v14  ;;  %v7908_v61 = vor.u32 %v9573_v26, %v7905_v25  ;;  %v7783_v49 = vld [vmem:[#allocation16 + $0x378] sm:$0xf]  ;;  %v7521_v3 = vld [vmem:[#allocation16 + $0x1f0] sm:$0xf0] }
 0x736   :  { %10040 = vlog2.f32 %v1344_v43  ;;  %v1348_v63 = vadd.f32 1.0, %v1347_v51  ;;  %vm1351_vm9 = vcmp.lt.f32.partialorder %v1350_v6, 0.0004427343  ;;  %v9541_v43 = vld [vmem:[#allocation16 + $0x374] sm:$0xf] }
 0x737   :  { %3481 = vmatpush.bf16.msra.mxu2 %v7628_v60  ;;  %3495 = vmatpush.bf16.msra.mxu3 %v7632_v62  ;;  %v8160_v60 = vor.u32 %v9653_v55, %v8159_v54  ;;  %v8031_v62 = vld [vmem:[#allocation16 + $0x570] sm:$0xf]  ;;  %v9558_v50 = vld [vmem:[#allocation16 + $0x3f4] sm:$0xf0]  ;;  %v9476_v6 = vld [vmem:[#allocation16 + $0x16c] sm:$0xf] }
 0x738   :  { %3509 = vmatpush.bf16.msrb.mxu0 %v7636_v0  ;;  %3523 = vmatpush.bf16.msrb.mxu1 %v7640_v2  ;;  %v8164_v0 = vor.u32 %v9637_v56, %v8161_v57  ;;  %v8168_v2 = vor.u32 %v9654_v58, %v8167_v37  ;;  %v8032_v13 = vor.u32 %v9621_v15, %v8031_v62  ;;  %v7647_v56 = vld [vmem:[#allocation16 + $0x270] sm:$0xf]  ;;  %v7649_v62 = vld [vmem:[#allocation16 + $0x2f0] sm:$0xf0]  ;;  %v7655_v15 = vld [vmem:[#allocation16 + $0x278] sm:$0xf] }
 0x739   :  { %v9525_v57 = vld [vmem:[#allocation16 + $0x2ec] sm:$0xf0]  ;;  %v7784_v22 = vor.u32 %v9558_v50, %v7783_v49  ;;  %v7527_v14 = vld [vmem:[#allocation16 + $0x178] sm:$0xf]  ;;  %v7393_v25 = vld [vmem:[#allocation16 + $0xf0] sm:$0xf0] }
 0x73a   :  { %v9461_v26 = vld [vmem:[#allocation16 + $0xec] sm:$0xf0]  ;;  %v7913_v49 = vld [vmem:[#allocation16 + $0x4f8] sm:$0xf0] }
 0x73b   :  { %3482 = vmatpush.bf16.msra.mxu2 %v7500_v18  ;;  %3496 = vmatpush.bf16.msra.mxu3 %v7504_v20  ;;  %v10836_v7 = vpop.eup %10038  ;;  %v8036_v20 = vor.u32 %v9605_v4, %v8033_v5  ;;  %v7648_v5 = vor.u32 %v9525_v57, %v7647_v56  ;;  %v9478_v57 = vld [vmem:[#allocation16 + $0x17c] sm:$0xf] }
 0x73c   :  { %3510 = vmatpush.bf16.msrb.mxu0 %v7508_v23  ;;  %3524 = vmatpush.bf16.msrb.mxu1 %v7512_v45  ;;  %v10041_v27 = vpop.eup %10040  ;;  %v1353_v18 = vadd.f32 1.0, %v10836_v7  ;;  %v1349_v23 = vmul.f32 %v10831_v36, %v1348_v63  ;;  %v1356_v45 = vmul.f32 -0.5, %v10836_v7  ;;  %v7904_v36 = vor.u32 %v9589_v21, %v7903_v17  ;;  %v9526_v63 = vld [vmem:[#allocation16 + $0x2f4] sm:$0xf0]  ;;  %v9444_v21 = vld [vmem:[#allocation16 + $0x6c] sm:$0xf] }
 0x73d   :  { %v1346_v44 = vmul.f32 0.6931472, %v10041_v27  ;;  %v7656_v10 = vor.u32 %v9526_v63, %v7655_v15  ;;  %v7519_v27 = vld [vmem:[#allocation16 + $0x170] sm:$0xf]  ;;  %v9494_v17 = vld [vmem:[#allocation16 + $0x1f4] sm:$0xf0] }
 0x73e   :  { %10042 = vlog2.f32 %v1353_v18  ;;  %v1357_v38 = vadd.f32 1.0, %v1356_v45  ;;  %v7516_v18 = vor.u32 %v9476_v6, %v7513_v9  ;;  %v7528_v45 = vor.u32 %v9494_v17, %v7527_v14 }
 0x73f   :  { %3483 = vmatpush.bf16.msra.mxu2 %v7372_v29  ;;  %3497 = vmatpush.bf16.msra.mxu3 %v7376_v16  ;;  %v1352_v33 = vsel %vm1351_vm9, %v1349_v23, %v1346_v44  ;;  %v7769_v29 = vld [vmem:[#allocation16 + $0x3e8] sm:$0xf0]  ;;  %v7775_v16 = vld [vmem:[#allocation16 + $0x370] sm:$0xf] }
 0x740   :  { %3511 = vmatpush.bf16.msrb.mxu0 %v7380_v41  ;;  %3525 = vmatpush.bf16.msrb.mxu1 %v7384_v32  ;;  %v1362_v31 = vadd.f32 %v1352_v33, %v1334_v28  ;;  %v7912_v41 = vor.u32 %v9590_v30, %v7911_v19  ;;  %v9557_v32 = vld [vmem:[#allocation16 + $0x3ec] sm:$0xf0]  ;;  %v7772_v54 = vor.u32 %v9540_v35, %v7769_v29  ;;  %v7385_v44 = vld [vmem:[#allocation16 + $0xe8] sm:$0xf0]  ;;  %v9445_v28 = vld [vmem:[#allocation16 + $0x74] sm:$0xf] }
 0x741   :  { %v7776_v55 = vor.u32 %v9557_v32, %v7775_v16  ;;  %v1358_v58 = vmul.f32 %v10836_v7, %v1357_v38  ;;  %v7399_v19 = vld [vmem:[#allocation16 + $0x78] sm:$0xf]  ;;  %v9670_v33 = vld [vmem:[#allocation16 + $0x77c] sm:$0xf] }
 0x742   :  { %3484 = vmatmul.bf16.vlgmr.msra.gmra.mxu2 %v10799_v40  ;;  %3498 = vmatmul.bf16.vlgmr.msra.gmra.mxu3 %v10799_v40  ;;  %v9462_v30 = vld [vmem:[#allocation16 + $0xf4] sm:$0xf0]  ;;  %v8297_v35 = vld [vmem:[#allocation16 + $0x7f8] sm:$0xf0] }
 0x743   :  { %3532 = vmatpush.bf16.msrb.mxu2 %v8284_v46  ;;  %3546 = vmatpush.bf16.msrb.mxu3 %v8288_v47  ;;  %v1359_v46 = vand.u32 2147483647, %v10836_v7  ;;  %v7777_v47 = vld [vmem:[#allocation16 + $0x3f0] sm:$0xf0]  ;;  %v7400_v29 = vor.u32 %v9462_v30, %v7399_v19  ;;  %v8300_v16 = vor.u32 %v9670_v33, %v8297_v35  ;;  %v9638_v38 = vld [vmem:[#allocation16 + $0x67c] sm:$0xf] }
 0x744   :  { %3560 = vmatpush.bf16.msra.mxu0 %v8292_v52  ;;  %3574 = vmatpush.bf16.msra.mxu1 %v8296_v53  ;;  %v10043_v51 = vpop.eup %10042  ;;  %v9508_v52 = vld [vmem:[#allocation16 + $0x26c] sm:$0xf]  ;;  %v7780_v11 = vor.u32 %v9541_v43, %v7777_v47  ;;  %v9606_v32 = vld [vmem:[#allocation16 + $0x57c] sm:$0xf] }
 0x745   :  { %3512 = vmatmul.bf16.vlgmr.msrb.gmra.mxu0 %v10799_v40  ;;  %3526 = vmatmul.bf16.vlgmr.msrb.gmra.mxu1 %v10799_v40  ;;  %v7641_v53 = vld [vmem:[#allocation16 + $0x2e8] sm:$0xf0]  ;;  %v1355_v37 = vmul.f32 0.6931472, %v10043_v51  ;;  %vm1360_vm11 = vcmp.lt.f32.partialorder %v1359_v46, 0.0004427343 }
 0x746   :  { %1366 = vrot.lane.b32.xlu0 %v1362_v31, %s10412_s9  ;;  %v7644_v4 = vor.u32 %v9508_v52, %v7641_v53  ;;  %v7388_v31 = vor.u32 %v9444_v21, %v7385_v44  ;;  %v8041_v43 = vld [vmem:[#allocation16 + $0x5f8] sm:$0xf0] }
 0x747   :  { %3533 = vmatpush.bf16.msrb.mxu2 %v8156_v59  ;;  %3547 = vmatpush.bf16.msrb.mxu3 %v8160_v60  ;;  %v9509_v59 = vld [vmem:[#allocation16 + $0x274] sm:$0xf]  ;;  %v1335_v60 = vmax.f32 %v10828_v8, 0.0  ;;  %v8044_v46 = vor.u32 %v9606_v32, %v8041_v43  ;;  %v9574_v47 = vld [vmem:[#allocation16 + $0x47c] sm:$0xf] }
 0x748   :  { %3561 = vmatpush.bf16.msra.mxu0 %v8164_v0  ;;  %3575 = vmatpush.bf16.msra.mxu1 %v8168_v2  ;;  %v1361_v0 = vsel %vm1360_vm11, %v1358_v58, %v1355_v37  ;;  %v7652_v7 = vor.u32 %v9509_v59, %v7649_v62  ;;  %v7916_v50 = vor.u32 %v9574_v47, %v7913_v49  ;;  %v9542_v51 = vld [vmem:[#allocation16 + $0x37c] sm:$0xf] }
 0x749   :  { %v1363_v2 = vadd.f32 %v1361_v0, %v1335_v60  ;;  %v7785_v52 = vld [vmem:[#allocation16 + $0x3f8] sm:$0xf0]  ;;  %v228_v60 = vld [vmem:[#allocation2] sm:$0xff] }
 0x74a   :  { %v7788_v53 = vor.u32 %v9542_v51, %v7785_v52  ;;  %v7529_v37 = vld [vmem:[#allocation16 + $0x1f8] sm:$0xf0] }
 0x74b   :  { %3534 = vmatpush.bf16.msrb.mxu2 %v8028_v12  ;;  %3548 = vmatpush.bf16.msrb.mxu3 %v8032_v13  ;;  %v9493_v12 = vld [vmem:[#allocation16 + $0x1ec] sm:$0xf0]  ;;  %v9477_v13 = vld [vmem:[#allocation16 + $0x174] sm:$0xf]  ;;  %v7532_v58 = vor.u32 %v9478_v57, %v7529_v37  ;;  %v7275_v57 = vmul.f32 -1.442695, %v10825_v42 }
 0x74c   :  { %3562 = vmatpush.bf16.msra.mxu0 %v8036_v20  ;;  %3576 = vmatpush.bf16.msra.mxu1 %v8040_v24  ;;  %v7520_v20 = vor.u32 %v9493_v12, %v7519_v27  ;;  %v7524_v23 = vor.u32 %v9477_v13, %v7521_v3  ;;  %v7391_v24 = vld [vmem:[#allocation16 + $0x70] sm:$0xf] }
 0x74d   :  { %10044 = vpow2.f32 %v7275_v57  ;;  %v3668_v57 = vld [vmem:[#allocation20 + $0x10] sm:$0xff] }
 0x74e   :  { %1368 = vrot.lane.b32.xlu0 %v1363_v2, %s10412_s9  ;;  %v229_v2 = vld [vmem:[#allocation2 + $0x8] sm:$0xff] }
 0x74f   :  { %3535 = vmatpush.bf16.msrb.mxu2 %v7900_v1  ;;  %3549 = vmatpush.bf16.msrb.mxu3 %v7904_v36  ;;  %v7392_v1 = vor.u32 %v9461_v26, %v7391_v24  ;;  %v7396_v36 = vor.u32 %v9445_v28, %v7393_v25 }
 0x750   :  { %3563 = vmatpush.bf16.msra.mxu0 %v7908_v61  ;;  %3577 = vmatpush.bf16.msra.mxu1 %v7912_v41  ;;  %v8169_v61 = vld [vmem:[#allocation16 + $0x6f8] sm:$0xf0] }
 0x751   :  { %v8172_v41 = vor.u32 %v9638_v38, %v8169_v61 }
 0x753   :  { %3536 = vmatpush.bf16.msrb.mxu2 %v7772_v54  ;;  %3550 = vmatpush.bf16.msrb.mxu3 %v7776_v55  ;;  %v9510_v54 = vld [vmem:[#allocation16 + $0x27c] sm:$0xf]  ;;  %v10045_v37 = vpop.eup %10044 }
 0x754   :  { %3564 = vmatpush.bf16.msra.mxu0 %v7780_v11  ;;  %3578 = vmatpush.bf16.msra.mxu1 %v7784_v22  ;;  %v7657_v55 = vld [vmem:[#allocation16 + $0x2f8] sm:$0xf0] }
 0x755   :  { %v7660_v56 = vor.u32 %v9510_v54, %v7657_v55  ;;  %v9446_v11 = vld [vmem:[#allocation16 + $0x7c] sm:$0xf] }
 0x756   :  { %v7401_v22 = vld [vmem:[#allocation16 + $0xf8] sm:$0xf0] }
 0x757   :  { %3537 = vmatpush.bf16.msrb.mxu2 %v7644_v4  ;;  %3551 = vmatpush.bf16.msrb.mxu3 %v7648_v5  ;;  %v7404_v59 = vor.u32 %v9446_v11, %v7401_v22 }
 0x758   :  { %3565 = vmatpush.bf16.msra.mxu0 %v7652_v7  ;;  %3579 = vmatpush.bf16.msra.mxu1 %v7656_v10 }
 0x75b   :  { %3538 = vmatpush.bf16.msrb.mxu2 %v7516_v18  ;;  %3552 = vmatpush.bf16.msrb.mxu3 %v7520_v20 }
 0x75c   :  { %3566 = vmatpush.bf16.msra.mxu0 %v7524_v23  ;;  %3580 = vmatpush.bf16.msra.mxu1 %v7528_v45 }
 0x75f   :  { %3539 = vmatpush.bf16.msrb.mxu2 %v7388_v31  ;;  %3553 = vmatpush.bf16.msrb.mxu3 %v7392_v1 }
 0x760   :  { %3567 = vmatpush.bf16.msra.mxu0 %v7396_v36  ;;  %3581 = vmatpush.bf16.msra.mxu1 %v7400_v29 }
 0x762   :  { %3540 = vmatmul.bf16.vlgmr.msrb.gmra.mxu2 %v10799_v40  ;;  %3554 = vmatmul.bf16.vlgmr.msrb.gmra.mxu3 %v10799_v40 }
 0x763   :  { %3588 = vmatpush.bf16.msra.mxu2 %v8300_v16  ;;  %3568 = vmatmul.bf16.vlgmr.msra.gmra.mxu0 %v10799_v40 }
 0x764   :  { %3582 = vmatmul.bf16.vlgmr.msra.gmra.mxu1 %v10799_v40 }
 0x767   :  { %3589 = vmatpush.bf16.msra.mxu2 %v8172_v41 }
 0x76b   :  { %3590 = vmatpush.bf16.msra.mxu2 %v8044_v46 }
 0x76f   :  { %3591 = vmatpush.bf16.msra.mxu2 %v7916_v50 }
 0x773   :  { %3592 = vmatpush.bf16.msra.mxu2 %v7788_v53 }
 0x777   :  { %3593 = vmatpush.bf16.msra.mxu2 %v7660_v56  ;;  %v10413_v56 = vmov 16  }
 0x778   :  { %9985 = vset.pattern.permute.xlu2 %v10413_v56  ;;  %9986 = vset.pattern.permute.xlu1 %v10413_v56 }
 0x779   :  { %9987 = vset.pattern.permute.xlu0 %v10413_v56  ;;  %v10922_v56 = vpop.f32.mrf.mxu0 }
 0x77b   :  { %3594 = vmatpush.bf16.msra.mxu2 %v7532_v58  ;;  %v1514_v58 = vadd.f32 1.0, %v10045_v37  ;;  %v3671_v37 = vld [vmem:[#allocation20 + $0x28] sm:$0xff] }
 0x77d   :  { %10046 = vrcp.f32 %v1514_v58  ;;  %vm1521_vm5 = vweird.f32 %v1514_v58 }
 0x77f   :  { %3595 = vmatpush.bf16.msra.mxu2 %v7404_v59 }
 0x782   :  { %3596 = vmatmul.bf16.vlgmr.msra.gmra.mxu2 %v10799_v40 }
 0x7b8   :  { %v1367_v62 = vpop.permute.xlu0 %1366 }
 0x7b9   :  { %v1372_v15 = vmul.f32 %v1367_v62, %v228_v60 }
 0x7bb   :  { %v10857_v63 = vadd.f32 %v1372_v15, %v10825_v42  ;;  %v10047_v15 = vpop.eup %10046 }
 0x7bc   :  { %vm1522_vm4 = vweird.f32 %v10047_v15 }
 0x7bd   :  { %v1376_v0 = vsel %vm548_vm10, %v10857_v63, -inf  ;;  %vm1523_vm6 = vmor %vm1521_vm5, %vm1522_vm4 }
 0x7be   :  { %1377 = vmax.xlane.f32.xlu2 %v1376_v0 }
 0x7c0   :  { %v1369_v4 = vpop.permute.xlu0 %1368 }
 0x7c1   :  { %v1373_v5 = vmul.f32 %v1369_v4, %v229_v2  ;;  %v1517_v4 = vmul.f32 %v10047_v15, %v1514_v58 }
 0x7c3   :  { %v10862_v6 = vadd.f32 %v1373_v5, %v10828_v8 }
 0x7c5   :  { %v1379_v9 = vsel %vm548_vm10, %v10862_v6, -inf }
 0x7c6   :  { %1380 = vmax.xlane.f32.xlu1 %v1379_v9  ;;  %v1518_v9 = vsub.f32 1.0, %v1517_v4 }
 0x7c8   :  { %v1519_v42 = vmul.f32 %v10047_v15, %v1518_v9 }
 0x831   :  { %v10866_v40 = vpop.xlane.xlu2 %1377 }
 0x832   :  { %vm1382_vm12 = vcmp.eq.f32.partialorder %v10857_v63, %v10866_v40 }
 0x833   :  { %v1384_v7 = vsel %vm1382_vm12, %v10597_v34, 8 }
 0x834   :  { %v1386_v10 = vsel %vm548_vm10, %v1384_v7, 2147483647  ;;  %v1520_v7 = vadd.f32 %v10047_v15, %v1519_v42  ;;  %v10930_v42 = vpop.f32.mrf.mxu2 }
 0x835   :  { %v1388_v27 = vshra.s32 %v1386_v10, 16  ;;  %v1387_v20 = vand.u32 65535, %v1386_v10  ;;  %v1527_v10 = vand.u32 2147483648, %v1514_v58 }
 0x837   :  { %v1390_v12 = vcvt.s32.f32 %v1388_v27  ;;  %v1389_v44 = vcvt.s32.f32 %v1387_v20  ;;  %v1525_v27 = vand.u32 2147483647, %v1514_v58  ;;  %v7276_v20 = vmul.f32 -1.442695, %v10828_v8  ;;  %v3674_v58 = vld [vmem:[#allocation20 + $0x40] sm:$0xff] }
 0x839   :  { %1391 = vmin.xlane.f32.xlu0 %v1390_v12  ;;  %v10872_v13 = vpop.xlane.xlu1 %1380  ;;  %vm1526_vm9 = vcmp.eq.f32.partialorder %v1525_v27, 8.507059e+37  ;;  %10048 = vpow2.f32 %v7276_v20  ;;  %v10932_v27 = vpop.f32.mrf.mxu1 }
 0x83a   :  { %vm1383_vm8 = vcmp.eq.f32.partialorder %v10862_v6, %v10872_v13 }
 0x83b   :  { %v1385_v3 = vsel %vm1383_vm8, %v10597_v34, 8 }
 0x83c   :  { %v1401_v14 = vsel %vm548_vm10, %v1385_v3, 2147483647  ;;  %v1528_v3 = vor.u32 1.1754944e-38, %v1527_v10 }
 0x83d   :  { %v1403_v17 = vshra.s32 %v1401_v14, 16  ;;  %v1402_v45 = vand.u32 65535, %v1401_v14 }
 0x83f   :  { %v1405_v18 = vcvt.s32.f32 %v1403_v17  ;;  %v1404_v26 = vcvt.s32.f32 %v1402_v45  ;;  %v10414_v17 = vmov 0  }
 0x841   :  { %1406 = vmin.xlane.f32.xlu2 %v1405_v18 }
 0x8ac   :  { %v1392_v21 = vpop.xlane.xlu0 %1391 }
 0x8ad   :  { %vm1393_vm13 = vcmp.eq.f32.partialorder %v1390_v12, %v1392_v21  ;;  %v1398_v25 = vcvt.f32.s32 %v1392_v21  ;;  %v1524_v12 = vsel %vm1523_vm6, %v10047_v15, %v1520_v7  ;;  %v10049_v21 = vpop.eup %10048 }
 0x8ae   :  { %v1394_v23 = vsel %vm1393_vm13, %v1389_v44, inf  ;;  %v1529_v14 = vsel %vm1526_vm9, %v1528_v3, %v1524_v12  ;;  %v1464_v44 = vsub.f32 %v10857_v63, %v10866_v40 }
 0x8af   :  { %1395 = vmin.xlane.f32.xlu1 %v1394_v23  ;;  %v1399_v30 = vshll.u32 %v1398_v25, 16  ;;  %vm7056_vm11 = vcmp.gt.f32.partialorder %v1529_v14, 0.5  ;;  %v1515_v23 = vadd.f32 1.0, %v10049_v21 }
 0x8b0   :  { %v1466_v45 = vmul.f32 1.442695, %v1464_v44  ;;  %v3673_v44 = vld [vmem:[#allocation20 + $0x38] sm:$0xff] }
 0x8b1   :  { %10050 = vrcp.f32 %v1515_v23 }
 0x8b2   :  { %10052 = vpow2.f32 %v1466_v45  ;;  %v3672_v45 = vld [vmem:[#allocation20 + $0x30] sm:$0xff] }
 0x8b4   :  { %v1407_v24 = vpop.xlane.xlu2 %1406 }
 0x8b5   :  { %vm1408_vm14 = vcmp.eq.f32.partialorder %v1405_v18, %v1407_v24  ;;  %v1413_v31 = vcvt.f32.s32 %v1407_v24  ;;  %v7060_v18 = vsel %vm7056_vm11, 1, %v10414_v17 }
 0x8b6   :  { %v1409_v28 = vsel %vm1408_vm14, %v1404_v26, inf  ;;  %v1465_v26 = vsub.f32 %v10862_v6, %v10872_v13 }
 0x8b7   :  { %1410 = vmin.xlane.f32.xlu2 %v1409_v28  ;;  %v1414_v16 = vshll.u32 %v1413_v31, 16  ;;  %v10051_v31 = vpop.eup %10050 }
 0x8b8   :  { %v1532_v13 = vmul.f32 %v10051_v31, %v1515_v23 }
 0x922   :  { %v1396_v19 = vpop.xlane.xlu1 %1395 }
 0x923   :  { %v1397_v33 = vcvt.f32.s32 %v1396_v19 }
 0x925   :  { %v10878_v35 = vadd.s32 %v1399_v30, %v1397_v33  ;;  %v1468_v33 = vmul.f32 1.442695, %v1465_v26 }
 0x927   :  { %vm1416_vm15 = vcmp.eq.s32.totalorder %v10597_v34, %v10878_v35  ;;  %10054 = vpow2.f32 %v1468_v33 }
 0x928   :  { %v1418_v1 = vsel %vm1416_vm15, -inf, %v10857_v63 }
 0x929   :  { %v1420_v36 = vsel %vm548_vm10, %v1418_v1, -inf }
 0x92a   :  { %v1411_v29 = vpop.xlane.xlu2 %1410  ;;  %1421 = vmax.xlane.f32.xlu1 %v1420_v36 }
 0x92b   :  { %v1412_v38 = vcvt.f32.s32 %v1411_v29 }
 0x92d   :  { %v10887_v61 = vadd.s32 %v1414_v16, %v1412_v38  ;;  %v1533_v38 = vsub.f32 1.0, %v1532_v13  ;;  %v3677_v13 = vld [vmem:[#allocation20 + $0x58] sm:$0xff] }
 0x92f   :  { %vm1417_vm0 = vcmp.eq.s32.totalorder %v10597_v34, %v10887_v61  ;;  %v3666_v61 = vld [vmem:[#allocation20] sm:$0xff] }
 0x930   :  { %v1419_v41 = vsel %vm1417_vm0, -inf, %v10862_v6  ;;  %3719 = vmatpush.msra.mxu3 %v3666_v61  ;;  %v3686_v61 = vld [vmem:[#allocation20 + $0xa0] sm:$0xff] }
 0x931   :  { %v1423_v32 = vsel %vm548_vm10, %v1419_v41, -inf }
 0x932   :  { %1424 = vmax.xlane.f32.xlu2 %v1423_v32  ;;  %3765 = vmatpush.msrb.mxu3 %v3668_v57  ;;  %v3685_v57 = vld [vmem:[#allocation20 + $0x98] sm:$0xff] }
 0x99d   :  { %v1422_v43 = vpop.xlane.xlu1 %1421 }
 0x99e   :  { %vm1426_vm1 = vcmp.eq.f32.partialorder %v1418_v1, %v1422_v43  ;;  %v10053_v1 = vpop.eup %10052  ;;  %v1534_v43 = vmul.f32 %v10051_v31, %v1533_v38  ;;  %v3676_v38 = vld [vmem:[#allocation20 + $0x50] sm:$0xff] }
 0x99f   :  { %v1428_v46 = vsel %vm1426_vm1, %v10597_v34, 8  ;;  %vm1536_vm1 = vweird.f32 %v1515_v23 }
 0x9a0   :  { %v1430_v47 = vsel %vm548_vm10, %v1428_v46, 2147483647  ;;  %v1535_v46 = vadd.f32 %v10051_v31, %v1534_v43 }
 0x9a1   :  { %v1432_v49 = vshra.s32 %v1430_v47, 16  ;;  %v1431_v11 = vand.u32 65535, %v1430_v47  ;;  %v1542_v47 = vand.u32 2147483648, %v1515_v23 }
 0x9a3   :  { %v1434_v50 = vcvt.s32.f32 %v1432_v49  ;;  %v1433_v59 = vcvt.s32.f32 %v1431_v11  ;;  %v1540_v49 = vand.u32 2147483647, %v1515_v23 }
 0x9a5   :  { %v1425_v51 = vpop.xlane.xlu2 %1424  ;;  %1435 = vmin.xlane.f32.xlu1 %v1434_v50 }
 0x9a6   :  { %vm1427_vm7 = vcmp.eq.f32.partialorder %v1419_v41, %v1425_v51  ;;  %v10055_v41 = vpop.eup %10054  ;;  %v1543_v51 = vor.u32 1.1754944e-38, %v1542_v47  ;;  %v3681_v47 = vld [vmem:[#allocation20 + $0x78] sm:$0xff] }
 0x9a7   :  { %v1429_v52 = vsel %vm1427_vm7, %v10597_v34, 8 }
 0x9a8   :  { %v1445_v53 = vsel %vm548_vm10, %v1429_v52, 2147483647 }
 0x9a9   :  { %v1447_v54 = vshra.s32 %v1445_v53, 16  ;;  %v1446_v62 = vand.u32 65535, %v1445_v53  ;;  %v3667_v53 = vld [vmem:[#allocation20 + $0x8] sm:$0xff] }
 0x9aa   :  { %3742 = vmatpush.msrb.mxu0 %v3667_v53  ;;  %9943 = vmatpush.msrb.mxu2 %v3667_v53 }
 0x9ab   :  { %v1449_v55 = vcvt.s32.f32 %v1447_v54  ;;  %v1448_v2 = vcvt.s32.f32 %v1446_v62  ;;  %v3670_v54 = vld [vmem:[#allocation20 + $0x20] sm:$0xff] }
 0x9ac   :  { %3811 = vmatpush.msrb.mxu1 %v3670_v54  ;;  %3834 = vmatpush.msra.mxu2 %v3671_v37 }
 0x9ad   :  { %1450 = vmin.xlane.f32.xlu2 %v1449_v55 }
 0x9ae   :  { %3903 = vmatpush.msra.mxu1 %v3674_v58 }
 0xa18   :  { %v1436_v22 = vpop.xlane.xlu1 %1435 }
 0xa19   :  { %vm1437_vm2 = vcmp.eq.f32.partialorder %v1434_v50, %v1436_v22  ;;  %v1442_v24 = vcvt.f32.s32 %v1436_v22  ;;  %v10924_v22 = vpop.f32.mrf.mxu3 }
 0xa1a   :  { %v1438_v60 = vsel %vm1437_vm2, %v1433_v59, inf  ;;  %vm1541_vm2 = vcmp.eq.f32.partialorder %v1540_v49, 8.507059e+37 }
 0xa1b   :  { %1439 = vmin.xlane.f32.xlu1 %v1438_v60  ;;  %v1443_v25 = vshll.u32 %v1442_v24, 16  ;;  %v10926_v60 = vpop.f32.mrf.mxu0  ;;  %v3678_v24 = vld [vmem:[#allocation20 + $0x60] sm:$0xff] }
 0xa20   :  { %v1451_v0 = vpop.xlane.xlu2 %1450 }
 0xa21   :  { %vm1452_vm3 = vcmp.eq.f32.partialorder %v1449_v55, %v1451_v0  ;;  %v1457_v8 = vcvt.f32.s32 %v1451_v0  ;;  %v3669_v55 = vld [vmem:[#allocation20 + $0x18] sm:$0xff]  ;;  %v10928_v9 = vpop.f32.mrf.mxu3 }
 0xa22   :  { %v1453_v5 = vsel %vm1452_vm3, %v1448_v2, inf  ;;  %3788 = vmatpush.msra.mxu0 %v3669_v55 }
 0xa23   :  { %1454 = vmin.xlane.f32.xlu2 %v1453_v5  ;;  %v1458_v36 = vshll.u32 %v1457_v8, 16  ;;  %v10949_v8 = vpop.f32.mrf.mxu1 }
 0xa3b   :  { %7063 = vperm.xlu2 %9985, %v7060_v18  }
 0xa8e   :  { %v1440_v28 = vpop.xlane.xlu1 %1439 }
 0xa8f   :  { %v1441_v19 = vcvt.f32.s32 %v1440_v28 }
 0xa91   :  { %v1444_v30 = vadd.s32 %v1443_v25, %v1441_v19  ;;  %v10945_v19 = vpop.f32.mrf.mxu3 }
 0xa93   :  { %vm1460_vm12 = vcmp.eq.s32.totalorder %v10597_v34, %v1444_v30  ;;  %v10947_v30 = vpop.f32.mrf.mxu2 }
 0xa94   :  { %vm1462_vm8 = vmor %vm1416_vm15, %vm1460_vm12  ;;  %vm1537_vm15 = vweird.f32 %v10051_v31 }
 0xa95   :  { %v10910_v63 = vsel %vm1462_vm8, %v10053_v1, 0.0  ;;  %vm1538_vm7 = vmor %vm1536_vm1, %vm1537_vm15 }
 0xa96   :  { %v1455_v40 = vpop.xlane.xlu2 %1454  ;;  %v1472_v6 = vsel %vm548_vm10, %v10910_v63, 0.0  ;;  %v1539_v50 = vsel %vm1538_vm7, %v10051_v31, %v1535_v46 }
 0xa97   :  { %v1456_v29 = vcvt.f32.s32 %v1455_v40  ;;  %1473 = vadd.xlane.f32.xlu1 %v1472_v6  ;;  %v1544_v52 = vsel %vm1541_vm2, %v1543_v51, %v1539_v50  ;;  %v3675_v6 = vld [vmem:[#allocation20 + $0x48] sm:$0xff] }
 0xa98   :  { %vm7057_vm3 = vcmp.gt.f32.partialorder %v1544_v52, 0.5  ;;  %v3680_v52 = vld [vmem:[#allocation20 + $0x70] sm:$0xff] }
 0xa99   :  { %v1459_v16 = vadd.s32 %v1458_v36, %v1456_v29  ;;  %v10964_v36 = vpop.f32.mrf.mxu3 }
 0xa9b   :  { %vm1461_vm13 = vcmp.eq.s32.totalorder %v10597_v34, %v1459_v16  ;;  %v7061_v34 = vsel %vm7057_vm3, 1, %v10414_v17  ;;  %v10934_v17 = vpop.f32.mrf.mxu0  ;;  %v10966_v29 = vpop.f32.mrf.mxu2 }
 0xa9c   :  { %vm1463_vm14 = vmor %vm1417_vm0, %vm1461_vm13  ;;  %v10968_v16 = vpop.f32.mrf.mxu1 }
 0xa9d   :  { %v10918_v35 = vsel %vm1463_vm14, %v10055_v41, 0.0  ;;  %v3679_v41 = vld [vmem:[#allocation20 + $0x68] sm:$0xff] }
 0xa9e   :  { %v1475_v32 = vsel %vm548_vm10, %v10918_v35, 0.0 }
 0xa9f   :  { %1476 = vadd.xlane.f32.xlu0 %v1475_v32 }
 0xaa1   :  { %v10980_v43 = vpop.f32.mrf.mxu3 }
 0xaa3   :  { %v10954_v40 = vpop.f32.mrf.mxu0  ;;  %v10982_v46 = vpop.f32.mrf.mxu2 }
 0xaa4   :  { %v10988_v49 = vpop.f32.mrf.mxu1 }
 0xaa9   :  { %v11002_v53 = vpop.f32.mrf.mxu3 }
 0xaab   :  { %v10974_v32 = vpop.f32.mrf.mxu0  ;;  %v10996_v51 = vpop.f32.mrf.mxu2 }
 0xaac   :  { %v11008_v54 = vpop.f32.mrf.mxu1 }
 0xab0   :  { %7066 = vperm.xlu1 %9986, %v7061_v34   ;;  %v3683_v34 = vld [vmem:[#allocation20 + $0x88] sm:$0xff] }
 0xab1   :  { %v11016_v37 = vpop.f32.mrf.mxu3 }
 0xab3   :  { %v10994_v50 = vpop.f32.mrf.mxu0  ;;  %v11018_v58 = vpop.f32.mrf.mxu2 }
 0xabb   :  { %v11010_v55 = vpop.f32.mrf.mxu0 }
 0xb0a   :  { %v1474_v11 = vpop.xlane.xlu1 %1473 }
 0xb0b   :  { %10056 = vrcp.f32 %v1474_v11  ;;  %v1489_v2 = vand.u32 2147483648, %v1474_v11  ;;  %v1487_v5 = vand.u32 2147483647, %v1474_v11  ;;  %vm1483_vm4 = vweird.f32 %v1474_v11 }
 0xb0d   :  { %v1490_v12 = vor.u32 1.1754944e-38, %v1489_v2  ;;  %vm1488_vm6 = vcmp.eq.f32.partialorder %v1487_v5, 8.507059e+37  ;;  %v11032_v2 = vpop.f32.mrf.mxu2 }
 0xb11   :  { %v10057_v59 = vpop.eup %10056 }
 0xb12   :  { %v1479_v62 = vmul.f32 %v10057_v59, %v1474_v11  ;;  %v1477_v15 = vpop.xlane.xlu0 %1476  ;;  %vm1484_vm0 = vweird.f32 %v10057_v59  ;;  %v11024_v11 = vpop.f32.mrf.mxu1 }
 0xb13   :  { %10058 = vrcp.f32 %v1477_v15  ;;  %vm1485_vm5 = vmor %vm1483_vm4, %vm1484_vm0  ;;  %v1504_v23 = vand.u32 2147483648, %v1477_v15  ;;  %v1502_v28 = vand.u32 2147483647, %v1477_v15  ;;  %vm1498_vm11 = vweird.f32 %v1477_v15 }
 0xb14   :  { %v1480_v0 = vsub.f32 1.0, %v1479_v62  ;;  %v3684_v62 = vld [vmem:[#allocation20 + $0x90] sm:$0xff] }
 0xb15   :  { %v1505_v33 = vor.u32 1.1754944e-38, %v1504_v23  ;;  %vm1503_vm8 = vcmp.eq.f32.partialorder %v1502_v28, 8.507059e+37  ;;  %v3688_v23 = vld [vmem:[#allocation20 + $0xb0] sm:$0xff] }
 0xb16   :  { %v1481_v4 = vmul.f32 %v10057_v59, %v1480_v0  ;;  %v3690_v0 = vld [vmem:[#allocation20 + $0xc0] sm:$0xff] }
 0xb18   :  { %v1482_v7 = vadd.f32 %v10057_v59, %v1481_v4  ;;  %v11038_v4 = vpop.f32.mrf.mxu3 }
 0xb19   :  { %v10059_v10 = vpop.eup %10058 }
 0xb1a   :  { %v1486_v3 = vsel %vm1485_vm5, %v10057_v59, %v1482_v7  ;;  %v1494_v14 = vmul.f32 %v10059_v10, %v1477_v15  ;;  %vm1499_vm9 = vweird.f32 %v10059_v10  ;;  %v11026_v59 = vpop.f32.mrf.mxu0  ;;  %v3687_v15 = vld [vmem:[#allocation20 + $0xa8] sm:$0xff]  ;;  %v11040_v5 = vpop.f32.mrf.mxu1 }
 0xb1b   :  { %v1491_v18 = vsel %vm1488_vm6, %v1490_v12, %v1486_v3  ;;  %vm1500_vm12 = vmor %vm1498_vm11, %vm1499_vm9  ;;  %v11054_v3 = vpop.f32.mrf.mxu2 }
 0xb1c   :  { %v10937_v20 = vmul.f32 %v1491_v18, %v10910_v63  ;;  %v1495_v21 = vsub.f32 1.0, %v1494_v14 }
 0xb1e   :  { %v1496_v26 = vmul.f32 %v10059_v10, %v1495_v21  ;;  %8301 = vmatmul.msk.f32.vlgmr.msra.gmra.mxu3 %vm548_vm10, %v10937_v20  ;;  %8303 = vmatmul.msk.f32.vlgmr.msrb.gmra.mxu0 %vm548_vm10, %v10937_v20  ;;  %v3691_v21 = vld [vmem:[#allocation20 + $0xc8] sm:$0xff] }
 0xb1f   :  { %8309 = vmatmul.msk.f32.vlgmr.msrb.gmra.mxu1 %vm548_vm10, %v10937_v20  ;;  %3880 = vmatpush.msrb.mxu0 %v3673_v44  ;;  %v3694_v44 = vld [vmem:[#allocation20 + $0xe0] sm:$0xff] }
 0xb20   :  { %v1497_v25 = vadd.f32 %v10059_v10, %v1496_v26  ;;  %3857 = vmatpush.msra.mxu3 %v3672_v45  ;;  %3995 = vmatpush.msrb.mxu1 %v3678_v24  ;;  %v11052_v12 = vpop.f32.mrf.mxu3 }
 0xb22   :  { %v1501_v31 = vsel %vm1500_vm12, %v10059_v10, %v1497_v25  ;;  %v11042_v7 = vpop.f32.mrf.mxu0  ;;  %v3689_v10 = vld [vmem:[#allocation20 + $0xb8] sm:$0xff]  ;;  %v11056_v14 = vpop.f32.mrf.mxu1 }
 0xb23   :  { %v1506_v1 = vsel %vm1503_vm8, %v1505_v33, %v1501_v31  ;;  %v11068_v45 = vpop.f32.mrf.mxu2  ;;  %v3693_v25 = vld [vmem:[#allocation20 + $0xd8] sm:$0xff] }
 0xb24   :  { %v10952_v63 = vmul.f32 %v1506_v1, %v10918_v35  ;;  %v3682_v35 = vld [vmem:[#allocation20 + $0x80] sm:$0xff]  ;;  %v3695_v1 = vld [vmem:[#allocation20 + $0xe8] sm:$0xff] }
 0xb26   :  { %8302 = vmatmul.msk.f32.gmra.mxu3 %vm548_vm10, %v10952_v63  ;;  %8304 = vmatmul.msk.f32.vlgmr.msrb.gmra.mxu2 %vm548_vm10, %v10952_v63 }
 0xb27   :  { %8307 = vmatmul.msk.f32.vlgmr.msra.gmra.mxu0 %vm548_vm10, %v10937_v20  ;;  %8310 = vmatmul.msk.f32.gmra.mxu1 %vm548_vm10, %v10952_v63 }
 0xb28   :  { %3926 = vmatpush.msrb.mxu2 %v3675_v6  ;;  %3972 = vmatpush.msra.mxu0 %v3677_v13  ;;  %v11070_v24 = vpop.f32.mrf.mxu3  ;;  %v5048_v6 = vld [vmem:[%s11328_s14] sm:$0xff]  ;;  %v3692_v13 = vld [vmem:[#allocation20 + $0xd0] sm:$0xff]  ;;  %s10415_s14 = smov [#allocation22]  }
 0xb29   :  { %s7078_s22 = sshll.u32 %s10415_s14, 4  ;;  %s7079_s22 = int_to_ptr.vmem [resolvable:$true] %s7078_s22 }
 0xb2a   :  { %v11058_v18 = vpop.f32.mrf.mxu0  ;;  %v11072_v26 = vpop.f32.mrf.mxu1 }
 0xb2b   :  { %v11086_v31 = vpop.f32.mrf.mxu2 }
 0xb2e   :  { %8305 = vmatmul.msk.f32.vlgmr.msrb.gmra.mxu3 %vm548_vm10, %v10937_v20  ;;  %8311 = vmatmul.msk.f32.vlgmr.msra.gmra.mxu2 %vm548_vm10, %v10937_v20 }
 0xb2f   :  { %8308 = vmatmul.msk.f32.gmra.mxu0 %vm548_vm10, %v10952_v63  ;;  %8317 = vmatmul.msk.f32.vlgmr.msra.gmra.mxu1 %vm548_vm10, %v10937_v20 }
 0xb30   :  { %3949 = vmatpush.msrb.mxu3 %v3676_v38  ;;  %4018 = vmatpush.msra.mxu2 %v3679_v41  ;;  %v11084_v33 = vpop.f32.mrf.mxu3 }
 0xb31   :  { %4087 = vmatpush.msra.mxu1 %v3682_v35  ;;  %11343 = vst [vmem:[#allocation34_spill] sm:$0xff] %v11084_v33 }
 0xb32   :  { %v11074_v28 = vpop.f32.mrf.mxu0  ;;  %v11095_v38 = vpop.f32.mrf.mxu1 }
 0xb33   :  { %11342 = vst [vmem:[#allocation33_spill] sm:$0xff] %v11074_v28  ;;  %v11103_v35 = vpop.f32.mrf.mxu2  ;;  %v9698_v28 = vld [vmem:[#allocation19 + $0x58] sm:$0xff] }
 0xb34   :  { %11345 = vst [vmem:[#allocation36_spill] sm:$0xff] %v11103_v35 }
 0xb36   :  { %8306 = vmatmul.msk.f32.gmra.mxu3 %vm548_vm10, %v10952_v63  ;;  %8312 = vmatmul.msk.f32.gmra.mxu2 %vm548_vm10, %v10952_v63 }
 0xb37   :  { %8315 = vmatmul.msk.f32.vlgmr.msrb.gmra.mxu0 %vm548_vm10, %v10937_v20  ;;  %8318 = vmatmul.msk.f32.gmra.mxu1 %vm548_vm10, %v10952_v63 }
 0xb38   :  { %4064 = vmatpush.msrb.mxu0 %v3681_v47  ;;  %v11105_v47 = vpop.f32.mrf.mxu3 }
 0xb39   :  { %11346 = vst [vmem:[#allocation37_spill] sm:$0xff] %v11105_v47 }
 0xb3a   :  { %v11097_v41 = vpop.f32.mrf.mxu0 }
 0xb3b   :  { %11344 = vst [vmem:[#allocation35_spill] sm:$0xff] %v11097_v41  ;;  %v9748_v41 = vld [vmem:[#allocation19 + $0x1e8] sm:$0xff] }
 0xb3e   :  { %8313 = vmatmul.msk.f32.vlgmr.msra.gmra.mxu3 %vm548_vm10, %v10937_v20  ;;  %8319 = vmatmul.msk.f32.vlgmr.msrb.gmra.mxu2 %vm548_vm10, %v10937_v20 }
 0xb3f   :  { %8316 = vmatmul.msk.f32.gmra.mxu0 %vm548_vm10, %v10952_v63  ;;  %8325 = vmatmul.msk.f32.vlgmr.msrb.gmra.mxu1 %vm548_vm10, %v10937_v20 }
 0xb40   :  { %4041 = vmatpush.msra.mxu3 %v3680_v52  ;;  %4110 = vmatpush.msrb.mxu2 %v3683_v34  ;;  %v3697_v52 = vld [vmem:[#allocation20 + $0xf8] sm:$0xff]  ;;  %v11111_v34 = vpop.f32.mrf.mxu1 }
 0xb41   :  { %4179 = vmatpush.msrb.mxu1 %v3686_v61  ;;  %11347 = vst [vmem:[#allocation38_spill] sm:$0xff] %v11111_v34 }
 0xb42   :  { %v11113_v61 = vpop.f32.mrf.mxu0 }
 0xb43   :  { %11348 = vst [vmem:[#allocation39_spill] sm:$0xff] %v11113_v61  ;;  %v9702_v61 = vld [vmem:[#allocation19 + $0x78] sm:$0xff] }
 0xb46   :  { %8314 = vmatmul.msk.f32.gmra.mxu3 %vm548_vm10, %v10952_v63  ;;  %8320 = vmatmul.msk.f32.gmra.mxu2 %vm548_vm10, %v10952_v63 }
 0xb47   :  { %8323 = vmatmul.msk.f32.vlgmr.msra.gmra.mxu0 %vm548_vm10, %v10937_v20  ;;  %8326 = vmatmul.msk.f32.gmra.mxu1 %vm548_vm10, %v10952_v63 }
 0xb48   :  { %4156 = vmatpush.msra.mxu0 %v3685_v57  ;;  %v9694_v57 = vld [vmem:[#allocation19 + $0x38] sm:$0xff] }
 0xb4e   :  { %8321 = vmatmul.msk.f32.vlgmr.msrb.gmra.mxu3 %vm548_vm10, %v10937_v20  ;;  %8327 = vmatmul.msk.f32.vlgmr.msra.gmra.mxu2 %vm548_vm10, %v10937_v20 }
 0xb4f   :  { %8324 = vmatmul.msk.f32.gmra.mxu0 %vm548_vm10, %v10952_v63  ;;  %8333 = vmatmul.msk.f32.vlgmr.msra.gmra.mxu1 %vm548_vm10, %v10937_v20 }
 0xb50   :  { %4133 = vmatpush.msrb.mxu3 %v3684_v62  ;;  %4202 = vmatpush.msra.mxu2 %v3687_v15  ;;  %v9718_v62 = vld [vmem:[#allocation19 + $0xf8] sm:$0xff]  ;;  %v11119_v15 = vpop.f32.mrf.mxu3 }
 0xb51   :  { %4271 = vmatpush.msra.mxu1 %v3690_v0  ;;  %11349 = vst [vmem:[#allocation40_spill] sm:$0xff] %v11119_v15  ;;  %v11121_v0 = vpop.f32.mrf.mxu2  ;;  %v9700_v15 = vld [vmem:[#allocation19 + $0x68] sm:$0xff] }
 0xb52   :  { %11350 = vst [vmem:[#allocation41_spill] sm:$0xff] %v11121_v0 }
 0xb56   :  { %8322 = vmatmul.msk.f32.gmra.mxu3 %vm548_vm10, %v10952_v63  ;;  %8328 = vmatmul.msk.f32.gmra.mxu2 %vm548_vm10, %v10952_v63 }
 0xb57   :  { %8331 = vmatmul.msk.f32.vlgmr.msrb.gmra.mxu0 %vm548_vm10, %v10937_v20  ;;  %8334 = vmatmul.msk.f32.gmra.mxu1 %vm548_vm10, %v10952_v63 }
 0xb58   :  { %4248 = vmatpush.msrb.mxu0 %v3689_v10  ;;  %v3696_v10 = vld [vmem:[#allocation20 + $0xf0] sm:$0xff] }
 0xb5e   :  { %8329 = vmatmul.msk.f32.vlgmr.msra.gmra.mxu3 %vm548_vm10, %v10937_v20  ;;  %8335 = vmatmul.msk.f32.vlgmr.msrb.gmra.mxu2 %vm548_vm10, %v10937_v20 }
 0xb5f   :  { %8332 = vmatmul.msk.f32.gmra.mxu0 %vm548_vm10, %v10952_v63  ;;  %8341 = vmatmul.msk.f32.vlgmr.msrb.gmra.mxu1 %vm548_vm10, %v10937_v20 }
 0xb60   :  { %4294 = vmatpush.msrb.mxu2 %v3691_v21  ;;  %4363 = vmatpush.msrb.mxu1 %v3694_v44  ;;  %v9693_v21 = vld [vmem:[#allocation19 + $0x30] sm:$0xff] }
 0xb61   :  { %4225 = vmatpush.msra.mxu3 %v3688_v23  ;;  %v9717_v44 = vld [vmem:[#allocation19 + $0xf0] sm:$0xff]  ;;  %v11131_v23 = vpop.f32.mrf.mxu1 }
 0xb62   :  { %11351 = vst [vmem:[#allocation42_spill] sm:$0xff] %v11131_v23 }
 0xb66   :  { %8330 = vmatmul.msk.f32.gmra.mxu3 %vm548_vm10, %v10952_v63  ;;  %8336 = vmatmul.msk.f32.gmra.mxu2 %vm548_vm10, %v10952_v63 }
 0xb67   :  { %8339 = vmatmul.msk.f32.vlgmr.msra.gmra.mxu0 %vm548_vm10, %v10937_v20  ;;  %8342 = vmatmul.msk.f32.gmra.mxu1 %vm548_vm10, %v10952_v63 }
 0xb68   :  { %4340 = vmatpush.msra.mxu0 %v3693_v25  ;;  %v11133_v25 = vpop.f32.mrf.mxu0 }
 0xb69   :  { %11352 = vst [vmem:[#allocation43_spill] sm:$0xff] %v11133_v25  ;;  %v9708_v25 = vld [vmem:[#allocation19 + $0xa8] sm:$0xff] }
 0xb6e   :  { %8337 = vmatmul.msk.f32.vlgmr.msrb.gmra.mxu3 %vm548_vm10, %v10937_v20  ;;  %8343 = vmatmul.msk.f32.vlgmr.msra.gmra.mxu2 %vm548_vm10, %v10937_v20 }
 0xb6f   :  { %8340 = vmatmul.msk.f32.gmra.mxu0 %vm548_vm10, %v10952_v63  ;;  %8349 = vmatmul.msk.f32.vlgmr.msra.gmra.mxu1 %vm548_vm10, %v10937_v20 }
 0xb70   :  { %4386 = vmatpush.msra.mxu2 %v3695_v1  ;;  %5064 = vmatpush.msra.mxu1 %v5048_v6  ;;  %v9692_v1 = vld [vmem:[#allocation19 + $0x28] sm:$0xff]  ;;  %v9710_v6 = vld [vmem:[#allocation19 + $0xb8] sm:$0xff] }
 0xb71   :  { %4317 = vmatpush.msrb.mxu3 %v3692_v13  ;;  %v11135_v13 = vpop.f32.mrf.mxu2 }
 0xb72   :  { %11353 = vst [vmem:[#allocation44_spill] sm:$0xff] %v11135_v13  ;;  %v9714_v13 = vld [vmem:[#allocation19 + $0xd8] sm:$0xff] }
 0xb76   :  { %8338 = vmatmul.msk.f32.gmra.mxu3 %vm548_vm10, %v10952_v63  ;;  %8344 = vmatmul.msk.f32.gmra.mxu2 %vm548_vm10, %v10952_v63 }
 0xb77   :  { %8347 = vmatmul.msk.f32.vlgmr.msrb.gmra.mxu0 %vm548_vm10, %v10937_v20  ;;  %8350 = vmatmul.msk.f32.gmra.mxu1 %vm548_vm10, %v10952_v63 }
 0xb78   :  { %4432 = vmatpush.msrb.mxu0 %v3697_v52  ;;  %v9716_v52 = vld [vmem:[#allocation19 + $0xe8] sm:$0xff] }
 0xb7e   :  { %8345 = vmatmul.msk.f32.vlgmr.msra.gmra.mxu3 %vm548_vm10, %v10937_v20  ;;  %8351 = vmatmul.msk.f32.vlgmr.msrb.gmra.mxu2 %vm548_vm10, %v10937_v20 }
 0xb7f   :  { %8348 = vmatmul.msk.f32.gmra.mxu0 %vm548_vm10, %v10952_v63  ;;  %8357 = vmatmul.msk.f32.vlgmr.msrb.gmra.mxu1 %vm548_vm10, %v10937_v20 }
 0xb80   :  { %6608 = vmatpush.bf16.msrb.mxu2 %v9694_v57  ;;  %6650 = vmatpush.bf16.msrb.mxu1 %v9718_v62  ;;  %v11141_v57 = vpop.f32.mrf.mxu3  ;;  %v9691_v62 = vld [vmem:[#allocation19 + $0x20] sm:$0xff] }
 0xb81   :  { %4409 = vmatpush.msra.mxu3 %v3696_v10  ;;  %11354 = vst [vmem:[#allocation45_spill] sm:$0xff] %v11141_v57  ;;  %v9709_v10 = vld [vmem:[#allocation19 + $0xb0] sm:$0xff]  ;;  %v9712_v57 = vld [vmem:[#allocation19 + $0xc8] sm:$0xff] }
 0xb84   :  { %6609 = vmatpush.bf16.msrb.mxu2 %v9693_v21  ;;  %6651 = vmatpush.bf16.msrb.mxu1 %v9717_v44  ;;  %v11147_v21 = vpop.f32.mrf.mxu1  ;;  %v11149_v44 = vpop.f32.mrf.mxu0 }
 0xb85   :  { %11355 = vst [vmem:[#allocation46_spill] sm:$0xff] %v11147_v21 }
 0xb86   :  { %8346 = vmatmul.msk.f32.gmra.mxu3 %vm548_vm10, %v10952_v63  ;;  %8352 = vmatmul.msk.f32.gmra.mxu2 %vm548_vm10, %v10952_v63  ;;  %11356 = vst [vmem:[#allocation47_spill] sm:$0xff] %v11149_v44 }
 0xb87   :  { %8355 = vmatmul.msk.f32.vlgmr.msra.gmra.mxu0 %vm548_vm10, %v10937_v20  ;;  %8358 = vmatmul.msk.f32.gmra.mxu1 %vm548_vm10, %v10952_v63 }
 0xb88   :  { %6610 = vmatpush.bf16.msrb.mxu2 %v9692_v1  ;;  %6636 = vmatpush.bf16.msra.mxu0 %v9710_v6  ;;  %v11155_v1 = vpop.f32.mrf.mxu3  ;;  %v11157_v6 = vpop.f32.mrf.mxu2 }
 0xb89   :  { %6652 = vmatpush.bf16.msrb.mxu1 %v9716_v52  ;;  %11357 = vst [vmem:[#allocation48_spill] sm:$0xff] %v11155_v1  ;;  %v9701_v52 = vld [vmem:[#allocation19 + $0x70] sm:$0xff]  ;;  %v9688_v1 = vld [vmem:[#allocation19 + $0x8] sm:$0xff] }
 0xb8a   :  { %11358 = vst [vmem:[#allocation49_spill] sm:$0xff] %v11157_v6  ;;  %v9706_v6 = vld [vmem:[#allocation19 + $0x98] sm:$0xff] }
 0xb8c   :  { %6611 = vmatpush.bf16.msrb.mxu2 %v9691_v62  ;;  %6637 = vmatpush.bf16.msra.mxu0 %v9709_v10  ;;  %v9707_v62 = vld [vmem:[#allocation19 + $0xa0] sm:$0xff]  ;;  %v9713_v10 = vld [vmem:[#allocation19 + $0xd0] sm:$0xff]  ;;  %v11163_v44 = vpop.f32.mrf.mxu1  ;;  %v11165_v21 = vpop.f32.mrf.mxu0 }
 0xb8d   :  { %6653 = vmatpush.bf16.msrb.mxu1 %v9715_v48  ;;  %v9689_v48 = vld [vmem:[#allocation19 + $0x10] sm:$0xff]  ;;  %11359 = vst [vmem:[#allocation50_spill] sm:$0xff] %v11163_v44  ;;  %v11181_v44 = vld [vmem:[#allocation17] sm:$0xff] }
 0xb8e   :  { %8353 = vmatmul.msk.f32.vlgmr.msrb.gmra.mxu3 %vm548_vm10, %v10937_v20  ;;  %8359 = vmatmul.msk.f32.vlgmr.msra.gmra.mxu2 %vm548_vm10, %v10937_v20  ;;  %11360 = vst [vmem:[#allocation51_spill] sm:$0xff] %v11165_v21 }
 0xb8f   :  { %8356 = vmatmul.msk.f32.gmra.mxu0 %vm548_vm10, %v10952_v63  ;;  %8365 = vmatmul.msk.f32.vlgmr.msra.gmra.mxu1 %vm548_vm10, %v10937_v20 }
 0xb90   :  { %6612 = vmatpush.bf16.msrb.mxu2 %v9690_v39  ;;  %6622 = vmatpush.bf16.msrb.mxu3 %v9702_v61  ;;  %v11171_v39 = vpop.f32.mrf.mxu2  ;;  %v9687_v61 = vld [vmem:[#allocation19] sm:$0xff] }
 0xb91   :  { %6638 = vmatpush.bf16.msra.mxu0 %v9708_v25  ;;  %6654 = vmatpush.bf16.msrb.mxu1 %v9714_v13  ;;  %11361 = vst [vmem:[#allocation52_spill] sm:$0xff] %v11171_v39  ;;  %v9699_v25 = vld [vmem:[#allocation19 + $0x60] sm:$0xff]  ;;  %v11177_v13 = vpop.f32.mrf.mxu3 }
 0xb92   :  { %11362 = vst [vmem:[#allocation53_spill] sm:$0xff] %v11177_v13 }
 0xb94   :  { %6613 = vmatpush.bf16.msrb.mxu2 %v9689_v48  ;;  %6623 = vmatpush.bf16.msrb.mxu3 %v9701_v52  ;;  %v9705_v48 = vld [vmem:[#allocation19 + $0x90] sm:$0xff]  ;;  %v9711_v52 = vld [vmem:[#allocation19 + $0xc0] sm:$0xff]  ;;  %v11179_v21 = vpop.f32.mrf.mxu1 }
 0xb95   :  { %6639 = vmatpush.bf16.msra.mxu0 %v9707_v62  ;;  %6655 = vmatpush.bf16.msrb.mxu1 %v9713_v10  ;;  %v9726_v62 = vld [vmem:[#allocation19 + $0x138] sm:$0xff]  ;;  %11363 = vst [vmem:[#allocation54_spill] sm:$0xff] %v11179_v21  ;;  %v1810_v21 = vperm.slane %v11181_v44, 0 }
 0xb96   :  { %8354 = vmatmul.msk.f32.gmra.mxu3 %vm548_vm10, %v10952_v63  ;;  %8360 = vmatmul.msk.f32.gmra.mxu2 %vm548_vm10, %v10952_v63  ;;  %v9750_v10 = vld [vmem:[#allocation19 + $0x1f8] sm:$0xff] }
 0xb97   :  { %8363 = vmatmul.msk.f32.vlgmr.msrb.gmra.mxu0 %vm548_vm10, %v10937_v20  ;;  %8366 = vmatmul.msk.f32.gmra.mxu1 %vm548_vm10, %v10952_v63  ;;  %v3164_v34 = vadd.f32 %v10924_v22, %v1810_v21  ;;  %v9747_v22 = vld [vmem:[#allocation19 + $0x1e0] sm:$0xff] }
 0xb98   :  { %6614 = vmatpush.bf16.msrb.mxu2 %v9688_v1  ;;  %6624 = vmatpush.bf16.msrb.mxu3 %v9700_v15  ;;  %v9704_v15 = vld [vmem:[#allocation19 + $0x88] sm:$0xff]  ;;  %v9725_v1 = vld [vmem:[#allocation19 + $0x130] sm:$0xff] }
 0xb99   :  { %6640 = vmatpush.bf16.msra.mxu0 %v9706_v6  ;;  %6656 = vmatpush.bf16.msrb.mxu1 %v9712_v57  ;;  %v9749_v6 = vld [vmem:[#allocation19 + $0x1f0] sm:$0xff]  ;;  %v1811_v57 = vperm.slane %v11181_v44, 1 }
 0xb9b   :  { %v3744_v39 = vpop.f32.mrf.mxu0  ;;  %v3178_v13 = vadd.f32 %v10922_v56, %v1811_v57  ;;  %v3180_v23 = vadd.f32 %v10926_v60, %v1811_v57  ;;  %v3602_v60 = vmax.f32 %v3164_v34, 0.0  ;;  %v9695_v57 = vld [vmem:[#allocation19 + $0x40] sm:$0xff] }
 0xb9c   :  { %6615 = vmatpush.bf16.msrb.mxu2 %v9687_v61  ;;  %6625 = vmatpush.bf16.msrb.mxu3 %v9699_v25  ;;  %v9697_v61 = vld [vmem:[#allocation19 + $0x50] sm:$0xff]  ;;  %v11189_v25 = vpop.f32.mrf.mxu2  ;;  %v11196_v35 = vpop.f32.mrf.mxu1 }
 0xb9d   :  { %6641 = vmatpush.bf16.msra.mxu0 %v9705_v48  ;;  %6657 = vmatpush.bf16.msrb.mxu1 %v9711_v52  ;;  %11364 = vst [vmem:[#allocation55_spill] sm:$0xff] %v11189_v25  ;;  %v9703_v52 = vld [vmem:[#allocation19 + $0x80] sm:$0xff]  ;;  %v3603_v56 = vmax.f32 %v3178_v13, 0.0 }
 0xb9e   :  { %8361 = vmatmul.msk.f32.vlgmr.msra.gmra.mxu3 %vm548_vm10, %v10937_v20  ;;  %v1813_v20 = vperm.slane %v11181_v44, 3  ;;  %11365 = vst [vmem:[#allocation56_spill] sm:$0xff] %v11196_v35 }
 0xb9f   :  { %8364 = vmatmul.msk.f32.gmra.mxu0 %vm548_vm10, %v10952_v63 }
 0xba0   :  { %6664 = vmatpush.bf16.msra.mxu2 %v9726_v62  ;;  %6626 = vmatpush.bf16.msrb.mxu3 %v9698_v28  ;;  %v9724_v62 = vld [vmem:[#allocation19 + $0x128] sm:$0xff]  ;;  %v3166_v28 = vadd.f32 %v10928_v9, %v1810_v21  ;;  %v3206_v33 = vadd.f32 %v10930_v42, %v1813_v20  ;;  %v3208_v0 = vadd.f32 %v10947_v30, %v1813_v20  ;;  %v3635_v9 = vmax.f32 %v3180_v23, 0.0  ;;  %v9722_v30 = vld [vmem:[#allocation19 + $0x118] sm:$0xff] }
 0xba1   :  { %6706 = vmatpush.bf16.msra.mxu1 %v9750_v10  ;;  %6642 = vmatpush.bf16.msra.mxu0 %v9704_v15  ;;  %v3721_v48 = vpop.f32.mrf.mxu3  ;;  %v9742_v10 = vld [vmem:[#allocation19 + $0x1b8] sm:$0xff]  ;;  %v9696_v15 = vld [vmem:[#allocation19 + $0x48] sm:$0xff] }
 0xba2   :  { %v3634_v21 = vmax.f32 %v3166_v28, 0.0  ;;  %v4440_v35 = vmul.f32 %v3721_v48, %v3602_v60  ;;  %v3605_v20 = vmax.f32 %v3206_v33, 0.0  ;;  %v3637_v47 = vmax.f32 %v3208_v0, 0.0  ;;  %v9733_v48 = vld [vmem:[#allocation19 + $0x170] sm:$0xff] }
 0xba3   :  { %v9745_v33 = vld [vmem:[#allocation19 + $0x1d0] sm:$0xff]  ;;  %v1812_v0 = vperm.slane %v11181_v44, 2 }
 0xba4   :  { %6665 = vmatpush.bf16.msra.mxu2 %v9725_v1  ;;  %6627 = vmatpush.bf16.msrb.mxu3 %v9697_v61  ;;  %v3790_v25 = vpop.f32.mrf.mxu0  ;;  %v9723_v1 = vld [vmem:[#allocation19 + $0x120] sm:$0xff]  ;;  %v4441_v61 = vmul.f32 %v3744_v39, %v3603_v56 }
 0xba5   :  { %6707 = vmatpush.bf16.msra.mxu1 %v9749_v6  ;;  %6643 = vmatpush.bf16.msra.mxu0 %v9703_v52  ;;  %v9741_v6 = vld [vmem:[#allocation19 + $0x1b0] sm:$0xff]  ;;  %v4443_v39 = vmul.f32 %v3790_v25, %v3605_v20  ;;  %v1814_v25 = vperm.slane %v11181_v44, 4 }
 0xba6   :  { %8362 = vmatmul.msk.f32.gmra.mxu3 %vm548_vm10, %v10952_v63  ;;  %v9746_v63 = vld [vmem:[#allocation19 + $0x1d8] sm:$0xff] }
 0xba8   :  { %6666 = vmatpush.bf16.msra.mxu2 %v9724_v62  ;;  %6628 = vmatpush.bf16.msrb.mxu3 %v9696_v15  ;;  %v11202_v15 = vpop.f32.mrf.mxu1 }
 0xba9   :  { %6692 = vmatpush.bf16.msrb.mxu0 %v9742_v10  ;;  %6708 = vmatpush.bf16.msra.mxu1 %v9748_v41  ;;  %v3724_v52 = vpop.f32.mrf.mxu3  ;;  %v3747_v62 = vpop.f32.mrf.mxu2  ;;  %v9734_v10 = vld [vmem:[#allocation19 + $0x178] sm:$0xff]  ;;  %v9740_v41 = vld [vmem:[#allocation19 + $0x1a8] sm:$0xff] }
 0xbaa   :  { %v4472_v42 = vmul.f32 %v3724_v52, %v3634_v21  ;;  %v4473_v13 = vmul.f32 %v3747_v62, %v3635_v9  ;;  %v9738_v9 = vld [vmem:[#allocation19 + $0x198] sm:$0xff]  ;;  %v1817_v21 = vperm.slane %v11181_v44, 7  ;;  %v3194_v52 = vadd.f32 %v10949_v8, %v1812_v0 }
 0xbab   :  { %v3222_v62 = vadd.f32 %v10964_v36, %v1814_v25 }
 0xbac   :  { %6667 = vmatpush.bf16.msra.mxu2 %v9723_v1  ;;  %v4504_v34 = vpack.c.bf16 %v4472_v42, %v4440_v35  ;;  %v4505_v23 = vpack.c.bf16 %v4473_v13, %v4441_v61  ;;  %6629 = vmatpush.bf16.msrb.mxu3 %v9695_v57  ;;  %v3793_v28 = vpop.f32.mrf.mxu0  ;;  %v9721_v1 = vld [vmem:[#allocation19 + $0x110] sm:$0xff]  ;;  %v9744_v57 = vld [vmem:[#allocation19 + $0x1c8] sm:$0xff]  ;;  %v3192_v61 = vadd.f32 %v10932_v27, %v1812_v0  ;;  %v9731_v42 = vld [vmem:[#allocation19 + $0x160] sm:$0xff] }
 0xbad   :  { %6693 = vmatpush.bf16.msrb.mxu0 %v9741_v6  ;;  %6709 = vmatpush.bf16.msra.mxu1 %v9747_v22  ;;  %v4475_v56 = vmul.f32 %v3793_v28, %v3637_v47  ;;  %v9739_v6 = vld [vmem:[#allocation19 + $0x1a0] sm:$0xff]  ;;  %v9732_v22 = vld [vmem:[#allocation19 + $0x168] sm:$0xff]  ;;  %v3220_v13 = vadd.f32 %v10945_v19, %v1814_v25  ;;  %v3262_v20 = vadd.f32 %v10966_v29, %v1817_v21  ;;  %v3636_v28 = vmax.f32 %v3194_v52, 0.0  ;;  %v9729_v52 = vld [vmem:[#allocation19 + $0x150] sm:$0xff] }
 0xbae   :  { %6616 = vmatmul.bf16.vlgmr.msrb.gmra.mxu2 %v4504_v34  ;;  %v9720_v47 = vld [vmem:[#allocation19 + $0x108] sm:$0xff]  ;;  %v9743_v27 = vld [vmem:[#allocation19 + $0x1c0] sm:$0xff]  ;;  %v3604_v8 = vmax.f32 %v3192_v61, 0.0  ;;  %v3638_v36 = vmax.f32 %v3222_v62, 0.0 }
 0xbaf   :  { %v4507_v60 = vpack.c.bf16 %v4475_v56, %v4443_v39  ;;  %6630 = vmatmul.bf16.vlgmr.msrb.gmra.mxu3 %v4505_v23  ;;  %v9758_v23 = vld [vmem:[#allocation19 + $0x238] sm:$0xff] }
 0xbb0   :  { %6678 = vmatpush.bf16.msra.mxu3 %v9734_v10  ;;  %6668 = vmatpush.bf16.msra.mxu2 %v9722_v30  ;;  %v9719_v30 = vld [vmem:[#allocation19 + $0x100] sm:$0xff]  ;;  %v3816_v34 = vpop.f32.mrf.mxu1  ;;  %v9782_v39 = vld [vmem:[#allocation19 + $0x2f8] sm:$0xff] }
 0xbb1   :  { %6694 = vmatpush.bf16.msrb.mxu0 %v9740_v41  ;;  %6710 = vmatpush.bf16.msra.mxu1 %v9746_v63  ;;  %v3767_v35 = vpop.f32.mrf.mxu3  ;;  %v9737_v41 = vld [vmem:[#allocation19 + $0x190] sm:$0xff]  ;;  %v3264_v63 = vadd.f32 %v10982_v46, %v1817_v21  ;;  %v11213_v56 = vpop.f32.mrf.mxu2  ;;  %v9736_v46 = vld [vmem:[#allocation19 + $0x188] sm:$0xff] }
 0xbb2   :  { %6658 = vmatmul.bf16.vlgmr.msrb.gmra.mxu1 %v4507_v60  ;;  %v4442_v60 = vmul.f32 %v3767_v35, %v3604_v8  ;;  %v9781_v21 = vld [vmem:[#allocation19 + $0x2f0] sm:$0xff]  ;;  %v1815_v35 = vperm.slane %v11181_v44, 5  ;;  %v9755_v8 = vld [vmem:[#allocation19 + $0x220] sm:$0xff] }
 0xbb3   :  { %v3641_v0 = vmax.f32 %v3264_v63, 0.0 }
 0xbb4   :  { %6679 = vmatpush.bf16.msra.mxu3 %v9733_v48  ;;  %6669 = vmatpush.bf16.msra.mxu2 %v9721_v1  ;;  %v3882_v10 = vpop.f32.mrf.mxu0  ;;  %v9730_v48 = vld [vmem:[#allocation19 + $0x158] sm:$0xff]  ;;  %v3606_v1 = vmax.f32 %v3220_v13, 0.0 }
 0xbb5   :  { %6695 = vmatpush.bf16.msrb.mxu0 %v9739_v6  ;;  %6711 = vmatpush.bf16.msra.mxu1 %v9745_v33  ;;  %v4476_v6 = vmul.f32 %v3816_v34, %v3638_v36  ;;  %v3609_v33 = vmax.f32 %v3262_v20, 0.0  ;;  %v3236_v20 = vadd.f32 %v10954_v40, %v1815_v35  ;;  %v9728_v34 = vld [vmem:[#allocation19 + $0x148] sm:$0xff] }
 0xbb6   :  { %v4444_v25 = vmul.f32 %v11202_v15, %v3606_v1  ;;  %v1816_v15 = vperm.slane %v11181_v44, 6 }
 0xbb7   :  { %v3639_v44 = vmax.f32 %v3236_v20, 0.0  ;;  %v9770_v20 = vld [vmem:[#allocation19 + $0x298] sm:$0xff] }
 0xbb8   :  { %6680 = vmatpush.bf16.msra.mxu3 %v9732_v22  ;;  %6670 = vmatpush.bf16.msra.mxu2 %v9720_v47  ;;  %v9757_v22 = vld [vmem:[#allocation19 + $0x230] sm:$0xff]  ;;  %v4508_v62 = vpack.c.bf16 %v4476_v6, %v4444_v25  ;;  %v3248_v36 = vadd.f32 %v10968_v16, %v1816_v15  ;;  %v3250_v40 = vadd.f32 %v10988_v49, %v1816_v15  ;;  %v9766_v6 = vld [vmem:[#allocation19 + $0x278] sm:$0xff]  ;;  %v9752_v15 = vld [vmem:[#allocation19 + $0x208] sm:$0xff] }
 0xbb9   :  { %6696 = vmatpush.bf16.msrb.mxu0 %v9738_v9  ;;  %6712 = vmatpush.bf16.msra.mxu1 %v9744_v57  ;;  %v3770_v19 = vpop.f32.mrf.mxu3  ;;  %v4447_v57 = vmul.f32 %v3882_v10, %v3609_v33  ;;  %v9780_v10 = vld [vmem:[#allocation19 + $0x2e8] sm:$0xff]  ;;  %v9778_v49 = vld [vmem:[#allocation19 + $0x2d8] sm:$0xff] }
 0xbba   :  { %v4474_v29 = vmul.f32 %v3770_v19, %v3636_v28  ;;  %v9773_v28 = vld [vmem:[#allocation19 + $0x2b0] sm:$0xff]  ;;  %v9727_v19 = vld [vmem:[#allocation19 + $0x140] sm:$0xff]  ;;  %v3640_v33 = vmax.f32 %v3250_v40, 0.0 }
 0xbbb   :  { %v9769_v40 = vld [vmem:[#allocation19 + $0x290] sm:$0xff] }
 0xbbc   :  { %6681 = vmatpush.bf16.msra.mxu3 %v9731_v42  ;;  %6671 = vmatpush.bf16.msra.mxu2 %v9719_v30  ;;  %v4506_v47 = vpack.c.bf16 %v4474_v29, %v4442_v60  ;;  %v3885_v9 = vpop.f32.mrf.mxu0  ;;  %v9735_v42 = vld [vmem:[#allocation19 + $0x180] sm:$0xff]  ;;  %v9756_v30 = vld [vmem:[#allocation19 + $0x228] sm:$0xff]  ;;  %v11222_v60 = vpop.f32.mrf.mxu1 }
 0xbbd   :  { %6697 = vmatpush.bf16.msrb.mxu0 %v9737_v41  ;;  %6713 = vmatpush.bf16.msra.mxu1 %v9743_v27  ;;  %v4479_v61 = vmul.f32 %v3885_v9, %v3641_v0  ;;  %v9774_v41 = vld [vmem:[#allocation19 + $0x2b8] sm:$0xff]  ;;  %v3234_v27 = vadd.f32 %v10934_v17, %v1815_v35  ;;  %v9772_v29 = vld [vmem:[#allocation19 + $0x2a8] sm:$0xff] }
 0xbbe   :  { %6644 = vmatmul.bf16.vlgmr.msra.gmra.mxu0 %v4506_v47  ;;  %v9754_v17 = vld [vmem:[#allocation19 + $0x218] sm:$0xff] }
 0xbbf   :  { %v4511_v13 = vpack.c.bf16 %v4479_v61, %v4447_v57  ;;  %6672 = vmatmul.bf16.vlgmr.msra.gmra.mxu2 %v4508_v62  ;;  %v11225_v57 = vld [vmem:[#allocation17 + $0x8] sm:$0xff]  ;;  %v9753_v61 = vld [vmem:[#allocation19 + $0x210] sm:$0xff] }
 0xbc0   :  { %6720 = vmatpush.bf16.msrb.mxu2 %v9758_v23  ;;  %6682 = vmatpush.bf16.msra.mxu3 %v9730_v48  ;;  %v3839_v23 = vpop.f32.mrf.mxu2  ;;  %v3607_v48 = vmax.f32 %v3234_v27, 0.0  ;;  %v1818_v35 = vperm.slane %v11225_v57, 0  ;;  %v9777_v62 = vld [vmem:[#allocation19 + $0x2d0] sm:$0xff] }
 0xbc1   :  { %6762 = vmatpush.bf16.msrb.mxu1 %v9782_v39  ;;  %6698 = vmatpush.bf16.msrb.mxu0 %v9736_v46  ;;  %v3859_v63 = vpop.f32.mrf.mxu3  ;;  %v9779_v39 = vld [vmem:[#allocation19 + $0x2e0] sm:$0xff]  ;;  %v4477_v1 = vmul.f32 %v3839_v23, %v3639_v44  ;;  %v3608_v46 = vmax.f32 %v3248_v36, 0.0 }
 0xbc2   :  { %6714 = vmatmul.bf16.vlgmr.msra.gmra.mxu1 %v4511_v13  ;;  %v4445_v16 = vmul.f32 %v11213_v56, %v3607_v48  ;;  %v3278_v13 = vadd.f32 %v11002_v53, %v1818_v35  ;;  %v9763_v36 = vld [vmem:[#allocation19 + $0x260] sm:$0xff] }
 0xbc3   :  { %v4446_v47 = vmul.f32 %v3859_v63, %v3608_v46  ;;  %v9776_v63 = vld [vmem:[#allocation19 + $0x2c8] sm:$0xff]  ;;  %v9751_v44 = vld [vmem:[#allocation19 + $0x200] sm:$0xff] }
 0xbc4   :  { %6721 = vmatpush.bf16.msrb.mxu2 %v9757_v22  ;;  %6683 = vmatpush.bf16.msra.mxu3 %v9729_v52  ;;  %v3974_v0 = vpop.f32.mrf.mxu0  ;;  %v4509_v25 = vpack.c.bf16 %v4477_v1, %v4445_v16  ;;  %v9771_v52 = vld [vmem:[#allocation19 + $0x2a0] sm:$0xff]  ;;  %v3908_v27 = vpop.f32.mrf.mxu1  ;;  %v3642_v53 = vmax.f32 %v3278_v13, 0.0  ;;  %v9762_v16 = vld [vmem:[#allocation19 + $0x258] sm:$0xff] }
 0xbc5   :  { %6763 = vmatpush.bf16.msrb.mxu1 %v9781_v21  ;;  %6699 = vmatpush.bf16.msrb.mxu0 %v9735_v42  ;;  %v9765_v21 = vld [vmem:[#allocation19 + $0x270] sm:$0xff]  ;;  %v1821_v42 = vperm.slane %v11225_v57, 3  ;;  %v9775_v48 = vld [vmem:[#allocation19 + $0x2c0] sm:$0xff] }
 0xbc8   :  { %6722 = vmatpush.bf16.msrb.mxu2 %v9756_v30  ;;  %6684 = vmatpush.bf16.msra.mxu3 %v9728_v34  ;;  %v9764_v30 = vld [vmem:[#allocation19 + $0x268] sm:$0xff]  ;;  %v3318_v34 = vadd.f32 %v10996_v51, %v1821_v42  ;;  %v9790_v51 = vld [vmem:[#allocation19 + $0x338] sm:$0xff] }
 0xbc9   :  { %6748 = vmatpush.bf16.msra.mxu0 %v9774_v41  ;;  %6764 = vmatpush.bf16.msrb.mxu1 %v9780_v10  ;;  %v3862_v22 = vpop.f32.mrf.mxu3  ;;  %v3320_v41 = vadd.f32 %v11018_v58, %v1821_v42  ;;  %v3276_v10 = vadd.f32 %v10980_v43, %v1818_v35  ;;  %v1819_v35 = vperm.slane %v11225_v57, 1  ;;  %v9806_v42 = vld [vmem:[#allocation19 + $0x3b8] sm:$0xff] }
 0xbca   :  { %v4478_v9 = vmul.f32 %v3862_v22, %v3640_v33  ;;  %v3613_v1 = vmax.f32 %v3318_v34, 0.0  ;;  %v3928_v33 = vpop.f32.mrf.mxu2  ;;  %v9768_v22 = vld [vmem:[#allocation19 + $0x288] sm:$0xff]  ;;  %v9805_v34 = vld [vmem:[#allocation19 + $0x3b0] sm:$0xff] }
 0xbcb   :  { %v3645_v58 = vmax.f32 %v3320_v41, 0.0  ;;  %v3292_v13 = vadd.f32 %v10994_v50, %v1819_v35 }
 0xbcc   :  { %6723 = vmatpush.bf16.msrb.mxu2 %v9755_v8  ;;  %6685 = vmatpush.bf16.msra.mxu3 %v9727_v19  ;;  %v4510_v56 = vpack.c.bf16 %v4478_v9, %v4446_v47  ;;  %v1820_v8 = vperm.slane %v11225_v57, 2  ;;  %v4480_v19 = vmul.f32 %v3908_v27, %v3642_v53  ;;  %v9789_v47 = vld [vmem:[#allocation19 + $0x330] sm:$0xff] }
 0xbcd   :  { %6749 = vmatpush.bf16.msra.mxu0 %v9773_v28  ;;  %6765 = vmatpush.bf16.msrb.mxu1 %v9779_v39  ;;  %v3977_v28 = vpop.f32.mrf.mxu0  ;;  %v3610_v39 = vmax.f32 %v3276_v10, 0.0  ;;  %v3643_v27 = vmax.f32 %v3292_v13, 0.0 }
 0xbce   :  { %6700 = vmatmul.bf16.vlgmr.msrb.gmra.mxu0 %v4510_v56  ;;  %v3306_v43 = vadd.f32 %v11024_v11, %v1820_v8 }
 0xbcf   :  { %6686 = vmatmul.bf16.vlgmr.msra.gmra.mxu3 %v4509_v25  ;;  %v4448_v46 = vmul.f32 %v11222_v60, %v3610_v39  ;;  %v9761_v60 = vld [vmem:[#allocation19 + $0x250] sm:$0xff]  ;;  %v9810_v39 = vld [vmem:[#allocation19 + $0x3d8] sm:$0xff] }
 0xbd0   :  { %6734 = vmatpush.bf16.msrb.mxu3 %v9766_v6  ;;  %6724 = vmatpush.bf16.msrb.mxu2 %v9754_v17  ;;  %v4483_v6 = vmul.f32 %v3977_v28, %v3645_v58  ;;  %v9814_v17 = vld [vmem:[#allocation19 + $0x3f8] sm:$0xff]  ;;  %v3644_v25 = vmax.f32 %v3306_v43, 0.0 }
 0xbd1   :  { %6750 = vmatpush.bf16.msra.mxu0 %v9772_v29  ;;  %6766 = vmatpush.bf16.msrb.mxu1 %v9778_v49  ;;  %v3951_v23 = vpop.f32.mrf.mxu3  ;;  %v3304_v29 = vadd.f32 %v11008_v54, %v1820_v8  ;;  %v4451_v49 = vmul.f32 %v3974_v0, %v3613_v1  ;;  %v4512_v11 = vpack.c.bf16 %v4480_v19, %v4448_v46  ;;  %v9767_v0 = vld [vmem:[#allocation19 + $0x280] sm:$0xff]  ;;  %v9798_v28 = vld [vmem:[#allocation19 + $0x378] sm:$0xff]  ;;  %v9797_v19 = vld [vmem:[#allocation19 + $0x370] sm:$0xff]  ;;  %v1822_v1 = vperm.slane %v11225_v57, 4 }
 0xbd2   :  { %v3931_v10 = vpop.f32.mrf.mxu2  ;;  %v9759_v8 = vld [vmem:[#allocation19 + $0x240] sm:$0xff]  ;;  %v9786_v58 = vld [vmem:[#allocation19 + $0x318] sm:$0xff]  ;;  %v9796_v46 = vld [vmem:[#allocation19 + $0x368] sm:$0xff] }
 0xbd3   :  { %v4515_v9 = vpack.c.bf16 %v4483_v6, %v4451_v49  ;;  %v4481_v53 = vmul.f32 %v3931_v10, %v3643_v27  ;;  %v9809_v6 = vld [vmem:[#allocation19 + $0x3d0] sm:$0xff]  ;;  %v9784_v49 = vld [vmem:[#allocation19 + $0x308] sm:$0xff] }
 0xbd4   :  { %6735 = vmatpush.bf16.msrb.mxu3 %v9765_v21  ;;  %6725 = vmatpush.bf16.msrb.mxu2 %v9753_v61  ;;  %v9813_v61 = vld [vmem:[#allocation19 + $0x3f0] sm:$0xff]  ;;  %v9800_v10 = vld [vmem:[#allocation19 + $0x388] sm:$0xff] }
 0xbd5   :  { %6751 = vmatpush.bf16.msra.mxu0 %v9771_v52  ;;  %6767 = vmatpush.bf16.msrb.mxu1 %v9777_v62  ;;  %v3612_v52 = vmax.f32 %v3304_v29, 0.0  ;;  %v9788_v62 = vld [vmem:[#allocation19 + $0x328] sm:$0xff]  ;;  %v3334_v29 = vadd.f32 %v11038_v4, %v1822_v1  ;;  %v9795_v4 = vld [vmem:[#allocation19 + $0x360] sm:$0xff]  ;;  %v9821_v27 = vld [vmem:[#allocation19 + $0x430] sm:$0xff] }
 0xbd7   :  { %v4450_v56 = vmul.f32 %v3951_v23, %v3612_v52  ;;  %v9811_v23 = vld [vmem:[#allocation19 + $0x3e0] sm:$0xff] }
 0xbd8   :  { %6736 = vmatpush.bf16.msrb.mxu3 %v9764_v30  ;;  %6726 = vmatpush.bf16.msrb.mxu2 %v9752_v15  ;;  %v9812_v30 = vld [vmem:[#allocation19 + $0x3e8] sm:$0xff] }
 0xbd9   :  { %6752 = vmatpush.bf16.msra.mxu0 %v9770_v20  ;;  %6768 = vmatpush.bf16.msrb.mxu1 %v9776_v63  ;;  %v3954_v21 = vpop.f32.mrf.mxu3  ;;  %v9760_v15 = vld [vmem:[#allocation19 + $0x248] sm:$0xff]  ;;  %v3290_v20 = vadd.f32 %v10974_v32, %v1819_v35  ;;  %v9787_v63 = vld [vmem:[#allocation19 + $0x320] sm:$0xff] }
 0xbda   :  { %v4482_v54 = vmul.f32 %v3954_v21, %v3644_v25  ;;  %v9804_v32 = vld [vmem:[#allocation19 + $0x3a8] sm:$0xff]  ;;  %v3332_v25 = vadd.f32 %v11016_v37, %v1822_v1  ;;  %v3646_v21 = vmax.f32 %v3334_v29, 0.0  ;;  %v9807_v37 = vld [vmem:[#allocation19 + $0x3c0] sm:$0xff] }
 0xbdb   :  { %v3611_v50 = vmax.f32 %v3290_v20, 0.0  ;;  %v9819_v1 = vld [vmem:[#allocation19 + $0x420] sm:$0xff] }
 0xbdc   :  { %6737 = vmatpush.bf16.msrb.mxu3 %v9763_v36  ;;  %6727 = vmatpush.bf16.msrb.mxu2 %v9751_v44  ;;  %v4514_v41 = vpack.c.bf16 %v4482_v54, %v4450_v56  ;;  %v3997_v36 = vpop.f32.mrf.mxu1  ;;  %v9801_v54 = vld [vmem:[#allocation19 + $0x390] sm:$0xff]  ;;  %v3614_v35 = vmax.f32 %v3332_v25, 0.0  ;;  %v9822_v56 = vld [vmem:[#allocation19 + $0x438] sm:$0xff]  ;;  %v9843_v29 = vld [vmem:[#allocation19 + $0x4e0] sm:$0xff] }
 0xbdd   :  { %6753 = vmatpush.bf16.msra.mxu0 %v9769_v40  ;;  %6769 = vmatpush.bf16.msrb.mxu1 %v9775_v48  ;;  %v4449_v44 = vmul.f32 %v3928_v33, %v3611_v50  ;;  %v4066_v40 = vpop.f32.mrf.mxu0  ;;  %v9785_v48 = vld [vmem:[#allocation19 + $0x310] sm:$0xff] }
 0xbde   :  { %v9845_v50 = vld [vmem:[#allocation19 + $0x4f0] sm:$0xff] }
 0xbdf   :  { %6728 = vmatmul.bf16.vlgmr.msrb.gmra.mxu2 %v4512_v11  ;;  %v4513_v43 = vpack.c.bf16 %v4481_v53, %v4449_v44  ;;  %v9808_v11 = vld [vmem:[#allocation19 + $0x3c8] sm:$0xff]  ;;  %v9838_v44 = vld [vmem:[#allocation19 + $0x4b8] sm:$0xff] }
 0xbe0   :  { %6776 = vmatpush.bf16.msra.mxu2 %v9790_v51  ;;  %6738 = vmatpush.bf16.msrb.mxu3 %v9762_v16  ;;  %v9803_v51 = vld [vmem:[#allocation19 + $0x3a0] sm:$0xff] }
 0xbe1   :  { %6818 = vmatpush.bf16.msra.mxu1 %v9814_v17  ;;  %6754 = vmatpush.bf16.msra.mxu0 %v9768_v22  ;;  %v1825_v17 = vperm.slane %v11225_v57, 7  ;;  %v4043_v16 = vpop.f32.mrf.mxu3  ;;  %v9802_v22 = vld [vmem:[#allocation19 + $0x398] sm:$0xff] }
 0xbe2   :  { %6770 = vmatmul.bf16.vlgmr.msrb.gmra.mxu1 %v4515_v9 }
 0xbe3   :  { %v3376_v33 = vadd.f32 %v11054_v3, %v1825_v17  ;;  %v9783_v3 = vld [vmem:[#allocation19 + $0x300] sm:$0xff] }
 0xbe4   :  { %6777 = vmatpush.bf16.msra.mxu2 %v9789_v47  ;;  %6739 = vmatpush.bf16.msrb.mxu3 %v9761_v60  ;;  %v3374_v47 = vadd.f32 %v11032_v2, %v1825_v17  ;;  %v4000_v9 = vpop.f32.mrf.mxu1  ;;  %v1824_v60 = vperm.slane %v11225_v57, 6  ;;  %v9846_v2 = vld [vmem:[#allocation19 + $0x4f8] sm:$0xff] }
 0xbe5   :  { %6819 = vmatpush.bf16.msra.mxu1 %v9813_v61  ;;  %6755 = vmatpush.bf16.msra.mxu0 %v9767_v0  ;;  %v4069_v61 = vpop.f32.mrf.mxu0  ;;  %v3649_v52 = vmax.f32 %v3376_v33, 0.0  ;;  %v4484_v0 = vmul.f32 %v4000_v9, %v3646_v21  ;;  %v9829_v21 = vld [vmem:[#allocation19 + $0x470] sm:$0xff] }
 0xbe6   :  { %v3362_v13 = vadd.f32 %v11056_v14, %v1824_v60  ;;  %v9793_v14 = vld [vmem:[#allocation19 + $0x350] sm:$0xff] }
 0xbe8   :  { %6778 = vmatpush.bf16.msra.mxu2 %v9788_v62  ;;  %6756 = vmatmul.bf16.vlgmr.msra.gmra.mxu0 %v4514_v41  ;;  %v3617_v62 = vmax.f32 %v3374_v47, 0.0  ;;  %v4020_v41 = vpop.f32.mrf.mxu2  ;;  %v3648_v53 = vmax.f32 %v3362_v13, 0.0  ;;  %v9842_v47 = vld [vmem:[#allocation19 + $0x4d8] sm:$0xff]  ;;  %v9840_v13 = vld [vmem:[#allocation19 + $0x4c8] sm:$0xff] }
 0xbe9   :  { %6804 = vmatpush.bf16.msrb.mxu0 %v9806_v42  ;;  %6820 = vmatpush.bf16.msra.mxu1 %v9812_v30  ;;  %v4487_v42 = vmul.f32 %v4069_v61, %v3649_v52  ;;  %v4452_v30 = vmul.f32 %v3997_v36, %v3614_v35  ;;  %v9799_v36 = vld [vmem:[#allocation19 + $0x380] sm:$0xff]  ;;  %v11252_v61 = vld [vmem:[#allocation17 + $0x10] sm:$0xff] }
 0xbea   :  { %6740 = vmatpush.bf16.msrb.mxu3 %v9760_v15  ;;  %v9794_v15 = vld [vmem:[#allocation19 + $0x358] sm:$0xff]  ;;  %v4455_v20 = vmul.f32 %v4066_v40, %v3617_v62  ;;  %v9835_v52 = vld [vmem:[#allocation19 + $0x4a0] sm:$0xff]  ;;  %v9816_v62 = vld [vmem:[#allocation19 + $0x408] sm:$0xff] }
 0xbec   :  { %6779 = vmatpush.bf16.msra.mxu2 %v9787_v63  ;;  %v3360_v63 = vadd.f32 %v11040_v5, %v1824_v60  ;;  %v9820_v5 = vld [vmem:[#allocation19 + $0x428] sm:$0xff]  ;;  %v1829_v60 = vperm.slane %v11252_v61, 3 }
 0xbed   :  { %6805 = vmatpush.bf16.msrb.mxu0 %v9805_v34  ;;  %6821 = vmatpush.bf16.msra.mxu1 %v9811_v23  ;;  %v4516_v34 = vpack.c.bf16 %v4484_v0, %v4452_v30  ;;  %v4519_v23 = vpack.c.bf16 %v4487_v42, %v4455_v20  ;;  %v9828_v0 = vld [vmem:[#allocation19 + $0x468] sm:$0xff]  ;;  %v9834_v42 = vld [vmem:[#allocation19 + $0x498] sm:$0xff] }
 0xbee   :  { %6741 = vmatpush.bf16.msrb.mxu3 %v9759_v8  ;;  %v4046_v8 = vpop.f32.mrf.mxu3  ;;  %v3430_v30 = vadd.f32 %v11068_v45, %v1829_v60  ;;  %v9878_v45 = vld [vmem:[#allocation19 + $0x5f8] sm:$0xff] }
 0xbf0   :  { %6780 = vmatpush.bf16.msra.mxu2 %v9786_v58  ;;  %v3616_v58 = vmax.f32 %v3360_v63, 0.0  ;;  %v9833_v63 = vld [vmem:[#allocation19 + $0x490] sm:$0xff] }
 0xbf1   :  { %6806 = vmatpush.bf16.msrb.mxu0 %v9804_v32  ;;  %6822 = vmatpush.bf16.msra.mxu1 %v9810_v39  ;;  %v4486_v32 = vmul.f32 %v4046_v8, %v3648_v53  ;;  %v9844_v39 = vld [vmem:[#allocation19 + $0x4e8] sm:$0xff]  ;;  %v9854_v8 = vld [vmem:[#allocation19 + $0x538] sm:$0xff] }
 0xbf2   :  { %6790 = vmatpush.bf16.msra.mxu3 %v9798_v28  ;;  %v1823_v28 = vperm.slane %v11225_v57, 5 }
 0xbf3   :  { %6742 = vmatmul.bf16.vlgmr.msrb.gmra.mxu3 %v4513_v43  ;;  %v4454_v43 = vmul.f32 %v4043_v16, %v3616_v58  ;;  %v9830_v16 = vld [vmem:[#allocation19 + $0x478] sm:$0xff] }
 0xbf4   :  { %6781 = vmatpush.bf16.msra.mxu2 %v9785_v48  ;;  %v3348_v40 = vadd.f32 %v11026_v59, %v1823_v28  ;;  %v3346_v48 = vadd.f32 %v11010_v55, %v1823_v28  ;;  %v9791_v59 = vld [vmem:[#allocation19 + $0x340] sm:$0xff]  ;;  %v9818_v55 = vld [vmem:[#allocation19 + $0x418] sm:$0xff] }
 0xbf5   :  { %6807 = vmatpush.bf16.msrb.mxu0 %v9803_v51  ;;  %6823 = vmatpush.bf16.msra.mxu1 %v9809_v6  ;;  %v4023_v51 = vpop.f32.mrf.mxu2  ;;  %v4518_v57 = vpack.c.bf16 %v4486_v32, %v4454_v43  ;;  %v9837_v6 = vld [vmem:[#allocation19 + $0x4b0] sm:$0xff]  ;;  %v9826_v58 = vld [vmem:[#allocation19 + $0x458] sm:$0xff] }
 0xbf6   :  { %6791 = vmatpush.bf16.msra.mxu3 %v9797_v19  ;;  %v9792_v19 = vld [vmem:[#allocation19 + $0x348] sm:$0xff]  ;;  %v3647_v17 = vmax.f32 %v3348_v40, 0.0 }
 0xbf8   :  { %6782 = vmatpush.bf16.msra.mxu2 %v9784_v49  ;;  %v4485_v33 = vmul.f32 %v4023_v51, %v3647_v17  ;;  %v4089_v49 = vpop.f32.mrf.mxu1 }
 0xbf9   :  { %6808 = vmatpush.bf16.msrb.mxu0 %v9802_v22  ;;  %6824 = vmatpush.bf16.msra.mxu1 %v9808_v11  ;;  %v9836_v22 = vld [vmem:[#allocation19 + $0x4a8] sm:$0xff]  ;;  %v4158_v11 = vpop.f32.mrf.mxu0 }
 0xbfa   :  { %6792 = vmatpush.bf16.msra.mxu3 %v9796_v46  ;;  %v3615_v46 = vmax.f32 %v3346_v48, 0.0  ;;  %v9877_v48 = vld [vmem:[#allocation19 + $0x5f0] sm:$0xff] }
 0xbfc   :  { %6783 = vmatpush.bf16.msra.mxu2 %v9783_v3  ;;  %v4453_v25 = vmul.f32 %v4020_v41, %v3615_v46  ;;  %v1826_v3 = vperm.slane %v11252_v61, 0  ;;  %v9876_v46 = vld [vmem:[#allocation19 + $0x5e8] sm:$0xff] }
 0xbfd   :  { %6809 = vmatpush.bf16.msrb.mxu0 %v9801_v54  ;;  %6825 = vmatpush.bf16.msra.mxu1 %v9807_v37  ;;  %v9841_v54 = vld [vmem:[#allocation19 + $0x4d0] sm:$0xff]  ;;  %v3432_v37 = vadd.f32 %v11086_v31, %v1829_v60  ;;  %v9815_v31 = vld [vmem:[#allocation19 + $0x400] sm:$0xff] }
 0xbfe   :  { %6793 = vmatpush.bf16.msra.mxu3 %v9795_v4  ;;  %v4517_v9 = vpack.c.bf16 %v4485_v33, %v4453_v25  ;;  %v9817_v4 = vld [vmem:[#allocation19 + $0x410] sm:$0xff]  ;;  %v3390_v35 = vadd.f32 %v11070_v24, %v1826_v3  ;;  %v9827_v24 = vld [vmem:[#allocation19 + $0x460] sm:$0xff] }
 0xbff   :  { %6784 = vmatmul.bf16.vlgmr.msra.gmra.mxu2 %v4516_v34  ;;  %v1828_v34 = vperm.slane %v11252_v61, 2  ;;  %v9851_v25 = vld [vmem:[#allocation19 + $0x520] sm:$0xff] }
 0xc00   :  { %6832 = vmatpush.bf16.msrb.mxu2 %v9822_v56  ;;  %6826 = vmatmul.bf16.vlgmr.msra.gmra.mxu1 %v4519_v23  ;;  %v4135_v56 = vpop.f32.mrf.mxu3  ;;  %v4092_v41 = vpop.f32.mrf.mxu1 }
 0xc01   :  { %6874 = vmatpush.bf16.msrb.mxu1 %v9846_v2  ;;  %6810 = vmatpush.bf16.msrb.mxu0 %v9800_v10  ;;  %v3388_v2 = vadd.f32 %v11052_v12, %v1826_v3  ;;  %v4161_v20 = vpop.f32.mrf.mxu0  ;;  %v3653_v10 = vmax.f32 %v3432_v37, 0.0  ;;  %v9839_v12 = vld [vmem:[#allocation19 + $0x4c0] sm:$0xff] }
 0xc02   :  { %6794 = vmatpush.bf16.msra.mxu3 %v9794_v15  ;;  %v3650_v15 = vmax.f32 %v3390_v35, 0.0 }
 0xc03   :  { %v4491_v53 = vmul.f32 %v4161_v20, %v3653_v10  ;;  %v9860_v20 = vld [vmem:[#allocation19 + $0x568] sm:$0xff] }
 0xc04   :  { %6833 = vmatpush.bf16.msrb.mxu2 %v9821_v27  ;;  %v3618_v27 = vmax.f32 %v3388_v2, 0.0  ;;  %v4488_v23 = vmul.f32 %v4092_v41, %v3650_v15  ;;  %v1830_v2 = vperm.slane %v11252_v61, 4  ;;  %v11366_v41 = vld [vmem:[#allocation37_spill] sm:$0xff] }
 0xc05   :  { %6875 = vmatpush.bf16.msrb.mxu1 %v9845_v50  ;;  %6811 = vmatpush.bf16.msrb.mxu0 %v9799_v36  ;;  %v3621_v50 = vmax.f32 %v3430_v30, 0.0  ;;  %v4112_v36 = vpop.f32.mrf.mxu2  ;;  %v1833_v30 = vperm.slane %v11252_v61, 7 }
 0xc06   :  { %6795 = vmatpush.bf16.msra.mxu3 %v9793_v14  ;;  %v3418_v14 = vadd.f32 %v11095_v38, %v1828_v34  ;;  %v4456_v28 = vmul.f32 %v4089_v49, %v3618_v27  ;;  %v9825_v38 = vld [vmem:[#allocation19 + $0x450] sm:$0xff]  ;;  %v3446_v15 = vadd.f32 %v11366_v41, %v1830_v2  ;;  %v11368_v27 = vld [vmem:[#allocation34_spill] sm:$0xff] }
 0xc07   :  { %v4459_v32 = vmul.f32 %v4158_v11, %v3621_v50  ;;  %v9869_v11 = vld [vmem:[#allocation19 + $0x5b0] sm:$0xff] }
 0xc08   :  { %6834 = vmatpush.bf16.msrb.mxu2 %v9820_v5  ;;  %6812 = vmatmul.bf16.vlgmr.msrb.gmra.mxu0 %v4518_v57  ;;  %v9832_v5 = vld [vmem:[#allocation19 + $0x488] sm:$0xff]  ;;  %v4520_v40 = vpack.c.bf16 %v4488_v23, %v4456_v28  ;;  %v3652_v51 = vmax.f32 %v3418_v14, 0.0  ;;  %v1827_v57 = vperm.slane %v11252_v61, 1  ;;  %v4181_v3 = vpop.f32.mrf.mxu1  ;;  %v3444_v23 = vadd.f32 %v11368_v27, %v1830_v2  ;;  %v9859_v28 = vld [vmem:[#allocation19 + $0x560] sm:$0xff]  ;;  %v9906_v27 = vld [vmem:[#allocation19 + $0x6d8] sm:$0xff] }
 0xc09   :  { %6860 = vmatpush.bf16.msra.mxu0 %v9838_v44  ;;  %6876 = vmatpush.bf16.msrb.mxu1 %v9844_v39  ;;  %v3416_v44 = vadd.f32 %v11072_v26, %v1828_v34  ;;  %v9853_v39 = vld [vmem:[#allocation19 + $0x530] sm:$0xff]  ;;  %v4523_v43 = vpack.c.bf16 %v4491_v53, %v4459_v32  ;;  %v9852_v26 = vld [vmem:[#allocation19 + $0x528] sm:$0xff]  ;;  %v4250_v35 = vpop.f32.mrf.mxu0  ;;  %v9866_v34 = vld [vmem:[#allocation19 + $0x598] sm:$0xff] }
 0xc0a   :  { %6796 = vmatpush.bf16.msra.mxu3 %v9792_v19  ;;  %v4138_v19 = vpop.f32.mrf.mxu3  ;;  %v3402_v49 = vadd.f32 %v11042_v7, %v1827_v57  ;;  %v9850_v7 = vld [vmem:[#allocation19 + $0x518] sm:$0xff]  ;;  %v9865_v32 = vld [vmem:[#allocation19 + $0x590] sm:$0xff] }
 0xc0b   :  { %v4490_v17 = vmul.f32 %v4138_v19, %v3652_v51  ;;  %v9910_v51 = vld [vmem:[#allocation19 + $0x6f8] sm:$0xff] }
 0xc0c   :  { %6835 = vmatpush.bf16.msrb.mxu2 %v9819_v1  ;;  %v9831_v1 = vld [vmem:[#allocation19 + $0x480] sm:$0xff] }
 0xc0d   :  { %6861 = vmatpush.bf16.msra.mxu0 %v9837_v6  ;;  %6877 = vmatpush.bf16.msrb.mxu1 %v9843_v29  ;;  %v3620_v6 = vmax.f32 %v3416_v44, 0.0  ;;  %v9870_v29 = vld [vmem:[#allocation19 + $0x5b8] sm:$0xff]  ;;  %v3622_v44 = vmax.f32 %v3444_v23, 0.0 }
 0xc0e   :  { %6797 = vmatpush.bf16.msra.mxu3 %v9791_v59  ;;  %v3404_v59 = vadd.f32 %v11058_v18, %v1827_v57  ;;  %v9823_v18 = vld [vmem:[#allocation19 + $0x440] sm:$0xff] }
 0xc0f   :  { %v4458_v33 = vmul.f32 %v4135_v56, %v3620_v6  ;;  %v9861_v56 = vld [vmem:[#allocation19 + $0x570] sm:$0xff] }
 0xc10   :  { %6836 = vmatpush.bf16.msrb.mxu2 %v9818_v55  ;;  %v4115_v55 = vpop.f32.mrf.mxu2  ;;  %v4184_v53 = vpop.f32.mrf.mxu1 }
 0xc11   :  { %6862 = vmatpush.bf16.msra.mxu0 %v9836_v22  ;;  %6878 = vmatpush.bf16.msrb.mxu1 %v9842_v47  ;;  %v4522_v22 = vpack.c.bf16 %v4490_v17, %v4458_v33  ;;  %v3651_v47 = vmax.f32 %v3404_v59, 0.0  ;;  %v4253_v14 = vpop.f32.mrf.mxu0  ;;  %v9858_v17 = vld [vmem:[#allocation19 + $0x558] sm:$0xff]  ;;  %v11371_v59 = vld [vmem:[#allocation38_spill] sm:$0xff] }
 0xc12   :  { %6846 = vmatpush.bf16.msrb.mxu3 %v9830_v16  ;;  %v9824_v16 = vld [vmem:[#allocation19 + $0x448] sm:$0xff] }
 0xc13   :  { %6798 = vmatmul.bf16.vlgmr.msra.gmra.mxu3 %v4517_v9  ;;  %v9875_v9 = vld [vmem:[#allocation19 + $0x5e0] sm:$0xff] }
 0xc14   :  { %6837 = vmatpush.bf16.msrb.mxu2 %v9817_v4  ;;  %v4489_v4 = vmul.f32 %v4115_v55, %v3651_v47  ;;  %v1831_v47 = vperm.slane %v11252_v61, 5 }
 0xc15   :  { %6863 = vmatpush.bf16.msra.mxu0 %v9835_v52  ;;  %6879 = vmatpush.bf16.msrb.mxu1 %v9841_v54  ;;  %v9862_v52 = vld [vmem:[#allocation19 + $0x578] sm:$0xff]  ;;  %v9868_v54 = vld [vmem:[#allocation19 + $0x5a8] sm:$0xff] }
 0xc16   :  { %6847 = vmatpush.bf16.msrb.mxu3 %v9829_v21  ;;  %v3619_v21 = vmax.f32 %v3402_v49, 0.0 }
 0xc18   :  { %6838 = vmatpush.bf16.msrb.mxu2 %v9816_v62  ;;  %v4457_v60 = vmul.f32 %v4112_v36, %v3619_v21  ;;  %v9849_v62 = vld [vmem:[#allocation19 + $0x510] sm:$0xff]  ;;  %v4204_v6 = vpop.f32.mrf.mxu2 }
 0xc19   :  { %6864 = vmatpush.bf16.msra.mxu0 %v9834_v42  ;;  %6880 = vmatpush.bf16.msrb.mxu1 %v9840_v13  ;;  %v9867_v42 = vld [vmem:[#allocation19 + $0x5a0] sm:$0xff]  ;;  %v9873_v13 = vld [vmem:[#allocation19 + $0x5d0] sm:$0xff] }
 0xc1a   :  { %6848 = vmatpush.bf16.msrb.mxu3 %v9828_v0  ;;  %v9874_v0 = vld [vmem:[#allocation19 + $0x5d8] sm:$0xff]  ;;  %v4521_v37 = vpack.c.bf16 %v4489_v4, %v4457_v60  ;;  %v9884_v4 = vld [vmem:[#allocation19 + $0x628] sm:$0xff] }
 0xc1c   :  { %6839 = vmatpush.bf16.msrb.mxu2 %v9815_v31  ;;  %v4227_v31 = vpop.f32.mrf.mxu3 }
 0xc1d   :  { %6865 = vmatpush.bf16.msra.mxu0 %v9833_v63  ;;  %6881 = vmatpush.bf16.msrb.mxu1 %v9839_v12  ;;  %v9848_v63 = vld [vmem:[#allocation19 + $0x508] sm:$0xff] }
 0xc1e   :  { %6849 = vmatpush.bf16.msrb.mxu3 %v9827_v24  ;;  %v11367_v24 = vld [vmem:[#allocation41_spill] sm:$0xff]  ;;  %v9872_v12 = vld [vmem:[#allocation19 + $0x5c8] sm:$0xff] }
 0xc1f   :  { %6840 = vmatmul.bf16.vlgmr.msrb.gmra.mxu2 %v4520_v40  ;;  %v3488_v10 = vadd.f32 %v11367_v24, %v1833_v30  ;;  %v4273_v24 = vpop.f32.mrf.mxu1 }
 0xc20   :  { %6888 = vmatpush.bf16.msra.mxu2 %v9854_v8  ;;  %6882 = vmatmul.bf16.vlgmr.msrb.gmra.mxu1 %v4523_v43  ;;  %v11369_v8 = vld [vmem:[#allocation36_spill] sm:$0xff] }
 0xc21   :  { %6930 = vmatpush.bf16.msra.mxu1 %v9878_v45  ;;  %6866 = vmatpush.bf16.msra.mxu0 %v9832_v5  ;;  %v3486_v50 = vadd.f32 %v11369_v8, %v1833_v30  ;;  %v3654_v45 = vmax.f32 %v3446_v15, 0.0  ;;  %v3657_v36 = vmax.f32 %v3488_v10, 0.0  ;;  %v1832_v5 = vperm.slane %v11252_v61, 6  ;;  %v9886_v43 = vld [vmem:[#allocation19 + $0x638] sm:$0xff]  ;;  %v9855_v30 = vld [vmem:[#allocation19 + $0x540] sm:$0xff] }
 0xc22   :  { %6850 = vmatpush.bf16.msrb.mxu3 %v9826_v58  ;;  %v9847_v58 = vld [vmem:[#allocation19 + $0x500] sm:$0xff]  ;;  %v9882_v10 = vld [vmem:[#allocation19 + $0x618] sm:$0xff] }
 0xc23   :  { %v4492_v40 = vmul.f32 %v4184_v53, %v3654_v45  ;;  %v3625_v19 = vmax.f32 %v3486_v50, 0.0  ;;  %v11278_v8 = vld [vmem:[#allocation17 + $0x18] sm:$0xff]  ;;  %v9881_v50 = vld [vmem:[#allocation19 + $0x610] sm:$0xff]  ;;  %v9899_v53 = vld [vmem:[#allocation19 + $0x6a0] sm:$0xff] }
 0xc24   :  { %6889 = vmatpush.bf16.msra.mxu2 %v9853_v39  ;;  %v9871_v39 = vld [vmem:[#allocation19 + $0x5c0] sm:$0xff]  ;;  %v4230_v55 = vpop.f32.mrf.mxu3  ;;  %v1834_v45 = vperm.slane %v11278_v8, 0 }
 0xc25   :  { %6931 = vmatpush.bf16.msra.mxu1 %v9877_v48  ;;  %6867 = vmatpush.bf16.msra.mxu0 %v9831_v1  ;;  %v4495_v48 = vmul.f32 %v4253_v14, %v3657_v36  ;;  %v4460_v1 = vmul.f32 %v4181_v3, %v3622_v44  ;;  %v11372_v3 = vld [vmem:[#allocation35_spill] sm:$0xff]  ;;  %v11374_v36 = vld [vmem:[#allocation45_spill] sm:$0xff] }
 0xc26   :  { %6851 = vmatpush.bf16.msrb.mxu3 %v9825_v38  ;;  %v11370_v38 = vld [vmem:[#allocation42_spill] sm:$0xff]  ;;  %v9905_v14 = vld [vmem:[#allocation19 + $0x6d0] sm:$0xff] }
 0xc27   :  { %v3474_v57 = vadd.f32 %v11370_v38, %v1832_v5  ;;  %v4524_v33 = vpack.c.bf16 %v4492_v40, %v4460_v1  ;;  %v11377_v38 = vld [vmem:[#allocation44_spill] sm:$0xff]  ;;  %v4276_v1 = vpop.f32.mrf.mxu1 }
 0xc28   :  { %6890 = vmatpush.bf16.msra.mxu2 %v9852_v26  ;;  %6868 = vmatmul.bf16.vlgmr.msra.gmra.mxu0 %v4522_v22  ;;  %v4463_v26 = vmul.f32 %v4250_v35, %v3625_v19  ;;  %v9909_v22 = vld [vmem:[#allocation19 + $0x6f0] sm:$0xff]  ;;  %v9856_v35 = vld [vmem:[#allocation19 + $0x548] sm:$0xff]  ;;  %v11376_v19 = vld [vmem:[#allocation40_spill] sm:$0xff] }
 0xc29   :  { %6916 = vmatpush.bf16.msrb.mxu0 %v9870_v29  ;;  %6932 = vmatpush.bf16.msra.mxu1 %v9876_v46  ;;  %v9864_v29 = vld [vmem:[#allocation19 + $0x588] sm:$0xff]  ;;  %v3472_v46 = vadd.f32 %v11371_v59, %v1832_v5  ;;  %v11375_v5 = vld [vmem:[#allocation49_spill] sm:$0xff] }
 0xc2a   :  { %6852 = vmatpush.bf16.msrb.mxu3 %v9824_v16  ;;  %v9885_v16 = vld [vmem:[#allocation19 + $0x630] sm:$0xff]  ;;  %v4527_v49 = vpack.c.bf16 %v4495_v48, %v4463_v26  ;;  %v3500_v48 = vadd.f32 %v11376_v19, %v1834_v45  ;;  %v9891_v26 = vld [vmem:[#allocation19 + $0x660] sm:$0xff] }
 0xc2b   :  { %v9879_v59 = vld [vmem:[#allocation19 + $0x600] sm:$0xff] }
 0xc2c   :  { %6891 = vmatpush.bf16.msra.mxu2 %v9851_v25  ;;  %v3656_v25 = vmax.f32 %v3474_v57, 0.0  ;;  %v4319_v40 = vpop.f32.mrf.mxu3 }
 0xc2d   :  { %6917 = vmatpush.bf16.msrb.mxu0 %v9869_v11  ;;  %6933 = vmatpush.bf16.msra.mxu1 %v9875_v9  ;;  %v9857_v11 = vld [vmem:[#allocation19 + $0x550] sm:$0xff]  ;;  %v9863_v9 = vld [vmem:[#allocation19 + $0x580] sm:$0xff] }
 0xc2e   :  { %6853 = vmatpush.bf16.msrb.mxu3 %v9823_v18  ;;  %v3624_v18 = vmax.f32 %v3472_v46, 0.0  ;;  %v4494_v21 = vmul.f32 %v4230_v55, %v3656_v25  ;;  %v9897_v46 = vld [vmem:[#allocation19 + $0x690] sm:$0xff]  ;;  %v9903_v55 = vld [vmem:[#allocation19 + $0x6c0] sm:$0xff] }
 0xc30   :  { %6892 = vmatpush.bf16.msra.mxu2 %v9850_v7  ;;  %v3460_v7 = vadd.f32 %v11372_v3, %v1831_v47  ;;  %v4462_v60 = vmul.f32 %v4227_v31, %v3624_v18  ;;  %v9900_v31 = vld [vmem:[#allocation19 + $0x6a8] sm:$0xff] }
 0xc31   :  { %6918 = vmatpush.bf16.msrb.mxu0 %v9868_v54  ;;  %6934 = vmatpush.bf16.msra.mxu1 %v9874_v0  ;;  %v9908_v54 = vld [vmem:[#allocation19 + $0x6e8] sm:$0xff]  ;;  %v11373_v0 = vld [vmem:[#allocation33_spill] sm:$0xff] }
 0xc32   :  { %6902 = vmatpush.bf16.msra.mxu3 %v9862_v52  ;;  %v9902_v52 = vld [vmem:[#allocation19 + $0x6b8] sm:$0xff]  ;;  %v4526_v61 = vpack.c.bf16 %v4494_v21, %v4462_v60  ;;  %v3655_v2 = vmax.f32 %v3460_v7, 0.0  ;;  %v9896_v7 = vld [vmem:[#allocation19 + $0x688] sm:$0xff] }
 0xc33   :  { %6854 = vmatmul.bf16.vlgmr.msrb.gmra.mxu3 %v4521_v37  ;;  %v3458_v37 = vadd.f32 %v11373_v0, %v1831_v47  ;;  %v9942_v47 = vld [vmem:[#allocation19 + $0x7f8] sm:$0xff]  ;;  %v9917_v0 = vld [vmem:[#allocation19 + $0x730] sm:$0xff] }
 0xc34   :  { %6893 = vmatpush.bf16.msra.mxu2 %v9849_v62  ;;  %v9883_v62 = vld [vmem:[#allocation19 + $0x620] sm:$0xff] }
 0xc35   :  { %6919 = vmatpush.bf16.msrb.mxu0 %v9867_v42  ;;  %6935 = vmatpush.bf16.msra.mxu1 %v9873_v13  ;;  %v9901_v42 = vld [vmem:[#allocation19 + $0x6b0] sm:$0xff]  ;;  %v9907_v13 = vld [vmem:[#allocation19 + $0x6e0] sm:$0xff]  ;;  %v3623_v41 = vmax.f32 %v3458_v37, 0.0 }
 0xc36   :  { %6903 = vmatpush.bf16.msra.mxu3 %v9861_v56  ;;  %v4207_v56 = vpop.f32.mrf.mxu2 }
 0xc37   :  { %v4493_v15 = vmul.f32 %v4207_v56, %v3655_v2  ;;  %v4322_v56 = vpop.f32.mrf.mxu3  ;;  %v1835_v2 = vperm.slane %v11278_v8, 1 }
 0xc38   :  { %6894 = vmatpush.bf16.msra.mxu2 %v9848_v63  ;;  %v4461_v63 = vmul.f32 %v4204_v6, %v3623_v41 }
 0xc39   :  { %6920 = vmatpush.bf16.msrb.mxu0 %v9866_v34  ;;  %6936 = vmatpush.bf16.msra.mxu1 %v9872_v12  ;;  %v4342_v34 = vpop.f32.mrf.mxu0  ;;  %v9893_v12 = vld [vmem:[#allocation19 + $0x670] sm:$0xff] }
 0xc3a   :  { %6904 = vmatpush.bf16.msra.mxu3 %v9860_v20  ;;  %v9894_v20 = vld [vmem:[#allocation19 + $0x678] sm:$0xff]  ;;  %v4525_v23 = vpack.c.bf16 %v4493_v15, %v4461_v63  ;;  %v9916_v15 = vld [vmem:[#allocation19 + $0x728] sm:$0xff] }
 0xc3c   :  { %6895 = vmatpush.bf16.msra.mxu2 %v9847_v58  ;;  %v3502_v58 = vadd.f32 %v11374_v36, %v1834_v45  ;;  %v9933_v45 = vld [vmem:[#allocation19 + $0x7b0] sm:$0xff]  ;;  %v9887_v36 = vld [vmem:[#allocation19 + $0x640] sm:$0xff] }
 0xc3d   :  { %6921 = vmatpush.bf16.msrb.mxu0 %v9865_v32  ;;  %6937 = vmatpush.bf16.msra.mxu1 %v9871_v39  ;;  %v9892_v32 = vld [vmem:[#allocation19 + $0x668] sm:$0xff] }
 0xc3e   :  { %6905 = vmatpush.bf16.msra.mxu3 %v9859_v28  ;;  %v1837_v28 = vperm.slane %v11278_v8, 3  ;;  %v9880_v39 = vld [vmem:[#allocation19 + $0x608] sm:$0xff]  ;;  %v3658_v6 = vmax.f32 %v3502_v58, 0.0 }
 0xc3f   :  { %6896 = vmatmul.bf16.vlgmr.msra.gmra.mxu2 %v4524_v33  ;;  %v1836_v33 = vperm.slane %v11278_v8, 2 }
 0xc40   :  { %6944 = vmatpush.bf16.msrb.mxu2 %v9886_v43  ;;  %6938 = vmatmul.bf16.vlgmr.msra.gmra.mxu1 %v4527_v49  ;;  %v3544_v44 = vadd.f32 %v11375_v5, %v1837_v28  ;;  %v9898_v43 = vld [vmem:[#allocation19 + $0x698] sm:$0xff]  ;;  %v3542_v57 = vadd.f32 %v11377_v38, %v1837_v28  ;;  %v4496_v49 = vmul.f32 %v4276_v1, %v3658_v6  ;;  %v9939_v28 = vld [vmem:[#allocation19 + $0x7e0] sm:$0xff]  ;;  %v9925_v38 = vld [vmem:[#allocation19 + $0x770] sm:$0xff]  ;;  %v1838_v6 = vperm.slane %v11278_v8, 4 }
 0xc41   :  { %6986 = vmatpush.bf16.msrb.mxu1 %v9910_v51  ;;  %6922 = vmatpush.bf16.msrb.mxu0 %v9864_v29  ;;  %v9904_v51 = vld [vmem:[#allocation19 + $0x6c8] sm:$0xff]  ;;  %v9926_v5 = vld [vmem:[#allocation19 + $0x778] sm:$0xff]  ;;  %v9931_v1 = vld [vmem:[#allocation19 + $0x7a0] sm:$0xff] }
 0xc42   :  { %6906 = vmatpush.bf16.msra.mxu3 %v9858_v17  ;;  %v4345_v17 = vpop.f32.mrf.mxu0  ;;  %v3661_v29 = vmax.f32 %v3544_v44, 0.0  ;;  %v3629_v25 = vmax.f32 %v3542_v57, 0.0  ;;  %v4365_v44 = vpop.f32.mrf.mxu1  ;;  %v9913_v57 = vld [vmem:[#allocation19 + $0x710] sm:$0xff] }
 0xc44   :  { %6945 = vmatpush.bf16.msrb.mxu2 %v9885_v16  ;;  %v3626_v16 = vmax.f32 %v3500_v48, 0.0  ;;  %v4467_v3 = vmul.f32 %v4342_v34, %v3629_v25  ;;  %v9888_v34 = vld [vmem:[#allocation19 + $0x648] sm:$0xff]  ;;  %v9938_v48 = vld [vmem:[#allocation19 + $0x7d8] sm:$0xff] }
 0xc45   :  { %6987 = vmatpush.bf16.msrb.mxu1 %v9909_v22  ;;  %6923 = vmatpush.bf16.msrb.mxu0 %v9863_v9  ;;  %v9918_v22 = vld [vmem:[#allocation19 + $0x738] sm:$0xff]  ;;  %v11378_v9 = vld [vmem:[#allocation50_spill] sm:$0xff] }
 0xc46   :  { %6907 = vmatpush.bf16.msra.mxu3 %v9857_v11  ;;  %v4499_v11 = vmul.f32 %v4345_v17, %v3661_v29  ;;  %v3530_v18 = vadd.f32 %v11378_v9, %v1836_v33  ;;  %v4464_v21 = vmul.f32 %v4273_v24, %v3626_v16  ;;  %v11380_v24 = vld [vmem:[#allocation43_spill] sm:$0xff]  ;;  %v11382_v29 = vld [vmem:[#allocation53_spill] sm:$0xff]  ;;  %v11384_v25 = vld [vmem:[#allocation48_spill] sm:$0xff] }
 0xc47   :  { %v9937_v17 = vld [vmem:[#allocation19 + $0x7d0] sm:$0xff]  ;;  %v11385_v9 = vld [vmem:[#allocation52_spill] sm:$0xff] }
 0xc48   :  { %6946 = vmatpush.bf16.msrb.mxu2 %v9884_v4  ;;  %6924 = vmatmul.bf16.vlgmr.msrb.gmra.mxu0 %v4526_v61  ;;  %v4296_v4 = vpop.f32.mrf.mxu2  ;;  %v4531_v37 = vpack.c.bf16 %v4499_v11, %v4467_v3  ;;  %v9941_v61 = vld [vmem:[#allocation19 + $0x7f0] sm:$0xff]  ;;  %v3556_v11 = vadd.f32 %v11384_v25, %v1838_v6  ;;  %v9923_v3 = vld [vmem:[#allocation19 + $0x760] sm:$0xff] }
 0xc49   :  { %6972 = vmatpush.bf16.msra.mxu0 %v9902_v52  ;;  %6988 = vmatpush.bf16.msrb.mxu1 %v9908_v54  ;;  %v9890_v52 = vld [vmem:[#allocation19 + $0x658] sm:$0xff]  ;;  %v11379_v54 = vld [vmem:[#allocation46_spill] sm:$0xff] }
 0xc4a   :  { %6908 = vmatpush.bf16.msra.mxu3 %v9856_v35  ;;  %v3528_v60 = vadd.f32 %v11379_v54, %v1836_v33  ;;  %v4528_v35 = vpack.c.bf16 %v4496_v49, %v4464_v21  ;;  %v4434_v19 = vpop.f32.mrf.mxu0  ;;  %v11383_v33 = vld [vmem:[#allocation55_spill] sm:$0xff]  ;;  %v4411_v49 = vpop.f32.mrf.mxu3  ;;  %v9911_v54 = vld [vmem:[#allocation19 + $0x700] sm:$0xff] }
 0xc4b   :  { %v4368_v21 = vpop.f32.mrf.mxu1 }
 0xc4c   :  { %6947 = vmatpush.bf16.msrb.mxu2 %v9883_v62  ;;  %v3660_v62 = vmax.f32 %v3530_v18, 0.0 }
 0xc4d   :  { %6973 = vmatpush.bf16.msra.mxu0 %v9901_v42  ;;  %6989 = vmatpush.bf16.msrb.mxu1 %v9907_v13  ;;  %v9889_v42 = vld [vmem:[#allocation19 + $0x650] sm:$0xff]  ;;  %v9895_v13 = vld [vmem:[#allocation19 + $0x680] sm:$0xff] }
 0xc4e   :  { %6909 = vmatpush.bf16.msra.mxu3 %v9855_v30  ;;  %v3628_v30 = vmax.f32 %v3528_v60, 0.0  ;;  %v4498_v41 = vmul.f32 %v4322_v56, %v3660_v62  ;;  %v9929_v60 = vld [vmem:[#allocation19 + $0x790] sm:$0xff] }
 0xc50   :  { %6948 = vmatpush.bf16.msrb.mxu2 %v9882_v10  ;;  %v3516_v10 = vadd.f32 %v11380_v24, %v1835_v2  ;;  %v4466_v63 = vmul.f32 %v4319_v40, %v3628_v30  ;;  %v9914_v40 = vld [vmem:[#allocation19 + $0x718] sm:$0xff]  ;;  %v11387_v24 = vld [vmem:[#allocation54_spill] sm:$0xff] }
 0xc51   :  { %6974 = vmatpush.bf16.msra.mxu0 %v9900_v31  ;;  %6990 = vmatpush.bf16.msrb.mxu1 %v9906_v27  ;;  %v9940_v31 = vld [vmem:[#allocation19 + $0x7e8] sm:$0xff]  ;;  %v11381_v27 = vld [vmem:[#allocation39_spill] sm:$0xff] }
 0xc52   :  { %6958 = vmatpush.bf16.msrb.mxu3 %v9894_v20  ;;  %v9934_v20 = vld [vmem:[#allocation19 + $0x7b8] sm:$0xff] }
 0xc53   :  { %6910 = vmatmul.bf16.vlgmr.msra.gmra.mxu3 %v4525_v23  ;;  %v3514_v23 = vadd.f32 %v11381_v27, %v1835_v2  ;;  %v11386_v2 = vld [vmem:[#allocation56_spill] sm:$0xff] }
 0xc54   :  { %6949 = vmatpush.bf16.msrb.mxu2 %v9881_v50  ;;  %v4530_v50 = vpack.c.bf16 %v4498_v41, %v4466_v63  ;;  %v9922_v41 = vld [vmem:[#allocation19 + $0x758] sm:$0xff] }
 0xc55   :  { %6975 = vmatpush.bf16.msra.mxu0 %v9899_v53  ;;  %6991 = vmatpush.bf16.msrb.mxu1 %v9905_v14  ;;  %v9915_v53 = vld [vmem:[#allocation19 + $0x720] sm:$0xff]  ;;  %v3659_v14 = vmax.f32 %v3516_v10, 0.0  ;;  %v3627_v58 = vmax.f32 %v3514_v23, 0.0  ;;  %v9921_v23 = vld [vmem:[#allocation19 + $0x750] sm:$0xff] }
 0xc56   :  { %6959 = vmatpush.bf16.msrb.mxu3 %v9893_v12  ;;  %v4299_v12 = vpop.f32.mrf.mxu2 }
 0xc58   :  { %6950 = vmatpush.bf16.msrb.mxu2 %v9880_v39  ;;  %v9932_v39 = vld [vmem:[#allocation19 + $0x7a8] sm:$0xff] }
 0xc59   :  { %6976 = vmatpush.bf16.msra.mxu0 %v9898_v43  ;;  %6992 = vmatpush.bf16.msrb.mxu1 %v9904_v51  ;;  %v4465_v43 = vmul.f32 %v4296_v4, %v3627_v58 }
 0xc5a   :  { %6960 = vmatpush.bf16.msrb.mxu3 %v9892_v32  ;;  %v4497_v32 = vmul.f32 %v4299_v12, %v3659_v14  ;;  %v1839_v12 = vperm.slane %v11278_v8, 5 }
 0xc5c   :  { %6951 = vmatpush.bf16.msrb.mxu2 %v9879_v59  ;;  %v4529_v51 = vpack.c.bf16 %v4497_v32, %v4465_v43  ;;  %v3558_v59 = vadd.f32 %v11382_v29, %v1838_v6 }
 0xc5d   :  { %6977 = vmatpush.bf16.msra.mxu0 %v9897_v46  ;;  %6993 = vmatpush.bf16.msrb.mxu1 %v9903_v55  ;;  %v9924_v46 = vld [vmem:[#allocation19 + $0x768] sm:$0xff] }
 0xc5e   :  { %6961 = vmatpush.bf16.msrb.mxu3 %v9891_v26  ;;  %v1841_v26 = vperm.slane %v11278_v8, 7  ;;  %v9912_v55 = vld [vmem:[#allocation19 + $0x708] sm:$0xff]  ;;  %v3662_v4 = vmax.f32 %v3558_v59, 0.0  ;;  %v4388_v56 = vpop.f32.mrf.mxu2 }
 0xc5f   :  { %6952 = vmatmul.bf16.vlgmr.msrb.gmra.mxu2 %v4528_v35  ;;  %v1840_v35 = vperm.slane %v11278_v8, 6  ;;  %v9919_v8 = vld [vmem:[#allocation19 + $0x740] sm:$0xff] }
 0xc60   :  { %7000 = vmatpush.bf16.msra.mxu2 %v9918_v22  ;;  %6994 = vmatmul.bf16.vlgmr.msrb.gmra.mxu1 %v4531_v37  ;;  %v3600_v16 = vadd.f32 %v11383_v33, %v1841_v26  ;;  %v9930_v22 = vld [vmem:[#allocation19 + $0x798] sm:$0xff]  ;;  %v3598_v18 = vadd.f32 %v11385_v9, %v1841_v26  ;;  %v4500_v37 = vmul.f32 %v4368_v21, %v3662_v4 }
 0xc61   :  { %7042 = vmatpush.bf16.msra.mxu1 %v9942_v47  ;;  %6978 = vmatpush.bf16.msra.mxu0 %v9896_v7  ;;  %v9936_v47 = vld [vmem:[#allocation19 + $0x7c8] sm:$0xff]  ;;  %v3584_v10 = vadd.f32 %v11387_v24, %v1840_v35 }
 0xc62   :  { %6962 = vmatpush.bf16.msrb.mxu3 %v9890_v52  ;;  %v4437_v52 = vpop.f32.mrf.mxu0  ;;  %v3665_v7 = vmax.f32 %v3600_v16, 0.0  ;;  %v3633_v62 = vmax.f32 %v3598_v18, 0.0 }
 0xc64   :  { %7001 = vmatpush.bf16.msra.mxu2 %v9917_v0  ;;  %v3630_v0 = vmax.f32 %v3556_v11, 0.0 }
 0xc65   :  { %7043 = vmatpush.bf16.msra.mxu1 %v9941_v61  ;;  %6979 = vmatpush.bf16.msra.mxu0 %v9895_v13  ;;  %v9935_v61 = vld [vmem:[#allocation19 + $0x7c0] sm:$0xff]  ;;  %v3586_v13 = vadd.f32 %v11386_v2, %v1840_v35 }
 0xc66   :  { %6963 = vmatpush.bf16.msrb.mxu3 %v9889_v42  ;;  %v4503_v42 = vmul.f32 %v4437_v52, %v3665_v7  ;;  %v4468_v30 = vmul.f32 %v4365_v44, %v3630_v0  ;;  %v4391_v58 = vpop.f32.mrf.mxu2  ;;  %v11389_v44 = vld [vmem:[#allocation47_spill] sm:$0xff] }
 0xc67   :  { %v3664_v27 = vmax.f32 %v3586_v13, 0.0 }
 0xc68   :  { %7002 = vmatpush.bf16.msra.mxu2 %v9916_v15  ;;  %6980 = vmatmul.bf16.vlgmr.msra.gmra.mxu0 %v4530_v50  ;;  %v4471_v15 = vmul.f32 %v4434_v19, %v3633_v62  ;;  %v9927_v50 = vld [vmem:[#allocation19 + $0x780] sm:$0xff] }
 0xc69   :  { %7028 = vmatpush.bf16.msrb.mxu0 %v9934_v20  ;;  %7044 = vmatpush.bf16.msra.mxu1 %v9940_v31  ;;  %v9928_v20 = vld [vmem:[#allocation19 + $0x788] sm:$0xff]  ;;  %v4532_v31 = vpack.c.bf16 %v4500_v37, %v4468_v30 }
 0xc6a   :  { %6964 = vmatpush.bf16.msrb.mxu3 %v9888_v34  ;;  %v4535_v63 = vpack.c.bf16 %v4503_v42, %v4471_v15  ;;  %v4414_v34 = vpop.f32.mrf.mxu3  ;;  %v6645_v6 = vpop.f32.mrf.mxu0 }
 0xc6b   :  { %v4502_v14 = vmul.f32 %v4414_v34, %v3664_v27 }
 0xc6c   :  { %7003 = vmatpush.bf16.msra.mxu2 %v9915_v53  ;;  %v3632_v53 = vmax.f32 %v3584_v10, 0.0 }
 0xc6d   :  { %7029 = vmatpush.bf16.msrb.mxu0 %v9933_v45  ;;  %7045 = vmatpush.bf16.msra.mxu1 %v9939_v28  ;;  %v5066_v45 = vpop.f32.mrf.mxu1  ;;  %v11388_v28 = vld [vmem:[#allocation51_spill] sm:$0xff] }
 0xc6e   :  { %6965 = vmatpush.bf16.msrb.mxu3 %v9887_v36  ;;  %v3572_v36 = vadd.f32 %v11388_v28, %v1839_v12  ;;  %v4470_v32 = vmul.f32 %v4411_v49, %v3632_v53 }
 0xc70   :  { %7004 = vmatpush.bf16.msra.mxu2 %v9914_v40  ;;  %v3570_v40 = vadd.f32 %v11389_v44, %v1839_v12  ;;  %v3663_v43 = vmax.f32 %v3572_v36, 0.0 }
 0xc71   :  { %7030 = vmatpush.bf16.msrb.mxu0 %v9932_v39  ;;  %7046 = vmatpush.bf16.msra.mxu1 %v9938_v48  ;;  %v4534_v39 = vpack.c.bf16 %v4502_v14, %v4470_v32 }
 0xc72   :  { %7014 = vmatpush.bf16.msra.mxu3 %v9926_v5  ;;  %v9920_v5 = vld [vmem:[#allocation19 + $0x748] sm:$0xff]  ;;  %v3631_v19 = vmax.f32 %v3570_v40, 0.0  ;;  %v4501_v48 = vmul.f32 %v4391_v58, %v3663_v43  ;;  %v6631_v26 = vpop.f32.mrf.mxu3  ;;  %v6647_v59 = vpop.f32.mrf.mxu0 }
 0xc73   :  { %6966 = vmatmul.bf16.vlgmr.msrb.gmra.mxu3 %v4529_v51 }
 0xc74   :  { %7005 = vmatpush.bf16.msra.mxu2 %v9913_v57  ;;  %v4469_v51 = vmul.f32 %v4388_v56, %v3631_v19  ;;  %v6617_v57 = vpop.f32.mrf.mxu2 }
 0xc75   :  { %7031 = vmatpush.bf16.msrb.mxu0 %v9931_v1  ;;  %7047 = vmatpush.bf16.msra.mxu1 %v9937_v17  ;;  %v6618_v7 = vadd.f32 %v6617_v57, %v5066_v45 }
 0xc76   :  { %7015 = vmatpush.bf16.msra.mxu3 %v9925_v38  ;;  %v5069_v38 = vpop.f32.mrf.mxu1  ;;  %v4533_v1 = vpack.c.bf16 %v4501_v48, %v4469_v51 }
 0xc78   :  { %7006 = vmatpush.bf16.msra.mxu2 %v9912_v55 }
 0xc79   :  { %7032 = vmatpush.bf16.msrb.mxu0 %v9930_v22  ;;  %7048 = vmatpush.bf16.msra.mxu1 %v9936_v47 }
 0xc7a   :  { %7016 = vmatpush.bf16.msra.mxu3 %v9924_v46  ;;  %v6633_v33 = vpop.f32.mrf.mxu3  ;;  %v6701_v49 = vpop.f32.mrf.mxu0 }
 0xc7c   :  { %7007 = vmatpush.bf16.msra.mxu2 %v9911_v54  ;;  %v6619_v29 = vpop.f32.mrf.mxu2  ;;  %v6632_v54 = vadd.f32 %v6631_v26, %v6618_v7 }
 0xc7d   :  { %7033 = vmatpush.bf16.msrb.mxu0 %v9929_v60  ;;  %7049 = vmatpush.bf16.msra.mxu1 %v9935_v61  ;;  %v6620_v61 = vadd.f32 %v6619_v29, %v5069_v38 }
 0xc7e   :  { %7017 = vmatpush.bf16.msra.mxu3 %v9923_v3  ;;  %v6659_v17 = vpop.f32.mrf.mxu1  ;;  %v6646_v0 = vadd.f32 %v6645_v6, %v6632_v54 }
 0xc7f   :  { %7008 = vmatmul.bf16.vlgmr.msra.gmra.mxu2 %v4532_v31  ;;  %v6634_v42 = vadd.f32 %v6633_v33, %v6620_v61 }
 0xc80   :  { %7050 = vmatmul.bf16.vlgmr.msra.gmra.mxu1 %v4535_v63  ;;  %v6660_v62 = vadd.f32 %v6659_v17, %v6646_v0 }
 0xc81   :  { %7034 = vmatpush.bf16.msrb.mxu0 %v9928_v20 }
 0xc82   :  { %7018 = vmatpush.bf16.msra.mxu3 %v9922_v41  ;;  %v6687_v55 = vpop.f32.mrf.mxu3  ;;  %v6703_v11 = vpop.f32.mrf.mxu0  ;;  %v6648_v41 = vadd.f32 %v6647_v59, %v6634_v42 }
 0xc84   :  { %v6673_v16 = vpop.f32.mrf.mxu2 }
 0xc85   :  { %7035 = vmatpush.bf16.msrb.mxu0 %v9927_v50  ;;  %v6674_v2 = vadd.f32 %v6673_v16, %v6660_v62 }
 0xc86   :  { %7019 = vmatpush.bf16.msra.mxu3 %v9921_v23  ;;  %v6661_v46 = vpop.f32.mrf.mxu1 }
 0xc87   :  { %v6688_v15 = vadd.f32 %v6687_v55, %v6674_v2  ;;  %v6662_v10 = vadd.f32 %v6661_v46, %v6648_v41 }
 0xc88   :  { %7036 = vmatmul.bf16.vlgmr.msrb.gmra.mxu0 %v4534_v39 }
 0xc89   :  { %v6702_v31 = vadd.f32 %v6701_v49, %v6688_v15 }
 0xc8a   :  { %7020 = vmatpush.bf16.msra.mxu3 %v9920_v5  ;;  %v6689_v47 = vpop.f32.mrf.mxu3  ;;  %v6757_v21 = vpop.f32.mrf.mxu0 }
 0xc8c   :  { %v6675_v25 = vpop.f32.mrf.mxu2 }
 0xc8d   :  { %v6676_v63 = vadd.f32 %v6675_v25, %v6662_v10 }
 0xc8e   :  { %7021 = vmatpush.bf16.msra.mxu3 %v9919_v8  ;;  %v6715_v22 = vpop.f32.mrf.mxu1 }
 0xc8f   :  { %v6690_v34 = vadd.f32 %v6689_v47, %v6676_v63  ;;  %v6716_v27 = vadd.f32 %v6715_v22, %v6702_v31 }
 0xc91   :  { %7022 = vmatmul.bf16.vlgmr.msra.gmra.mxu3 %v4533_v1  ;;  %v6704_v14 = vadd.f32 %v6703_v11, %v6690_v34 }
 0xc92   :  { %v6743_v4 = vpop.f32.mrf.mxu3  ;;  %v6759_v60 = vpop.f32.mrf.mxu0 }
 0xc94   :  { %v6729_v18 = vpop.f32.mrf.mxu2 }
 0xc95   :  { %v6730_v50 = vadd.f32 %v6729_v18, %v6716_v27 }
 0xc96   :  { %v6717_v9 = vpop.f32.mrf.mxu1 }
 0xc97   :  { %v6744_v28 = vadd.f32 %v6743_v4, %v6730_v50  ;;  %v6718_v36 = vadd.f32 %v6717_v9, %v6704_v14 }
 0xc99   :  { %v6758_v58 = vadd.f32 %v6757_v21, %v6744_v28 }
 0xc9a   :  { %v6745_v35 = vpop.f32.mrf.mxu3  ;;  %v6813_v13 = vpop.f32.mrf.mxu0 }
 0xc9c   :  { %v6731_v3 = vpop.f32.mrf.mxu2 }
 0xc9d   :  { %v6732_v44 = vadd.f32 %v6731_v3, %v6718_v36 }
 0xc9e   :  { %v6771_v52 = vpop.f32.mrf.mxu1 }
 0xc9f   :  { %v6746_v39 = vadd.f32 %v6745_v35, %v6732_v44  ;;  %v6772_v43 = vadd.f32 %v6771_v52, %v6758_v58 }
 0xca1   :  { %v6760_v48 = vadd.f32 %v6759_v60, %v6746_v39 }
 0xca2   :  { %v6799_v30 = vpop.f32.mrf.mxu3  ;;  %v6815_v23 = vpop.f32.mrf.mxu0 }
 0xca4   :  { %v6785_v56 = vpop.f32.mrf.mxu2 }
 0xca5   :  { %v6786_v19 = vadd.f32 %v6785_v56, %v6772_v43 }
 0xca6   :  { %v6773_v37 = vpop.f32.mrf.mxu1 }
 0xca7   :  { %v6800_v51 = vadd.f32 %v6799_v30, %v6786_v19  ;;  %v6774_v1 = vadd.f32 %v6773_v37, %v6760_v48  ;;  %v11390_v19 = vld [vmem:[#allocation31_spill] sm:$0xff] }
 0xca9   :  { %v6814_v6 = vadd.f32 %v6813_v13, %v6800_v51 }
 0xcaa   :  { %v6801_v12 = vpop.f32.mrf.mxu3  ;;  %v6869_v32 = vpop.f32.mrf.mxu0 }
 0xcac   :  { %v6787_v24 = vpop.f32.mrf.mxu2 }
 0xcad   :  { %v6788_v29 = vadd.f32 %v6787_v24, %v6774_v1 }
 0xcae   :  { %v6827_v20 = vpop.f32.mrf.mxu1 }
 0xcaf   :  { %v6802_v59 = vadd.f32 %v6801_v12, %v6788_v29  ;;  %v6828_v46 = vadd.f32 %v6827_v20, %v6814_v6 }
 0xcb1   :  { %v6816_v55 = vadd.f32 %v6815_v23, %v6802_v59  ;;  %v11391_v59 = vld [vmem:[#allocation32_spill] sm:$0xff] }
 0xcb2   :  { %v6871_v38 = vpop.f32.mrf.mxu0 }
 0xcb4   :  { %v6841_v45 = vpop.f32.mrf.mxu2 }
 0xcb5   :  { %v6842_v33 = vadd.f32 %v6841_v45, %v6828_v46 }
 0xcb6   :  { %v6829_v53 = vpop.f32.mrf.mxu1  ;;  %v6855_v5 = vpop.f32.mrf.mxu3 }
 0xcb7   :  { %v6856_v22 = vadd.f32 %v6855_v5, %v6842_v33  ;;  %v6830_v47 = vadd.f32 %v6829_v53, %v6816_v55 }
 0xcb9   :  { %v6870_v9 = vadd.f32 %v6869_v32, %v6856_v22 }
 0xcbc   :  { %v6843_v8 = vpop.f32.mrf.mxu2 }
 0xcbd   :  { %v6844_v18 = vadd.f32 %v6843_v8, %v6830_v47 }
 0xcbe   :  { %v6883_v40 = vpop.f32.mrf.mxu1  ;;  %v6857_v57 = vpop.f32.mrf.mxu3 }
 0xcbf   :  { %v6858_v21 = vadd.f32 %v6857_v57, %v6844_v18  ;;  %v6884_v4 = vadd.f32 %v6883_v40, %v6870_v9  ;;  %v7064_v40 = vpop.permute.xlu2 %7063 }
 0xcc0   :  { %vm7068_vm10 = vcmp.eq.s32.totalorder %v7064_v40, 1 }
 0xcc1   :  { %v6872_v35 = vadd.f32 %v6871_v38, %v6858_v21 }
 0xcc4   :  { %v6897_v26 = vpop.f32.mrf.mxu2 }
 0xcc5   :  { %v6925_v16 = vpop.f32.mrf.mxu0  ;;  %v6898_v7 = vadd.f32 %v6897_v26, %v6884_v4  ;;  %v7067_v26 = vpop.permute.xlu1 %7066 }
 0xcc6   :  { %v6885_v17 = vpop.f32.mrf.mxu1  ;;  %vm7069_vm13 = vcmp.eq.s32.totalorder %v7067_v26, 1 }
 0xcc7   :  { %v6886_v37 = vadd.f32 %v6885_v17, %v6872_v35 }
 0xccc   :  { %v6899_v11 = vpop.f32.mrf.mxu2 }
 0xccd   :  { %v6927_v52 = vpop.f32.mrf.mxu0  ;;  %v6900_v42 = vadd.f32 %v6899_v11, %v6886_v37 }
 0xcce   :  { %v6939_v25 = vpop.f32.mrf.mxu1 }
 0xcd6   :  { %v6911_v49 = vpop.f32.mrf.mxu3  ;;  %v6941_v54 = vpop.f32.mrf.mxu1 }
 0xcd7   :  { %v6912_v0 = vadd.f32 %v6911_v49, %v6898_v7 }
 0xcd9   :  { %v6926_v56 = vadd.f32 %v6925_v16, %v6912_v0 }
 0xcdb   :  { %v6940_v30 = vadd.f32 %v6939_v25, %v6926_v56 }
 0xcde   :  { %v6913_v3 = vpop.f32.mrf.mxu3  ;;  %v6995_v2 = vpop.f32.mrf.mxu1 }
 0xcdf   :  { %v6914_v13 = vadd.f32 %v6913_v3, %v6900_v42 }
 0xce1   :  { %v6928_v20 = vadd.f32 %v6927_v52, %v6914_v13 }
 0xce2   :  { %v6953_v60 = vpop.f32.mrf.mxu2 }
 0xce3   :  { %v6954_v15 = vadd.f32 %v6953_v60, %v6940_v30  ;;  %v6942_v63 = vadd.f32 %v6941_v54, %v6928_v20 }
 0xce5   :  { %v6981_v61 = vpop.f32.mrf.mxu0 }
 0xce6   :  { %v6997_v27 = vpop.f32.mrf.mxu1 }
 0xcea   :  { %v6955_v41 = vpop.f32.mrf.mxu2 }
 0xceb   :  { %v6956_v12 = vadd.f32 %v6955_v41, %v6942_v63 }
 0xced   :  { %v6983_v10 = vpop.f32.mrf.mxu0 }
 0xcf6   :  { %v6967_v62 = vpop.f32.mrf.mxu3 }
 0xcf7   :  { %v6968_v24 = vadd.f32 %v6967_v62, %v6954_v15 }
 0xcf9   :  { %v6982_v34 = vadd.f32 %v6981_v61, %v6968_v24 }
 0xcfb   :  { %v6996_v53 = vadd.f32 %v6995_v2, %v6982_v34 }
 0xcfd   :  { %v7051_v32 = vpop.f32.mrf.mxu1 }
 0xcfe   :  { %v6969_v31 = vpop.f32.mrf.mxu3 }
 0xcff   :  { %v6970_v50 = vadd.f32 %v6969_v31, %v6956_v12 }
 0xd01   :  { %v6984_v36 = vadd.f32 %v6983_v10, %v6970_v50 }
 0xd02   :  { %v7009_v23 = vpop.f32.mrf.mxu2 }
 0xd03   :  { %v7010_v45 = vadd.f32 %v7009_v23, %v6996_v53  ;;  %v6998_v39 = vadd.f32 %v6997_v27, %v6984_v36 }
 0xd05   :  { %v7037_v14 = vpop.f32.mrf.mxu0  ;;  %v7053_v17 = vpop.f32.mrf.mxu1 }
 0xd0a   :  { %v7011_v44 = vpop.f32.mrf.mxu2 }
 0xd0b   :  { %v7012_v8 = vadd.f32 %v7011_v44, %v6998_v39 }
 0xd0d   :  { %v7039_v1 = vpop.f32.mrf.mxu0 }
 0xd14   :  { %v7023_v28 = vpop.f32.mrf.mxu3 }
 0xd15   :  { %v7024_v58 = vadd.f32 %v7023_v28, %v7010_v45 }
 0xd17   :  { %v7038_v5 = vadd.f32 %v7037_v14, %v7024_v58 }
 0xd19   :  { %v7052_v43 = vadd.f32 %v7051_v32, %v7038_v5 }
 0xd1b   :  { %v7058_v48 = vadd.f32 %v7052_v43, %v11390_v19 }
 0xd1c   :  { %v7025_v51 = vpop.f32.mrf.mxu3 }
 0xd1d   :  { %v7026_v38 = vadd.f32 %v7025_v51, %v7012_v8  ;;  %v7070_v57 = vsel %vm7068_vm10, %v11390_v19, %v7058_v48 }
 0xd1e   :  { %7072 = vst [vmem:[#allocation22] sm:$0xff] %v7070_v57 }
 0xd1f   :  { %v7040_v6 = vadd.f32 %v7039_v1, %v7026_v38 }
 0xd21   :  { %v7054_v29 = vadd.f32 %v7053_v17, %v7040_v6 }
 0xd23   :  { %v7059_v46 = vadd.f32 %v7054_v29, %v11391_v59 }
 0xd25   :  { %v7071_v33 = vsel %vm7069_vm13, %v11391_v59, %v7059_v46 }
 0xd26   :  { %7073 = vst [vmem:[#allocation22 + $0x8] sm:$0xff] %v7071_v33 }
 0xd27   :  { %7086 = dma.vmem_to_hbm [thread:$0]  %s7079_s22, 256, %s7081_s23, [#allocation4], %s10398_s19, %s10398_s19, %s10399_s2  }
 0xd28   :  { %10388 = dma.done.wait [#allocation4], 256  }
 0xd29   :  { %10389 = vsyncadd [#allocation4], 4294967040 }
 0xd2a   :  { %7091 = vsyncpa [#allocation3], 1 }
 0xd2b   :  { %7092 = vsyncpa [#allocation6], 1 }
 0xd2c   :  { %7093 = vsyncpa [#allocation9], 1 }
 0xd2d   :  { %7094 = vsyncpa [#allocation12], 1 }
 0xd2e   :  { %7095 = vsyncpa [#allocation15], 1 }
 0xd2f   :  { %7096 = vsyncpa [#allocation18], 1 }
 0xd30   :  { %7097 = vsyncpa [#allocation21], 1 }
 0xd31   :  { %7098 = vsyncpa [#allocation4], 1 }

</bundles_post_ra>
